<compile_context>
chip_gen: v7x
topology: tpu7x:2x2x1
jax: 0.10.0
libtpu: 0.0.40
codegen_flags: <defaults>
</compile_context>

<pallas_src>
import numpy as np
import jax
import jax.numpy as jnp
from jax.experimental import pallas as pl
from jax.experimental.pallas import tpu as pltpu

# ---- small synthetic FACT config ------------------------------------------
T_FRAMES = 16    # frames per video (T)
IN_DIM   = 32    # input feature dim (== HID so the in_map weight packs with the rest)
HID      = 32    # hid_dim == f_dim == a_dim
NTOKEN   = 8     # action query tokens (cfg.FACT.ntoken)
N1       = 6     # verb classes  (n_classes1)
N2       = 9     # noun classes  (n_classes2)
N_ACT    = 9     # number of (verb, noun) action pairs

# Deterministic stand-in for init_VIDS_NIDS() (the repo reads mapping files).
_VIDS = [i % N1 for i in range(N_ACT)]
_NIDS = [i % N2 for i in range(N_ACT)]

# ---- packed parameter layout ----------------------------------------------
_W_NAMES = (
    # InputBlockTDU
    "i_in",
    "i_dl1_m", "i_dl1_c", "i_dl1_p", "i_dl1_w1",
    "i_dl2_m", "i_dl2_c", "i_dl2_p", "i_dl2_w1",
    "i_out",
    "i_seg_update", "i_seg_combine",
    "i_sa_wq", "i_sa_wk", "i_sa_wv", "i_sa_wo",
    "i_ff1", "i_ff2",
    # UpdateBlockTDU
    "u_seg_update", "u_seg_combine",
    "u_f2a_wq", "u_f2a_wk", "u_f2a_wv", "u_f2a_wo",
    "u_aff1", "u_aff2",
    "u_a2f_wq", "u_a2f_wk", "u_a2f_wv", "u_a2f_wo",
    "u_sf_merge_s", "u_sf_merge_f",
    "u_dl1_m", "u_dl1_c", "u_dl1_p", "u_dl1_w1",
    "u_dl2_m", "u_dl2_c", "u_dl2_p", "u_dl2_w1",
    "u_out",
)
_B_NAMES = (
    "i_in", "i_dl1_bd", "i_dl1_b1", "i_dl2_bd", "i_dl2_b1", "i_out",
    "i_seg_update", "i_seg_combine", "i_ff1", "i_ff2",
    "u_seg_update", "u_seg_combine", "u_aff1", "u_aff2", "u_sf_merge",
    "u_dl1_bd", "u_dl1_b1", "u_dl2_bd", "u_dl2_b1", "u_out",
)
_W = {n: i for i, n in enumerate(_W_NAMES)}
_B = {n: i for i, n in enumerate(_B_NAMES)}

# aux slab rows: [ frame_pe (T) | action_query (NTOKEN) | biases (len(_B_NAMES)) ]
_AUX_FPE_ROW = 0
_AUX_AQ_ROW = T_FRAMES
_AUX_BIAS_ROW = T_FRAMES + NTOKEN
_AUX_ROWS = _AUX_BIAS_ROW + len(_B_NAMES)            # 44

_SEL_COLS = 16                                        # 9 / 10 valid cols, zero-padded

# lane-dense output slab: (T + NTOKEN, 128) per video
_OUT_LANES = 128
_OUT_ROWS = T_FRAMES + NTOKEN                         # 24
# frame-row lane offsets (rows 0..T-1)
_FO_FEAT, _FO_LOGP_I, _FO_SLOGP_I, _FO_LOGP_U, _FO_SLOGP_U = 0, 32, 48, 64, 80
_FO_A2F, _FO_PRED = 96, 104
_FO_USED = 105
# token-row lane offsets (rows T..T+NTOKEN-1)
_AO_FEAT, _AO_LOGP_I, _AO_LOGP_U, _AO_F2A = 0, 32, 48, 64
_AO_USED = 80


def _build_sel():
    """Combined verb/noun -> action select matrices (one matmul per logp map).

    logp[:, j] = log_softmax(verb)[VIDS[j]] + log_softmax(noun)[NIDS[j]], so with
    the masked log-softmax kept in the full 32-lane row we only need a (32, 16)
    one-hot-sum matrix per case (frame/seg and action)."""
    sel = np.zeros((2, HID, _SEL_COLS), np.float32)
    lo, mid = HID - N1 - N2, HID - N2                       # frame / seg logits
    for j, (v, n) in enumerate(zip(_VIDS, _NIDS)):
        sel[0, lo + v, j] += 1.0
        sel[0, mid + n, j] += 1.0
    lo, mid = HID - (N1 + 1) - (N2 + 1), HID - (N2 + 1)     # action logits (+null)
    for j, (v, n) in enumerate(zip(_VIDS, _NIDS)):
        sel[1, lo + v, j] += 1.0
        sel[1, mid + n, j] += 1.0
    sel[1, lo + N1, N_ACT] = 1.0
    sel[1, mid + N2, N_ACT] = 1.0
    return jnp.asarray(sel)


# ---------------------------------------------------------------------------
# Fused Pallas kernel: the whole FACT forward (Input block + Update block),
# one video per grid step.
# ---------------------------------------------------------------------------
def _fact_kernel(seq_ref, w_ref, aux_ref, sel_ref, out_ref):
    f32 = jnp.float32

    # ----- packed-parameter accessors (static slab indices, VMEM resident) --
    def w(name):                                   # (HID, HID) weight slab
        return w_ref[_W[name]]

    def b(name):                                   # (1, HID) bias row from aux slab
        return aux_ref[pl.ds(_AUX_BIAS_ROW + _B[name], 1), :]

    def linear(x, name, relu=False):
        y = jnp.dot(x, w(name), preferred_element_type=f32) + b(name)
        return jnp.maximum(y, 0.0) if relu else y

    # ----- small numeric helpers --------------------------------------------
    def lane_ids(shape):
        return jax.lax.broadcasted_iota(jnp.int32, shape, 1)

    def softmax(x):
        m = jnp.max(x, axis=-1, keepdims=True)
        e = jnp.exp(x - m)
        # divide goes to the EUP slot (approx reciprocal) instead of the VPU
        return e * pl.reciprocal(jnp.sum(e, axis=-1, keepdims=True), approx=True)

    def masked_softmax(x, mask):
        m = jnp.max(jnp.where(mask, x, -1e30), axis=-1, keepdims=True)
        e = jnp.where(mask, jnp.exp(x - m), 0.0)
        return e * pl.reciprocal(jnp.sum(e, axis=-1, keepdims=True), approx=True)

    def masked_log_softmax(x, mask):
        m = jnp.max(jnp.where(mask, x, -1e30), axis=-1, keepdims=True)
        e = jnp.where(mask, jnp.exp(x - m), 0.0)
        s = jnp.sum(e, axis=-1, keepdims=True)
        return jnp.where(mask, x - m - jnp.log(s), 0.0)

    def class_masks(shape, nc1, nc2):
        lane = lane_ids(shape)
        lo = HID - nc1 - nc2
        mid = lo + nc1
        return lo, (lane >= lo) & (lane < mid), lane >= mid

    def process_feature(feat, nc1, nc2):
        # Softmax the verb / noun logit lanes IN PLACE with lane masks; no
        # unaligned lane slicing at offsets 15/17 and no lane re-concat.
        lo, vmask, nmask = class_masks(feat.shape, nc1, nc2)
        prob = masked_softmax(feat, vmask) + masked_softmax(feat, nmask)
        feature = jnp.where(lane_ids(feat.shape) < lo, feat, prob)
        return feature, feat                       # feat carries the class logits

    def combine_logp(logits, nc1, nc2, sel):
        # verb/noun log-softmax in place, then ONE (rows,32)x(32,16) matmul that
        # gathers lv[VIDS[j]] + ln[NIDS[j]] per action column (zero-padded to 16).
        _, vmask, nmask = class_masks(logits.shape, nc1, nc2)
        lsm = masked_log_softmax(logits, vmask) + masked_log_softmax(logits, nmask)
        return jnp.dot(lsm, sel, preferred_element_type=f32)      # (rows, 16)

    def dilated_residual(x, stage, d):
        # y[t] = x[t] + W1 @ relu(Wm x[t-d] + Wc x[t] + Wp x[t+d] + bd) + b1
        # Three K=32 matmuls (MXU is idle anyway) -> no (T,96) lane-axis concat;
        # shifted copies via cheap sublane (axis-0) concats with a zero pad.
        t = x.shape[0]
        z = jnp.zeros((d, HID), f32)
        x_prev = jnp.concatenate([z, x[:t - d, :]], axis=0)       # x[t-d]
        x_next = jnp.concatenate([x[d:, :], z], axis=0)           # x[t+d]
        h = (jnp.dot(x_prev, w(stage + "_m"), preferred_element_type=f32)
             + jnp.dot(x, w(stage + "_c"), preferred_element_type=f32)
             + jnp.dot(x_next, w(stage + "_p"), preferred_element_type=f32)
             + b(stage + "_bd"))
        h = jnp.maximum(h, 0.0)
        h = jnp.dot(h, w(stage + "_w1"), preferred_element_type=f32) + b(stage + "_b1")
        return x + h

    def cross_attention(q_in, k_in, v_in, prefix):
        # 1/sqrt(d) scale is folded into the stored *_wq at parameter-init time.
        qh = jnp.dot(q_in, w(prefix + "_wq"), preferred_element_type=f32)
        kh = jnp.dot(k_in, w(prefix + "_wk"), preferred_element_type=f32)
        vh = jnp.dot(v_in, w(prefix + "_wv"), preferred_element_type=f32)
        p = softmax(jnp.dot(qh, kh.T, preferred_element_type=f32))
        o = jnp.dot(jnp.dot(p, vh, preferred_element_type=f32),
                    w(prefix + "_wo"), preferred_element_type=f32)
        return o, p

    def temporal_downsample(ffeat, prefix):
        # TODO(synk): TemporalDownsampleUpsample is data-dependent (argmax-based
        # segmentation) and seg_update is an nn.GRU; approximated by an identity
        # frame<->segment mapping with a linear update (segment centers == frames).
        seg = linear(ffeat, prefix + "_seg_update", relu=True)
        seg = linear(seg, prefix + "_seg_combine")
        return process_feature(seg, N1, N2)

    # ----- per-video inputs ---------------------------------------------------
    seq = seq_ref[0]                                             # (T, IN_DIM)
    frame_pe = aux_ref[pl.ds(_AUX_FPE_ROW, T_FRAMES), :]         # (T, HID)
    action_pe = aux_ref[pl.ds(_AUX_AQ_ROW, NTOKEN), :]           # action_query
    action_feature = jnp.zeros_like(action_pe)                   # torch.zeros_like(action_pe)
    sel_f = sel_ref[0]                                           # (HID, 16)
    sel_a = sel_ref[1]

    # TODO(synk): channel_masking_dropout (Dropout2d) and time_mask are train-only -> identity.

    # -------------------- InputBlockTDU --------------------
    ff = linear(seq, "i_in", relu=True)                          # MSTCN in_map
    ff = dilated_residual(ff, "i_dl1", 1)
    ff = dilated_residual(ff, "i_dl2", 2)
    ff = linear(ff, "i_out")
    frame_feature, frame_logits = process_feature(ff, N1, N2)

    seg_feature, seg_logits = temporal_downsample(frame_feature, "i")
    seg_pos = frame_pe                                           # identity segmentation

    # action branch: SADecoder ~ one cross-attention + residual FFN
    # TODO(synk): multi-layer SALayer stack with layer norms not reproduced.
    sa_out, _ = cross_attention(action_feature + action_pe,
                                seg_feature + seg_pos, seg_feature, "i_sa")
    af = action_feature + sa_out
    af = af + linear(linear(af, "i_ff1", relu=True), "i_ff2")
    action_feature, action_logits = process_feature(af, N1 + 1, N2 + 1)

    # per-block log-probs (PyTorch keeps these on each block for the loss)
    flogp_i = combine_logp(frame_logits, N1, N2, sel_f)          # (T, 16)
    slogp_i = combine_logp(seg_logits, N1, N2, sel_f)
    alogp_i = combine_logp(action_logits, N1 + 1, N2 + 1, sel_a)  # (NTOKEN, 16)

    # -------------------- UpdateBlockTDU --------------------
    seg_feature, seg_logits = temporal_downsample(frame_feature, "u")

    f2a_out, f2a_attn = cross_attention(action_feature + action_pe,
                                        seg_feature + seg_pos, seg_feature, "u_f2a")
    action_feature = action_feature + f2a_out
    # TODO(synk): update-block action_branch (SADecoder) approximated by a residual FFN.
    action_feature = action_feature + linear(
        linear(action_feature, "u_aff1", relu=True), "u_aff2")
    action_feature, action_logits = process_feature(action_feature, N1 + 1, N2 + 1)

    a2f_out, a2f_attn = cross_attention(seg_feature + seg_pos,
                                        action_feature + action_pe,
                                        action_feature, "u_a2f")
    seg_feature = seg_feature + a2f_out

    # temporal upsample (identity seg->frame) + sf_merge (Linear + ReLU),
    # split into two K=32 matmuls so there is no (T,64) lane-axis concat.
    frame_feature = jnp.maximum(
        jnp.dot(seg_feature, w("u_sf_merge_s"), preferred_element_type=f32)
        + jnp.dot(frame_feature, w("u_sf_merge_f"), preferred_element_type=f32)
        + b("u_sf_merge"), 0.0)

    ff = dilated_residual(frame_feature, "u_dl1", 1)
    ff = dilated_residual(ff, "u_dl2", 2)
    ff = linear(ff, "u_out")
    frame_feature, frame_logits = process_feature(ff, N1, N2)

    flogp_u = combine_logp(frame_logits, N1, N2, sel_f)
    slogp_u = combine_logp(seg_logits, N1, N2, sel_f)
    alogp_u = combine_logp(action_logits, N1 + 1, N2 + 1, sel_a)

    # TODO(synk): Block._eval mixes action-branch / frame-branch probabilities with
    # data-dependent gathers; simplified to a per-frame argmax of the final frame
    # log-probs, done in-kernel and packed as an output column.
    col = lane_ids(flogp_u.shape)
    neg = jnp.where(col < N_ACT, flogp_u, -1e30)
    mx = jnp.max(neg, axis=-1, keepdims=True)
    pred = jnp.min(jnp.where(neg == mx, col.astype(f32), float(N_ACT)),
                   axis=-1, keepdims=True)                       # (T, 1) first-argmax

    # ---------- single lane-dense (24, 128) output slab, one unmasked store ----------
    frame_rows = jnp.concatenate(
        [frame_feature, flogp_i, slogp_i, flogp_u, slogp_u, a2f_attn, pred,
         jnp.zeros((T_FRAMES, _OUT_LANES - _FO_USED), f32)], axis=-1)
    token_rows = jnp.concatenate(
        [action_feature, alogp_i, alogp_u, f2a_attn,
         jnp.zeros((NTOKEN, _OUT_LANES - _AO_USED), f32)], axis=-1)
    out_ref[0] = jnp.concatenate([frame_rows, token_rows], axis=0)


# ---------------------------------------------------------------------------
# Plain-JAX glue (positional encoding, parameter packing, wrapper)
# ---------------------------------------------------------------------------
def positional_encoding(length, dim):
    pos = jnp.arange(length, dtype=jnp.float32)[:, None]
    i = jnp.arange(dim // 2, dtype=jnp.float32)[None, :]
    angle = pos / jnp.power(10000.0, 2.0 * i / dim)
    pe = jnp.zeros((length, dim), dtype=jnp.float32)
    pe = pe.at[:, 0::2].set(jnp.sin(angle))
    pe = pe.at[:, 1::2].set(jnp.cos(angle))
    return pe


class _Keys:
    def __init__(self, key):
        self.key = key

    def __call__(self):
        self.key, k = jax.random.split(self.key)
        return k


def init_params(key, scale=0.1):
    assert IN_DIM == HID, "in_map weight is packed into the (HID, HID) stack"
    kit = _Keys(key)

    def mat():
        return scale * jax.random.normal(kit(), (HID, HID), jnp.float32)

    w = {name: mat() for name in _W_NAMES}
    # Fold the 1/sqrt(d) attention scale into the stored query projections (one-time).
    qscale = 1.0 / float(HID) ** 0.5
    for name in ("i_sa_wq", "u_f2a_wq", "u_a2f_wq"):
        w[name] = w[name] * qscale

    return {
        "action_query": scale * jax.random.normal(kit(), (NTOKEN, HID), jnp.float32),
        "w": jnp.stack([w[n] for n in _W_NAMES]),             # (41, 32, 32)
        "b": jnp.zeros((len(_B_NAMES), HID), jnp.float32),    # all biases (20, 32)
    }


def fact_forward(seq, params):
    """Batched FACT._forward_one_video (eval mode, cfg.FACT.trans=False, block='IU').
    One fused Pallas call: grid=(B,), one video per parallel grid step, all
    weights / activations VMEM resident, one lane-dense (B, 24, 128) output."""
    bsz, t, _ = seq.shape
    assert t == T_FRAMES
    frame_pe = positional_encoding(t, HID)
    aux = jnp.concatenate([frame_pe, params["action_query"], params["b"]], axis=0)
    sel = _build_sel()
    w = params["w"]

    out = pl.pallas_call(
        _fact_kernel,
        out_shape=jax.ShapeDtypeStruct((bsz, _OUT_ROWS, _OUT_LANES), jnp.float32),
        grid=(bsz,),
        in_specs=[
            pl.BlockSpec((1, T_FRAMES, IN_DIM), lambda b: (b, 0, 0)),   # per-video frames
            pl.BlockSpec(w.shape, lambda b: (0, 0, 0)),                 # packed weights
            pl.BlockSpec((_AUX_ROWS, HID), lambda b: (0, 0)),           # pe + query + biases
            pl.BlockSpec((2, HID, _SEL_COLS), lambda b: (0, 0, 0)),     # verb/noun select
        ],
        out_specs=pl.BlockSpec((1, _OUT_ROWS, _OUT_LANES), lambda b: (b, 0, 0)),
        compiler_params=pltpu.CompilerParams(dimension_semantics=("parallel",)),
    )(seq, w, aux, sel)

    frames = out[:, :T_FRAMES, :]
    tokens = out[:, T_FRAMES:, :]

    frame_feature = frames[..., _FO_FEAT:_FO_FEAT + HID]
    flogp_i = frames[..., _FO_LOGP_I:_FO_LOGP_I + N_ACT]
    slogp_i = frames[..., _FO_SLOGP_I:_FO_SLOGP_I + N_ACT]
    flogp_u = frames[..., _FO_LOGP_U:_FO_LOGP_U + N_ACT]
    slogp_u = frames[..., _FO_SLOGP_U:_FO_SLOGP_U + N_ACT]
    a2f_attn = frames[..., _FO_A2F:_FO_A2F + NTOKEN]
    pred = frames[..., _FO_PRED].astype(jnp.int32)

    action_feature = tokens[..., _AO_FEAT:_AO_FEAT + HID]
    alogp_i = tokens[..., _AO_LOGP_I:_AO_LOGP_I + N_ACT + 1]
    alogp_u = tokens[..., _AO_LOGP_U:_AO_LOGP_U + N_ACT + 1]
    f2a_attn = tokens[..., _AO_F2A:_AO_F2A + T_FRAMES]

    return {
        "frame_feature": frame_feature, "action_feature": action_feature,
        "frame_logp": flogp_u, "seg_logp": slogp_u, "action_logp": alogp_u,
        "blockI_frame_logp": flogp_i, "blockI_seg_logp": slogp_i,
        "blockI_action_logp": alogp_i,
        "f2a_attn": f2a_attn, "a2f_attn": a2f_attn, "pred": pred,
    }


if __name__ == "__main__":
    BATCH = 2
    seq = jax.random.normal(jax.random.PRNGKey(0),
                            (BATCH, T_FRAMES, IN_DIM), dtype=jnp.float32)
    params = init_params(jax.random.PRNGKey(1))
    out = jax.jit(fact_forward)(seq, params)
    jax.block_until_ready(out)
    assert out["frame_logp"].shape == (BATCH, T_FRAMES, N_ACT)
    assert out["action_logp"].shape == (BATCH, NTOKEN, N_ACT + 1)
    assert out["frame_feature"].shape == (BATCH, T_FRAMES, HID)
    assert out["action_feature"].shape == (BATCH, NTOKEN, HID)
    assert out["f2a_attn"].shape == (BATCH, NTOKEN, T_FRAMES)
    assert out["a2f_attn"].shape == (BATCH, T_FRAMES, NTOKEN)
    assert out["pred"].shape == (BATCH, T_FRAMES)
    print("KERNEL_OK")
</pallas_src>

<mosaic_0001>
module attributes {stable_mosaic.version = 11 : i64} {
  func.func @_fact_kernel(%arg0: i32, %arg1: memref<1x16x32xf32, #tpu.memory_space<vmem>>, %arg2: memref<41x32x32xf32, #tpu.memory_space<vmem>>, %arg3: memref<44x32xf32, #tpu.memory_space<vmem>>, %arg4: memref<2x32x16xf32, #tpu.memory_space<vmem>>, %arg5: memref<1x24x128xf32, #tpu.memory_space<vmem>>) attributes {dimension_semantics = [#tpu.dimension_semantics<parallel>], iteration_bounds = array<i64: 2>, scalar_prefetch = 0 : i64, scratch_operands = 0 : i64, tpu.core_type = #tpu.core_type<tc>, window_params = [{transform_indices = @transform_0, window_bounds = array<i64: 1, 16, 32>}, {pipeline_mode = #tpu.pipeline_mode<synchronous>, transform_indices = @transform_1, window_bounds = array<i64: 41, 32, 32>}, {pipeline_mode = #tpu.pipeline_mode<synchronous>, transform_indices = @transform_2, window_bounds = array<i64: 44, 32>}, {pipeline_mode = #tpu.pipeline_mode<synchronous>, transform_indices = @transform_3, window_bounds = array<i64: 2, 32, 16>}, {transform_indices = @transform_4, window_bounds = array<i64: 1, 24, 128>}]} {
    %c0 = arith.constant 0 : index
    %c0_0 = arith.constant 0 : index
    %c0_1 = arith.constant 0 : index
    %0 = vector.load %arg1[%c0, %c0_0, %c0_1] : memref<1x16x32xf32, #tpu.memory_space<vmem>>, vector<1x16x32xf32>
    %1 = vector.shape_cast %0 : vector<1x16x32xf32> to vector<16x32xf32>
    %c0_2 = arith.constant 0 : index
    %c0_3 = arith.constant 0 : index
    %2 = vector.load %arg3[%c0_2, %c0_3] : memref<44x32xf32, #tpu.memory_space<vmem>>, vector<16x32xf32>
    %c16 = arith.constant 16 : index
    %c0_4 = arith.constant 0 : index
    %3 = vector.load %arg3[%c16, %c0_4] : memref<44x32xf32, #tpu.memory_space<vmem>>, vector<8x32xf32>
    %cst = arith.constant 0.000000e+00 : f32
    %4 = vector.broadcast %cst : f32 to vector<8x32xf32>
    %c0_5 = arith.constant 0 : index
    %c0_6 = arith.constant 0 : index
    %c0_7 = arith.constant 0 : index
    %5 = vector.load %arg4[%c0_5, %c0_6, %c0_7] : memref<2x32x16xf32, #tpu.memory_space<vmem>>, vector<1x32x16xf32>
    %6 = vector.shape_cast %5 : vector<1x32x16xf32> to vector<32x16xf32>
    %c1 = arith.constant 1 : index
    %c0_8 = arith.constant 0 : index
    %c0_9 = arith.constant 0 : index
    %7 = vector.load %arg4[%c1, %c0_8, %c0_9] : memref<2x32x16xf32, #tpu.memory_space<vmem>>, vector<1x32x16xf32>
    %8 = vector.shape_cast %7 : vector<1x32x16xf32> to vector<32x16xf32>
    %c0_10 = arith.constant 0 : index
    %c0_11 = arith.constant 0 : index
    %c0_12 = arith.constant 0 : index
    %9 = vector.load %arg2[%c0_10, %c0_11, %c0_12] : memref<41x32x32xf32, #tpu.memory_space<vmem>>, vector<1x32x32xf32>
    %10 = vector.shape_cast %9 : vector<1x32x32xf32> to vector<32x32xf32>
    %cst_13 = arith.constant dense<0.000000e+00> : vector<16x32xf32>
    %11 = tpu.matmul %1, %10, %cst_13 {dimension_numbers = #tpu.dot_dimension_numbers<[1], [0], [0], [1], [0, 0, 1, 1], [], []>} : vector<16x32xf32>, vector<32x32xf32>, vector<16x32xf32> -> vector<16x32xf32>
    %c24 = arith.constant 24 : index
    %c0_14 = arith.constant 0 : index
    %12 = vector.load %arg3[%c24, %c0_14] : memref<44x32xf32, #tpu.memory_space<vmem>>, vector<1x32xf32>
    %13 = vector.broadcast %12 : vector<1x32xf32> to vector<16x32xf32>
    %14 = arith.addf %11, %13 : vector<16x32xf32>
    %cst_15 = arith.constant 0.000000e+00 : f32
    %15 = vector.broadcast %cst_15 : f32 to vector<16x32xf32>
    %16 = arith.maximumf %14, %15 : vector<16x32xf32>
    %cst_16 = arith.constant 0.000000e+00 : f32
    %17 = vector.broadcast %cst_16 : f32 to vector<1x32xf32>
    %18 = vector.extract_strided_slice %16 {offsets = [0, 0], sizes = [15, 32], strides = [1, 1]} : vector<16x32xf32> to vector<15x32xf32>
    %19 = tpu.concatenate %17, %18 in 0 : vector<1x32xf32>, vector<15x32xf32> -> vector<16x32xf32>
    %20 = vector.extract_strided_slice %16 {offsets = [1, 0], sizes = [15, 32], strides = [1, 1]} : vector<16x32xf32> to vector<15x32xf32>
    %21 = tpu.concatenate %20, %17 in 0 : vector<15x32xf32>, vector<1x32xf32> -> vector<16x32xf32>
    %c1_17 = arith.constant 1 : index
    %c0_18 = arith.constant 0 : index
    %c0_19 = arith.constant 0 : index
    %22 = vector.load %arg2[%c1_17, %c0_18, %c0_19] : memref<41x32x32xf32, #tpu.memory_space<vmem>>, vector<1x32x32xf32>
    %23 = vector.shape_cast %22 : vector<1x32x32xf32> to vector<32x32xf32>
    %cst_20 = arith.constant dense<0.000000e+00> : vector<16x32xf32>
    %24 = tpu.matmul %19, %23, %cst_20 {dimension_numbers = #tpu.dot_dimension_numbers<[1], [0], [0], [1], [0, 0, 1, 1], [], []>} : vector<16x32xf32>, vector<32x32xf32>, vector<16x32xf32> -> vector<16x32xf32>
    %c2 = arith.constant 2 : index
    %c0_21 = arith.constant 0 : index
    %c0_22 = arith.constant 0 : index
    %25 = vector.load %arg2[%c2, %c0_21, %c0_22] : memref<41x32x32xf32, #tpu.memory_space<vmem>>, vector<1x32x32xf32>
    %26 = vector.shape_cast %25 : vector<1x32x32xf32> to vector<32x32xf32>
    %cst_23 = arith.constant dense<0.000000e+00> : vector<16x32xf32>
    %27 = tpu.matmul %16, %26, %cst_23 {dimension_numbers = #tpu.dot_dimension_numbers<[1], [0], [0], [1], [0, 0, 1, 1], [], []>} : vector<16x32xf32>, vector<32x32xf32>, vector<16x32xf32> -> vector<16x32xf32>
    %28 = arith.addf %24, %27 : vector<16x32xf32>
    %c3 = arith.constant 3 : index
    %c0_24 = arith.constant 0 : index
    %c0_25 = arith.constant 0 : index
    %29 = vector.load %arg2[%c3, %c0_24, %c0_25] : memref<41x32x32xf32, #tpu.memory_space<vmem>>, vector<1x32x32xf32>
    %30 = vector.shape_cast %29 : vector<1x32x32xf32> to vector<32x32xf32>
    %cst_26 = arith.constant dense<0.000000e+00> : vector<16x32xf32>
    %31 = tpu.matmul %21, %30, %cst_26 {dimension_numbers = #tpu.dot_dimension_numbers<[1], [0], [0], [1], [0, 0, 1, 1], [], []>} : vector<16x32xf32>, vector<32x32xf32>, vector<16x32xf32> -> vector<16x32xf32>
    %32 = arith.addf %28, %31 : vector<16x32xf32>
    %c25 = arith.constant 25 : index
    %c0_27 = arith.constant 0 : index
    %33 = vector.load %arg3[%c25, %c0_27] : memref<44x32xf32, #tpu.memory_space<vmem>>, vector<1x32xf32>
    %34 = vector.broadcast %33 : vector<1x32xf32> to vector<16x32xf32>
    %35 = arith.addf %32, %34 : vector<16x32xf32>
    %cst_28 = arith.constant 0.000000e+00 : f32
    %36 = vector.broadcast %cst_28 : f32 to vector<16x32xf32>
    %37 = arith.maximumf %35, %36 : vector<16x32xf32>
    %c4 = arith.constant 4 : index
    %c0_29 = arith.constant 0 : index
    %c0_30 = arith.constant 0 : index
    %38 = vector.load %arg2[%c4, %c0_29, %c0_30] : memref<41x32x32xf32, #tpu.memory_space<vmem>>, vector<1x32x32xf32>
    %39 = vector.shape_cast %38 : vector<1x32x32xf32> to vector<32x32xf32>
    %cst_31 = arith.constant dense<0.000000e+00> : vector<16x32xf32>
    %40 = tpu.matmul %37, %39, %cst_31 {dimension_numbers = #tpu.dot_dimension_numbers<[1], [0], [0], [1], [0, 0, 1, 1], [], []>} : vector<16x32xf32>, vector<32x32xf32>, vector<16x32xf32> -> vector<16x32xf32>
    %c26 = arith.constant 26 : index
    %c0_32 = arith.constant 0 : index
    %41 = vector.load %arg3[%c26, %c0_32] : memref<44x32xf32, #tpu.memory_space<vmem>>, vector<1x32xf32>
    %42 = vector.broadcast %41 : vector<1x32xf32> to vector<16x32xf32>
    %43 = arith.addf %40, %42 : vector<16x32xf32>
    %44 = arith.addf %16, %43 : vector<16x32xf32>
    %cst_33 = arith.constant 0.000000e+00 : f32
    %45 = vector.broadcast %cst_33 : f32 to vector<2x32xf32>
    %46 = vector.extract_strided_slice %44 {offsets = [0, 0], sizes = [14, 32], strides = [1, 1]} : vector<16x32xf32> to vector<14x32xf32>
    %47 = tpu.concatenate %45, %46 in 0 : vector<2x32xf32>, vector<14x32xf32> -> vector<16x32xf32>
    %48 = vector.extract_strided_slice %44 {offsets = [2, 0], sizes = [14, 32], strides = [1, 1]} : vector<16x32xf32> to vector<14x32xf32>
    %49 = tpu.concatenate %48, %45 in 0 : vector<14x32xf32>, vector<2x32xf32> -> vector<16x32xf32>
    %c5 = arith.constant 5 : index
    %c0_34 = arith.constant 0 : index
    %c0_35 = arith.constant 0 : index
    %50 = vector.load %arg2[%c5, %c0_34, %c0_35] : memref<41x32x32xf32, #tpu.memory_space<vmem>>, vector<1x32x32xf32>
    %51 = vector.shape_cast %50 : vector<1x32x32xf32> to vector<32x32xf32>
    %cst_36 = arith.constant dense<0.000000e+00> : vector<16x32xf32>
    %52 = tpu.matmul %47, %51, %cst_36 {dimension_numbers = #tpu.dot_dimension_numbers<[1], [0], [0], [1], [0, 0, 1, 1], [], []>} : vector<16x32xf32>, vector<32x32xf32>, vector<16x32xf32> -> vector<16x32xf32>
    %c6 = arith.constant 6 : index
    %c0_37 = arith.constant 0 : index
    %c0_38 = arith.constant 0 : index
    %53 = vector.load %arg2[%c6, %c0_37, %c0_38] : memref<41x32x32xf32, #tpu.memory_space<vmem>>, vector<1x32x32xf32>
    %54 = vector.shape_cast %53 : vector<1x32x32xf32> to vector<32x32xf32>
    %cst_39 = arith.constant dense<0.000000e+00> : vector<16x32xf32>
    %55 = tpu.matmul %44, %54, %cst_39 {dimension_numbers = #tpu.dot_dimension_numbers<[1], [0], [0], [1], [0, 0, 1, 1], [], []>} : vector<16x32xf32>, vector<32x32xf32>, vector<16x32xf32> -> vector<16x32xf32>
    %56 = arith.addf %52, %55 : vector<16x32xf32>
    %c7 = arith.constant 7 : index
    %c0_40 = arith.constant 0 : index
    %c0_41 = arith.constant 0 : index
    %57 = vector.load %arg2[%c7, %c0_40, %c0_41] : memref<41x32x32xf32, #tpu.memory_space<vmem>>, vector<1x32x32xf32>
    %58 = vector.shape_cast %57 : vector<1x32x32xf32> to vector<32x32xf32>
    %cst_42 = arith.constant dense<0.000000e+00> : vector<16x32xf32>
    %59 = tpu.matmul %49, %58, %cst_42 {dimension_numbers = #tpu.dot_dimension_numbers<[1], [0], [0], [1], [0, 0, 1, 1], [], []>} : vector<16x32xf32>, vector<32x32xf32>, vector<16x32xf32> -> vector<16x32xf32>
    %60 = arith.addf %56, %59 : vector<16x32xf32>
    %c27 = arith.constant 27 : index
    %c0_43 = arith.constant 0 : index
    %61 = vector.load %arg3[%c27, %c0_43] : memref<44x32xf32, #tpu.memory_space<vmem>>, vector<1x32xf32>
    %62 = vector.broadcast %61 : vector<1x32xf32> to vector<16x32xf32>
    %63 = arith.addf %60, %62 : vector<16x32xf32>
    %cst_44 = arith.constant 0.000000e+00 : f32
    %64 = vector.broadcast %cst_44 : f32 to vector<16x32xf32>
    %65 = arith.maximumf %63, %64 : vector<16x32xf32>
    %c8 = arith.constant 8 : index
    %c0_45 = arith.constant 0 : index
    %c0_46 = arith.constant 0 : index
    %66 = vector.load %arg2[%c8, %c0_45, %c0_46] : memref<41x32x32xf32, #tpu.memory_space<vmem>>, vector<1x32x32xf32>
    %67 = vector.shape_cast %66 : vector<1x32x32xf32> to vector<32x32xf32>
    %cst_47 = arith.constant dense<0.000000e+00> : vector<16x32xf32>
    %68 = tpu.matmul %65, %67, %cst_47 {dimension_numbers = #tpu.dot_dimension_numbers<[1], [0], [0], [1], [0, 0, 1, 1], [], []>} : vector<16x32xf32>, vector<32x32xf32>, vector<16x32xf32> -> vector<16x32xf32>
    %c28 = arith.constant 28 : index
    %c0_48 = arith.constant 0 : index
    %69 = vector.load %arg3[%c28, %c0_48] : memref<44x32xf32, #tpu.memory_space<vmem>>, vector<1x32xf32>
    %70 = vector.broadcast %69 : vector<1x32xf32> to vector<16x32xf32>
    %71 = arith.addf %68, %70 : vector<16x32xf32>
    %72 = arith.addf %44, %71 : vector<16x32xf32>
    %c9 = arith.constant 9 : index
    %c0_49 = arith.constant 0 : index
    %c0_50 = arith.constant 0 : index
    %73 = vector.load %arg2[%c9, %c0_49, %c0_50] : memref<41x32x32xf32, #tpu.memory_space<vmem>>, vector<1x32x32xf32>
    %74 = vector.shape_cast %73 : vector<1x32x32xf32> to vector<32x32xf32>
    %cst_51 = arith.constant dense<0.000000e+00> : vector<16x32xf32>
    %75 = tpu.matmul %72, %74, %cst_51 {dimension_numbers = #tpu.dot_dimension_numbers<[1], [0], [0], [1], [0, 0, 1, 1], [], []>} : vector<16x32xf32>, vector<32x32xf32>, vector<16x32xf32> -> vector<16x32xf32>
    %c29 = arith.constant 29 : index
    %c0_52 = arith.constant 0 : index
    %76 = vector.load %arg3[%c29, %c0_52] : memref<44x32xf32, #tpu.memory_space<vmem>>, vector<1x32xf32>
    %77 = vector.broadcast %76 : vector<1x32xf32> to vector<16x32xf32>
    %78 = arith.addf %75, %77 : vector<16x32xf32>
    %79 = tpu.iota {dimensions = array<i32: 1>} : vector<16x32xi32>
    %c17_i32 = arith.constant 17 : i32
    %80 = vector.broadcast %c17_i32 : i32 to vector<16x32xi32>
    %81 = arith.cmpi sge, %79, %80 : vector<16x32xi32>
    %c23_i32 = arith.constant 23 : i32
    %82 = vector.broadcast %c23_i32 : i32 to vector<16x32xi32>
    %83 = arith.cmpi slt, %79, %82 : vector<16x32xi32>
    %84 = arith.andi %81, %83 : vector<16x32xi1>
    %c23_i32_53 = arith.constant 23 : i32
    %85 = vector.broadcast %c23_i32_53 : i32 to vector<16x32xi32>
    %86 = arith.cmpi sge, %79, %85 : vector<16x32xi32>
    %cst_54 = arith.constant -1.000000e+30 : f32
    %87 = vector.broadcast %cst_54 : f32 to vector<16x32xf32>
    %88 = arith.select %84, %78, %87 : vector<16x32xi1>, vector<16x32xf32>
    %cst_55 = arith.constant dense<0xFF800000> : vector<16xf32>
    %89 = vector.multi_reduction <maximumf>, %88, %cst_55 [1] : vector<16x32xf32> to vector<16xf32>
    %90 = vector.shape_cast %89 : vector<16xf32> to vector<16x1xf32>
    %91 = vector.broadcast %90 : vector<16x1xf32> to vector<16x32xf32>
    %92 = arith.subf %78, %91 : vector<16x32xf32>
    %93 = math.exp %92 : vector<16x32xf32>
    %cst_56 = arith.constant 0.000000e+00 : f32
    %94 = vector.broadcast %cst_56 : f32 to vector<16x32xf32>
    %95 = arith.select %84, %93, %94 : vector<16x32xi1>, vector<16x32xf32>
    %cst_57 = arith.constant dense<0.000000e+00> : vector<16xf32>
    %96 = vector.multi_reduction <add>, %95, %cst_57 [1] : vector<16x32xf32> to vector<16xf32>
    %97 = vector.shape_cast %96 : vector<16xf32> to vector<16x1xf32>
    %98 = tpu.reciprocal %97 {approx = true} : vector<16x1xf32> -> vector<16x1xf32>
    %99 = vector.broadcast %98 : vector<16x1xf32> to vector<16x32xf32>
    %100 = arith.mulf %95, %99 : vector<16x32xf32>
    %cst_58 = arith.constant -1.000000e+30 : f32
    %101 = vector.broadcast %cst_58 : f32 to vector<16x32xf32>
    %102 = arith.select %86, %78, %101 : vector<16x32xi1>, vector<16x32xf32>
    %cst_59 = arith.constant dense<0xFF800000> : vector<16xf32>
    %103 = vector.multi_reduction <maximumf>, %102, %cst_59 [1] : vector<16x32xf32> to vector<16xf32>
    %104 = vector.shape_cast %103 : vector<16xf32> to vector<16x1xf32>
    %105 = vector.broadcast %104 : vector<16x1xf32> to vector<16x32xf32>
    %106 = arith.subf %78, %105 : vector<16x32xf32>
    %107 = math.exp %106 : vector<16x32xf32>
    %cst_60 = arith.constant 0.000000e+00 : f32
    %108 = vector.broadcast %cst_60 : f32 to vector<16x32xf32>
    %109 = arith.select %86, %107, %108 : vector<16x32xi1>, vector<16x32xf32>
    %cst_61 = arith.constant dense<0.000000e+00> : vector<16xf32>
    %110 = vector.multi_reduction <add>, %109, %cst_61 [1] : vector<16x32xf32> to vector<16xf32>
    %111 = vector.shape_cast %110 : vector<16xf32> to vector<16x1xf32>
    %112 = tpu.reciprocal %111 {approx = true} : vector<16x1xf32> -> vector<16x1xf32>
    %113 = vector.broadcast %112 : vector<16x1xf32> to vector<16x32xf32>
    %114 = arith.mulf %109, %113 : vector<16x32xf32>
    %115 = arith.addf %100, %114 : vector<16x32xf32>
    %116 = tpu.iota {dimensions = array<i32: 1>} : vector<16x32xi32>
    %c17_i32_62 = arith.constant 17 : i32
    %117 = vector.broadcast %c17_i32_62 : i32 to vector<16x32xi32>
    %118 = arith.cmpi slt, %116, %117 : vector<16x32xi32>
    %119 = arith.select %118, %78, %115 : vector<16x32xi1>, vector<16x32xf32>
    %c10 = arith.constant 10 : index
    %c0_63 = arith.constant 0 : index
    %c0_64 = arith.constant 0 : index
    %120 = vector.load %arg2[%c10, %c0_63, %c0_64] : memref<41x32x32xf32, #tpu.memory_space<vmem>>, vector<1x32x32xf32>
    %121 = vector.shape_cast %120 : vector<1x32x32xf32> to vector<32x32xf32>
    %cst_65 = arith.constant dense<0.000000e+00> : vector<16x32xf32>
    %122 = tpu.matmul %119, %121, %cst_65 {dimension_numbers = #tpu.dot_dimension_numbers<[1], [0], [0], [1], [0, 0, 1, 1], [], []>} : vector<16x32xf32>, vector<32x32xf32>, vector<16x32xf32> -> vector<16x32xf32>
    %c30 = arith.constant 30 : index
    %c0_66 = arith.constant 0 : index
    %123 = vector.load %arg3[%c30, %c0_66] : memref<44x32xf32, #tpu.memory_space<vmem>>, vector<1x32xf32>
    %124 = vector.broadcast %123 : vector<1x32xf32> to vector<16x32xf32>
    %125 = arith.addf %122, %124 : vector<16x32xf32>
    %cst_67 = arith.constant 0.000000e+00 : f32
    %126 = vector.broadcast %cst_67 : f32 to vector<16x32xf32>
    %127 = arith.maximumf %125, %126 : vector<16x32xf32>
    %c11 = arith.constant 11 : index
    %c0_68 = arith.constant 0 : index
    %c0_69 = arith.constant 0 : index
    %128 = vector.load %arg2[%c11, %c0_68, %c0_69] : memref<41x32x32xf32, #tpu.memory_space<vmem>>, vector<1x32x32xf32>
    %129 = vector.shape_cast %128 : vector<1x32x32xf32> to vector<32x32xf32>
    %cst_70 = arith.constant dense<0.000000e+00> : vector<16x32xf32>
    %130 = tpu.matmul %127, %129, %cst_70 {dimension_numbers = #tpu.dot_dimension_numbers<[1], [0], [0], [1], [0, 0, 1, 1], [], []>} : vector<16x32xf32>, vector<32x32xf32>, vector<16x32xf32> -> vector<16x32xf32>
    %c31 = arith.constant 31 : index
    %c0_71 = arith.constant 0 : index
    %131 = vector.load %arg3[%c31, %c0_71] : memref<44x32xf32, #tpu.memory_space<vmem>>, vector<1x32xf32>
    %132 = vector.broadcast %131 : vector<1x32xf32> to vector<16x32xf32>
    %133 = arith.addf %130, %132 : vector<16x32xf32>
    %134 = tpu.iota {dimensions = array<i32: 1>} : vector<16x32xi32>
    %c17_i32_72 = arith.constant 17 : i32
    %135 = vector.broadcast %c17_i32_72 : i32 to vector<16x32xi32>
    %136 = arith.cmpi sge, %134, %135 : vector<16x32xi32>
    %c23_i32_73 = arith.constant 23 : i32
    %137 = vector.broadcast %c23_i32_73 : i32 to vector<16x32xi32>
    %138 = arith.cmpi slt, %134, %137 : vector<16x32xi32>
    %139 = arith.andi %136, %138 : vector<16x32xi1>
    %c23_i32_74 = arith.constant 23 : i32
    %140 = vector.broadcast %c23_i32_74 : i32 to vector<16x32xi32>
    %141 = arith.cmpi sge, %134, %140 : vector<16x32xi32>
    %cst_75 = arith.constant -1.000000e+30 : f32
    %142 = vector.broadcast %cst_75 : f32 to vector<16x32xf32>
    %143 = arith.select %139, %133, %142 : vector<16x32xi1>, vector<16x32xf32>
    %cst_76 = arith.constant dense<0xFF800000> : vector<16xf32>
    %144 = vector.multi_reduction <maximumf>, %143, %cst_76 [1] : vector<16x32xf32> to vector<16xf32>
    %145 = vector.shape_cast %144 : vector<16xf32> to vector<16x1xf32>
    %146 = vector.broadcast %145 : vector<16x1xf32> to vector<16x32xf32>
    %147 = arith.subf %133, %146 : vector<16x32xf32>
    %148 = math.exp %147 : vector<16x32xf32>
    %cst_77 = arith.constant 0.000000e+00 : f32
    %149 = vector.broadcast %cst_77 : f32 to vector<16x32xf32>
    %150 = arith.select %139, %148, %149 : vector<16x32xi1>, vector<16x32xf32>
    %cst_78 = arith.constant dense<0.000000e+00> : vector<16xf32>
    %151 = vector.multi_reduction <add>, %150, %cst_78 [1] : vector<16x32xf32> to vector<16xf32>
    %152 = vector.shape_cast %151 : vector<16xf32> to vector<16x1xf32>
    %153 = tpu.reciprocal %152 {approx = true} : vector<16x1xf32> -> vector<16x1xf32>
    %154 = vector.broadcast %153 : vector<16x1xf32> to vector<16x32xf32>
    %155 = arith.mulf %150, %154 : vector<16x32xf32>
    %cst_79 = arith.constant -1.000000e+30 : f32
    %156 = vector.broadcast %cst_79 : f32 to vector<16x32xf32>
    %157 = arith.select %141, %133, %156 : vector<16x32xi1>, vector<16x32xf32>
    %cst_80 = arith.constant dense<0xFF800000> : vector<16xf32>
    %158 = vector.multi_reduction <maximumf>, %157, %cst_80 [1] : vector<16x32xf32> to vector<16xf32>
    %159 = vector.shape_cast %158 : vector<16xf32> to vector<16x1xf32>
    %160 = vector.broadcast %159 : vector<16x1xf32> to vector<16x32xf32>
    %161 = arith.subf %133, %160 : vector<16x32xf32>
    %162 = math.exp %161 : vector<16x32xf32>
    %cst_81 = arith.constant 0.000000e+00 : f32
    %163 = vector.broadcast %cst_81 : f32 to vector<16x32xf32>
    %164 = arith.select %141, %162, %163 : vector<16x32xi1>, vector<16x32xf32>
    %cst_82 = arith.constant dense<0.000000e+00> : vector<16xf32>
    %165 = vector.multi_reduction <add>, %164, %cst_82 [1] : vector<16x32xf32> to vector<16xf32>
    %166 = vector.shape_cast %165 : vector<16xf32> to vector<16x1xf32>
    %167 = tpu.reciprocal %166 {approx = true} : vector<16x1xf32> -> vector<16x1xf32>
    %168 = vector.broadcast %167 : vector<16x1xf32> to vector<16x32xf32>
    %169 = arith.mulf %164, %168 : vector<16x32xf32>
    %170 = arith.addf %155, %169 : vector<16x32xf32>
    %171 = tpu.iota {dimensions = array<i32: 1>} : vector<16x32xi32>
    %c17_i32_83 = arith.constant 17 : i32
    %172 = vector.broadcast %c17_i32_83 : i32 to vector<16x32xi32>
    %173 = arith.cmpi slt, %171, %172 : vector<16x32xi32>
    %174 = arith.select %173, %133, %170 : vector<16x32xi1>, vector<16x32xf32>
    %175 = arith.addf %4, %3 : vector<8x32xf32>
    %176 = arith.addf %174, %2 : vector<16x32xf32>
    %c12 = arith.constant 12 : index
    %c0_84 = arith.constant 0 : index
    %c0_85 = arith.constant 0 : index
    %177 = vector.load %arg2[%c12, %c0_84, %c0_85] : memref<41x32x32xf32, #tpu.memory_space<vmem>>, vector<1x32x32xf32>
    %178 = vector.shape_cast %177 : vector<1x32x32xf32> to vector<32x32xf32>
    %cst_86 = arith.constant dense<0.000000e+00> : vector<8x32xf32>
    %179 = tpu.matmul %175, %178, %cst_86 {dimension_numbers = #tpu.dot_dimension_numbers<[1], [0], [0], [1], [0, 0, 1, 1], [], []>} : vector<8x32xf32>, vector<32x32xf32>, vector<8x32xf32> -> vector<8x32xf32>
    %c13 = arith.constant 13 : index
    %c0_87 = arith.constant 0 : index
    %c0_88 = arith.constant 0 : index
    %180 = vector.load %arg2[%c13, %c0_87, %c0_88] : memref<41x32x32xf32, #tpu.memory_space<vmem>>, vector<1x32x32xf32>
    %181 = vector.shape_cast %180 : vector<1x32x32xf32> to vector<32x32xf32>
    %cst_89 = arith.constant dense<0.000000e+00> : vector<16x32xf32>
    %182 = tpu.matmul %176, %181, %cst_89 {dimension_numbers = #tpu.dot_dimension_numbers<[1], [0], [0], [1], [0, 0, 1, 1], [], []>} : vector<16x32xf32>, vector<32x32xf32>, vector<16x32xf32> -> vector<16x32xf32>
    %c14 = arith.constant 14 : index
    %c0_90 = arith.constant 0 : index
    %c0_91 = arith.constant 0 : index
    %183 = vector.load %arg2[%c14, %c0_90, %c0_91] : memref<41x32x32xf32, #tpu.memory_space<vmem>>, vector<1x32x32xf32>
    %184 = vector.shape_cast %183 : vector<1x32x32xf32> to vector<32x32xf32>
    %cst_92 = arith.constant dense<0.000000e+00> : vector<16x32xf32>
    %185 = tpu.matmul %174, %184, %cst_92 {dimension_numbers = #tpu.dot_dimension_numbers<[1], [0], [0], [1], [0, 0, 1, 1], [], []>} : vector<16x32xf32>, vector<32x32xf32>, vector<16x32xf32> -> vector<16x32xf32>
    %186 = tpu.transpose %182, [1, 0] : vector<16x32xf32> -> vector<32x16xf32>
    %cst_93 = arith.constant dense<0.000000e+00> : vector<8x16xf32>
    %187 = tpu.matmul %179, %186, %cst_93 {dimension_numbers = #tpu.dot_dimension_numbers<[1], [0], [0], [1], [0, 0, 1, 1], [], []>} : vector<8x32xf32>, vector<32x16xf32>, vector<8x16xf32> -> vector<8x16xf32>
    %cst_94 = arith.constant dense<0xFF800000> : vector<8xf32>
    %188 = vector.multi_reduction <maximumf>, %187, %cst_94 [1] : vector<8x16xf32> to vector<8xf32>
    %189 = vector.shape_cast %188 : vector<8xf32> to vector<8x1xf32>
    %190 = vector.broadcast %189 : vector<8x1xf32> to vector<8x16xf32>
    %191 = arith.subf %187, %190 : vector<8x16xf32>
    %192 = math.exp %191 : vector<8x16xf32>
    %cst_95 = arith.constant dense<0.000000e+00> : vector<8xf32>
    %193 = vector.multi_reduction <add>, %192, %cst_95 [1] : vector<8x16xf32> to vector<8xf32>
    %194 = vector.shape_cast %193 : vector<8xf32> to vector<8x1xf32>
    %195 = tpu.reciprocal %194 {approx = true} : vector<8x1xf32> -> vector<8x1xf32>
    %196 = vector.broadcast %195 : vector<8x1xf32> to vector<8x16xf32>
    %197 = arith.mulf %192, %196 : vector<8x16xf32>
    %cst_96 = arith.constant dense<0.000000e+00> : vector<8x32xf32>
    %198 = tpu.matmul %197, %185, %cst_96 {dimension_numbers = #tpu.dot_dimension_numbers<[1], [0], [0], [1], [0, 0, 1, 1], [], []>} : vector<8x16xf32>, vector<16x32xf32>, vector<8x32xf32> -> vector<8x32xf32>
    %c15 = arith.constant 15 : index
    %c0_97 = arith.constant 0 : index
    %c0_98 = arith.constant 0 : index
    %199 = vector.load %arg2[%c15, %c0_97, %c0_98] : memref<41x32x32xf32, #tpu.memory_space<vmem>>, vector<1x32x32xf32>
    %200 = vector.shape_cast %199 : vector<1x32x32xf32> to vector<32x32xf32>
    %cst_99 = arith.constant dense<0.000000e+00> : vector<8x32xf32>
    %201 = tpu.matmul %198, %200, %cst_99 {dimension_numbers = #tpu.dot_dimension_numbers<[1], [0], [0], [1], [0, 0, 1, 1], [], []>} : vector<8x32xf32>, vector<32x32xf32>, vector<8x32xf32> -> vector<8x32xf32>
    %202 = arith.addf %4, %201 : vector<8x32xf32>
    %c16_100 = arith.constant 16 : index
    %c0_101 = arith.constant 0 : index
    %c0_102 = arith.constant 0 : index
    %203 = vector.load %arg2[%c16_100, %c0_101, %c0_102] : memref<41x32x32xf32, #tpu.memory_space<vmem>>, vector<1x32x32xf32>
    %204 = vector.shape_cast %203 : vector<1x32x32xf32> to vector<32x32xf32>
    %cst_103 = arith.constant dense<0.000000e+00> : vector<8x32xf32>
    %205 = tpu.matmul %202, %204, %cst_103 {dimension_numbers = #tpu.dot_dimension_numbers<[1], [0], [0], [1], [0, 0, 1, 1], [], []>} : vector<8x32xf32>, vector<32x32xf32>, vector<8x32xf32> -> vector<8x32xf32>
    %c32 = arith.constant 32 : index
    %c0_104 = arith.constant 0 : index
    %206 = vector.load %arg3[%c32, %c0_104] : memref<44x32xf32, #tpu.memory_space<vmem>>, vector<1x32xf32>
    %207 = vector.broadcast %206 : vector<1x32xf32> to vector<8x32xf32>
    %208 = arith.addf %205, %207 : vector<8x32xf32>
    %cst_105 = arith.constant 0.000000e+00 : f32
    %209 = vector.broadcast %cst_105 : f32 to vector<8x32xf32>
    %210 = arith.maximumf %208, %209 : vector<8x32xf32>
    %c17 = arith.constant 17 : index
    %c0_106 = arith.constant 0 : index
    %c0_107 = arith.constant 0 : index
    %211 = vector.load %arg2[%c17, %c0_106, %c0_107] : memref<41x32x32xf32, #tpu.memory_space<vmem>>, vector<1x32x32xf32>
    %212 = vector.shape_cast %211 : vector<1x32x32xf32> to vector<32x32xf32>
    %cst_108 = arith.constant dense<0.000000e+00> : vector<8x32xf32>
    %213 = tpu.matmul %210, %212, %cst_108 {dimension_numbers = #tpu.dot_dimension_numbers<[1], [0], [0], [1], [0, 0, 1, 1], [], []>} : vector<8x32xf32>, vector<32x32xf32>, vector<8x32xf32> -> vector<8x32xf32>
    %c33 = arith.constant 33 : index
    %c0_109 = arith.constant 0 : index
    %214 = vector.load %arg3[%c33, %c0_109] : memref<44x32xf32, #tpu.memory_space<vmem>>, vector<1x32xf32>
    %215 = vector.broadcast %214 : vector<1x32xf32> to vector<8x32xf32>
    %216 = arith.addf %213, %215 : vector<8x32xf32>
    %217 = arith.addf %202, %216 : vector<8x32xf32>
    %218 = tpu.iota {dimensions = array<i32: 1>} : vector<8x32xi32>
    %c15_i32 = arith.constant 15 : i32
    %219 = vector.broadcast %c15_i32 : i32 to vector<8x32xi32>
    %220 = arith.cmpi sge, %218, %219 : vector<8x32xi32>
    %c22_i32 = arith.constant 22 : i32
    %221 = vector.broadcast %c22_i32 : i32 to vector<8x32xi32>
    %222 = arith.cmpi slt, %218, %221 : vector<8x32xi32>
    %223 = arith.andi %220, %222 : vector<8x32xi1>
    %c22_i32_110 = arith.constant 22 : i32
    %224 = vector.broadcast %c22_i32_110 : i32 to vector<8x32xi32>
    %225 = arith.cmpi sge, %218, %224 : vector<8x32xi32>
    %cst_111 = arith.constant -1.000000e+30 : f32
    %226 = vector.broadcast %cst_111 : f32 to vector<8x32xf32>
    %227 = arith.select %223, %217, %226 : vector<8x32xi1>, vector<8x32xf32>
    %cst_112 = arith.constant dense<0xFF800000> : vector<8xf32>
    %228 = vector.multi_reduction <maximumf>, %227, %cst_112 [1] : vector<8x32xf32> to vector<8xf32>
    %229 = vector.shape_cast %228 : vector<8xf32> to vector<8x1xf32>
    %230 = vector.broadcast %229 : vector<8x1xf32> to vector<8x32xf32>
    %231 = arith.subf %217, %230 : vector<8x32xf32>
    %232 = math.exp %231 : vector<8x32xf32>
    %cst_113 = arith.constant 0.000000e+00 : f32
    %233 = vector.broadcast %cst_113 : f32 to vector<8x32xf32>
    %234 = arith.select %223, %232, %233 : vector<8x32xi1>, vector<8x32xf32>
    %cst_114 = arith.constant dense<0.000000e+00> : vector<8xf32>
    %235 = vector.multi_reduction <add>, %234, %cst_114 [1] : vector<8x32xf32> to vector<8xf32>
    %236 = vector.shape_cast %235 : vector<8xf32> to vector<8x1xf32>
    %237 = tpu.reciprocal %236 {approx = true} : vector<8x1xf32> -> vector<8x1xf32>
    %238 = vector.broadcast %237 : vector<8x1xf32> to vector<8x32xf32>
    %239 = arith.mulf %234, %238 : vector<8x32xf32>
    %cst_115 = arith.constant -1.000000e+30 : f32
    %240 = vector.broadcast %cst_115 : f32 to vector<8x32xf32>
    %241 = arith.select %225, %217, %240 : vector<8x32xi1>, vector<8x32xf32>
    %cst_116 = arith.constant dense<0xFF800000> : vector<8xf32>
    %242 = vector.multi_reduction <maximumf>, %241, %cst_116 [1] : vector<8x32xf32> to vector<8xf32>
    %243 = vector.shape_cast %242 : vector<8xf32> to vector<8x1xf32>
    %244 = vector.broadcast %243 : vector<8x1xf32> to vector<8x32xf32>
    %245 = arith.subf %217, %244 : vector<8x32xf32>
    %246 = math.exp %245 : vector<8x32xf32>
    %cst_117 = arith.constant 0.000000e+00 : f32
    %247 = vector.broadcast %cst_117 : f32 to vector<8x32xf32>
    %248 = arith.select %225, %246, %247 : vector<8x32xi1>, vector<8x32xf32>
    %cst_118 = arith.constant dense<0.000000e+00> : vector<8xf32>
    %249 = vector.multi_reduction <add>, %248, %cst_118 [1] : vector<8x32xf32> to vector<8xf32>
    %250 = vector.shape_cast %249 : vector<8xf32> to vector<8x1xf32>
    %251 = tpu.reciprocal %250 {approx = true} : vector<8x1xf32> -> vector<8x1xf32>
    %252 = vector.broadcast %251 : vector<8x1xf32> to vector<8x32xf32>
    %253 = arith.mulf %248, %252 : vector<8x32xf32>
    %254 = arith.addf %239, %253 : vector<8x32xf32>
    %255 = tpu.iota {dimensions = array<i32: 1>} : vector<8x32xi32>
    %c15_i32_119 = arith.constant 15 : i32
    %256 = vector.broadcast %c15_i32_119 : i32 to vector<8x32xi32>
    %257 = arith.cmpi slt, %255, %256 : vector<8x32xi32>
    %258 = arith.select %257, %217, %254 : vector<8x32xi1>, vector<8x32xf32>
    %259 = tpu.iota {dimensions = array<i32: 1>} : vector<16x32xi32>
    %c17_i32_120 = arith.constant 17 : i32
    %260 = vector.broadcast %c17_i32_120 : i32 to vector<16x32xi32>
    %261 = arith.cmpi sge, %259, %260 : vector<16x32xi32>
    %c23_i32_121 = arith.constant 23 : i32
    %262 = vector.broadcast %c23_i32_121 : i32 to vector<16x32xi32>
    %263 = arith.cmpi slt, %259, %262 : vector<16x32xi32>
    %264 = arith.andi %261, %263 : vector<16x32xi1>
    %c23_i32_122 = arith.constant 23 : i32
    %265 = vector.broadcast %c23_i32_122 : i32 to vector<16x32xi32>
    %266 = arith.cmpi sge, %259, %265 : vector<16x32xi32>
    %cst_123 = arith.constant -1.000000e+30 : f32
    %267 = vector.broadcast %cst_123 : f32 to vector<16x32xf32>
    %268 = arith.select %264, %78, %267 : vector<16x32xi1>, vector<16x32xf32>
    %cst_124 = arith.constant dense<0xFF800000> : vector<16xf32>
    %269 = vector.multi_reduction <maximumf>, %268, %cst_124 [1] : vector<16x32xf32> to vector<16xf32>
    %270 = vector.shape_cast %269 : vector<16xf32> to vector<16x1xf32>
    %271 = vector.broadcast %270 : vector<16x1xf32> to vector<16x32xf32>
    %272 = arith.subf %78, %271 : vector<16x32xf32>
    %273 = math.exp %272 : vector<16x32xf32>
    %cst_125 = arith.constant 0.000000e+00 : f32
    %274 = vector.broadcast %cst_125 : f32 to vector<16x32xf32>
    %275 = arith.select %264, %273, %274 : vector<16x32xi1>, vector<16x32xf32>
    %cst_126 = arith.constant dense<0.000000e+00> : vector<16xf32>
    %276 = vector.multi_reduction <add>, %275, %cst_126 [1] : vector<16x32xf32> to vector<16xf32>
    %277 = vector.shape_cast %276 : vector<16xf32> to vector<16x1xf32>
    %278 = vector.broadcast %270 : vector<16x1xf32> to vector<16x32xf32>
    %279 = arith.subf %78, %278 : vector<16x32xf32>
    %280 = math.log %277 : vector<16x1xf32>
    %281 = vector.broadcast %280 : vector<16x1xf32> to vector<16x32xf32>
    %282 = arith.subf %279, %281 : vector<16x32xf32>
    %cst_127 = arith.constant 0.000000e+00 : f32
    %283 = vector.broadcast %cst_127 : f32 to vector<16x32xf32>
    %284 = arith.select %264, %282, %283 : vector<16x32xi1>, vector<16x32xf32>
    %cst_128 = arith.constant -1.000000e+30 : f32
    %285 = vector.broadcast %cst_128 : f32 to vector<16x32xf32>
    %286 = arith.select %266, %78, %285 : vector<16x32xi1>, vector<16x32xf32>
    %cst_129 = arith.constant dense<0xFF800000> : vector<16xf32>
    %287 = vector.multi_reduction <maximumf>, %286, %cst_129 [1] : vector<16x32xf32> to vector<16xf32>
    %288 = vector.shape_cast %287 : vector<16xf32> to vector<16x1xf32>
    %289 = vector.broadcast %288 : vector<16x1xf32> to vector<16x32xf32>
    %290 = arith.subf %78, %289 : vector<16x32xf32>
    %291 = math.exp %290 : vector<16x32xf32>
    %cst_130 = arith.constant 0.000000e+00 : f32
    %292 = vector.broadcast %cst_130 : f32 to vector<16x32xf32>
    %293 = arith.select %266, %291, %292 : vector<16x32xi1>, vector<16x32xf32>
    %cst_131 = arith.constant dense<0.000000e+00> : vector<16xf32>
    %294 = vector.multi_reduction <add>, %293, %cst_131 [1] : vector<16x32xf32> to vector<16xf32>
    %295 = vector.shape_cast %294 : vector<16xf32> to vector<16x1xf32>
    %296 = vector.broadcast %288 : vector<16x1xf32> to vector<16x32xf32>
    %297 = arith.subf %78, %296 : vector<16x32xf32>
    %298 = math.log %295 : vector<16x1xf32>
    %299 = vector.broadcast %298 : vector<16x1xf32> to vector<16x32xf32>
    %300 = arith.subf %297, %299 : vector<16x32xf32>
    %cst_132 = arith.constant 0.000000e+00 : f32
    %301 = vector.broadcast %cst_132 : f32 to vector<16x32xf32>
    %302 = arith.select %266, %300, %301 : vector<16x32xi1>, vector<16x32xf32>
    %303 = arith.addf %284, %302 : vector<16x32xf32>
    %cst_133 = arith.constant dense<0.000000e+00> : vector<16x16xf32>
    %304 = tpu.matmul %303, %6, %cst_133 {dimension_numbers = #tpu.dot_dimension_numbers<[1], [0], [0], [1], [0, 0, 1, 1], [], []>} : vector<16x32xf32>, vector<32x16xf32>, vector<16x16xf32> -> vector<16x16xf32>
    %305 = tpu.iota {dimensions = array<i32: 1>} : vector<16x32xi32>
    %c17_i32_134 = arith.constant 17 : i32
    %306 = vector.broadcast %c17_i32_134 : i32 to vector<16x32xi32>
    %307 = arith.cmpi sge, %305, %306 : vector<16x32xi32>
    %c23_i32_135 = arith.constant 23 : i32
    %308 = vector.broadcast %c23_i32_135 : i32 to vector<16x32xi32>
    %309 = arith.cmpi slt, %305, %308 : vector<16x32xi32>
    %310 = arith.andi %307, %309 : vector<16x32xi1>
    %c23_i32_136 = arith.constant 23 : i32
    %311 = vector.broadcast %c23_i32_136 : i32 to vector<16x32xi32>
    %312 = arith.cmpi sge, %305, %311 : vector<16x32xi32>
    %cst_137 = arith.constant -1.000000e+30 : f32
    %313 = vector.broadcast %cst_137 : f32 to vector<16x32xf32>
    %314 = arith.select %310, %133, %313 : vector<16x32xi1>, vector<16x32xf32>
    %cst_138 = arith.constant dense<0xFF800000> : vector<16xf32>
    %315 = vector.multi_reduction <maximumf>, %314, %cst_138 [1] : vector<16x32xf32> to vector<16xf32>
    %316 = vector.shape_cast %315 : vector<16xf32> to vector<16x1xf32>
    %317 = vector.broadcast %316 : vector<16x1xf32> to vector<16x32xf32>
    %318 = arith.subf %133, %317 : vector<16x32xf32>
    %319 = math.exp %318 : vector<16x32xf32>
    %cst_139 = arith.constant 0.000000e+00 : f32
    %320 = vector.broadcast %cst_139 : f32 to vector<16x32xf32>
    %321 = arith.select %310, %319, %320 : vector<16x32xi1>, vector<16x32xf32>
    %cst_140 = arith.constant dense<0.000000e+00> : vector<16xf32>
    %322 = vector.multi_reduction <add>, %321, %cst_140 [1] : vector<16x32xf32> to vector<16xf32>
    %323 = vector.shape_cast %322 : vector<16xf32> to vector<16x1xf32>
    %324 = vector.broadcast %316 : vector<16x1xf32> to vector<16x32xf32>
    %325 = arith.subf %133, %324 : vector<16x32xf32>
    %326 = math.log %323 : vector<16x1xf32>
    %327 = vector.broadcast %326 : vector<16x1xf32> to vector<16x32xf32>
    %328 = arith.subf %325, %327 : vector<16x32xf32>
    %cst_141 = arith.constant 0.000000e+00 : f32
    %329 = vector.broadcast %cst_141 : f32 to vector<16x32xf32>
    %330 = arith.select %310, %328, %329 : vector<16x32xi1>, vector<16x32xf32>
    %cst_142 = arith.constant -1.000000e+30 : f32
    %331 = vector.broadcast %cst_142 : f32 to vector<16x32xf32>
    %332 = arith.select %312, %133, %331 : vector<16x32xi1>, vector<16x32xf32>
    %cst_143 = arith.constant dense<0xFF800000> : vector<16xf32>
    %333 = vector.multi_reduction <maximumf>, %332, %cst_143 [1] : vector<16x32xf32> to vector<16xf32>
    %334 = vector.shape_cast %333 : vector<16xf32> to vector<16x1xf32>
    %335 = vector.broadcast %334 : vector<16x1xf32> to vector<16x32xf32>
    %336 = arith.subf %133, %335 : vector<16x32xf32>
    %337 = math.exp %336 : vector<16x32xf32>
    %cst_144 = arith.constant 0.000000e+00 : f32
    %338 = vector.broadcast %cst_144 : f32 to vector<16x32xf32>
    %339 = arith.select %312, %337, %338 : vector<16x32xi1>, vector<16x32xf32>
    %cst_145 = arith.constant dense<0.000000e+00> : vector<16xf32>
    %340 = vector.multi_reduction <add>, %339, %cst_145 [1] : vector<16x32xf32> to vector<16xf32>
    %341 = vector.shape_cast %340 : vector<16xf32> to vector<16x1xf32>
    %342 = vector.broadcast %334 : vector<16x1xf32> to vector<16x32xf32>
    %343 = arith.subf %133, %342 : vector<16x32xf32>
    %344 = math.log %341 : vector<16x1xf32>
    %345 = vector.broadcast %344 : vector<16x1xf32> to vector<16x32xf32>
    %346 = arith.subf %343, %345 : vector<16x32xf32>
    %cst_146 = arith.constant 0.000000e+00 : f32
    %347 = vector.broadcast %cst_146 : f32 to vector<16x32xf32>
    %348 = arith.select %312, %346, %347 : vector<16x32xi1>, vector<16x32xf32>
    %349 = arith.addf %330, %348 : vector<16x32xf32>
    %cst_147 = arith.constant dense<0.000000e+00> : vector<16x16xf32>
    %350 = tpu.matmul %349, %6, %cst_147 {dimension_numbers = #tpu.dot_dimension_numbers<[1], [0], [0], [1], [0, 0, 1, 1], [], []>} : vector<16x32xf32>, vector<32x16xf32>, vector<16x16xf32> -> vector<16x16xf32>
    %351 = tpu.iota {dimensions = array<i32: 1>} : vector<8x32xi32>
    %c15_i32_148 = arith.constant 15 : i32
    %352 = vector.broadcast %c15_i32_148 : i32 to vector<8x32xi32>
    %353 = arith.cmpi sge, %351, %352 : vector<8x32xi32>
    %c22_i32_149 = arith.constant 22 : i32
    %354 = vector.broadcast %c22_i32_149 : i32 to vector<8x32xi32>
    %355 = arith.cmpi slt, %351, %354 : vector<8x32xi32>
    %356 = arith.andi %353, %355 : vector<8x32xi1>
    %c22_i32_150 = arith.constant 22 : i32
    %357 = vector.broadcast %c22_i32_150 : i32 to vector<8x32xi32>
    %358 = arith.cmpi sge, %351, %357 : vector<8x32xi32>
    %cst_151 = arith.constant -1.000000e+30 : f32
    %359 = vector.broadcast %cst_151 : f32 to vector<8x32xf32>
    %360 = arith.select %356, %217, %359 : vector<8x32xi1>, vector<8x32xf32>
    %cst_152 = arith.constant dense<0xFF800000> : vector<8xf32>
    %361 = vector.multi_reduction <maximumf>, %360, %cst_152 [1] : vector<8x32xf32> to vector<8xf32>
    %362 = vector.shape_cast %361 : vector<8xf32> to vector<8x1xf32>
    %363 = vector.broadcast %362 : vector<8x1xf32> to vector<8x32xf32>
    %364 = arith.subf %217, %363 : vector<8x32xf32>
    %365 = math.exp %364 : vector<8x32xf32>
    %cst_153 = arith.constant 0.000000e+00 : f32
    %366 = vector.broadcast %cst_153 : f32 to vector<8x32xf32>
    %367 = arith.select %356, %365, %366 : vector<8x32xi1>, vector<8x32xf32>
    %cst_154 = arith.constant dense<0.000000e+00> : vector<8xf32>
    %368 = vector.multi_reduction <add>, %367, %cst_154 [1] : vector<8x32xf32> to vector<8xf32>
    %369 = vector.shape_cast %368 : vector<8xf32> to vector<8x1xf32>
    %370 = vector.broadcast %362 : vector<8x1xf32> to vector<8x32xf32>
    %371 = arith.subf %217, %370 : vector<8x32xf32>
    %372 = math.log %369 : vector<8x1xf32>
    %373 = vector.broadcast %372 : vector<8x1xf32> to vector<8x32xf32>
    %374 = arith.subf %371, %373 : vector<8x32xf32>
    %cst_155 = arith.constant 0.000000e+00 : f32
    %375 = vector.broadcast %cst_155 : f32 to vector<8x32xf32>
    %376 = arith.select %356, %374, %375 : vector<8x32xi1>, vector<8x32xf32>
    %cst_156 = arith.constant -1.000000e+30 : f32
    %377 = vector.broadcast %cst_156 : f32 to vector<8x32xf32>
    %378 = arith.select %358, %217, %377 : vector<8x32xi1>, vector<8x32xf32>
    %cst_157 = arith.constant dense<0xFF800000> : vector<8xf32>
    %379 = vector.multi_reduction <maximumf>, %378, %cst_157 [1] : vector<8x32xf32> to vector<8xf32>
    %380 = vector.shape_cast %379 : vector<8xf32> to vector<8x1xf32>
    %381 = vector.broadcast %380 : vector<8x1xf32> to vector<8x32xf32>
    %382 = arith.subf %217, %381 : vector<8x32xf32>
    %383 = math.exp %382 : vector<8x32xf32>
    %cst_158 = arith.constant 0.000000e+00 : f32
    %384 = vector.broadcast %cst_158 : f32 to vector<8x32xf32>
    %385 = arith.select %358, %383, %384 : vector<8x32xi1>, vector<8x32xf32>
    %cst_159 = arith.constant dense<0.000000e+00> : vector<8xf32>
    %386 = vector.multi_reduction <add>, %385, %cst_159 [1] : vector<8x32xf32> to vector<8xf32>
    %387 = vector.shape_cast %386 : vector<8xf32> to vector<8x1xf32>
    %388 = vector.broadcast %380 : vector<8x1xf32> to vector<8x32xf32>
    %389 = arith.subf %217, %388 : vector<8x32xf32>
    %390 = math.log %387 : vector<8x1xf32>
    %391 = vector.broadcast %390 : vector<8x1xf32> to vector<8x32xf32>
    %392 = arith.subf %389, %391 : vector<8x32xf32>
    %cst_160 = arith.constant 0.000000e+00 : f32
    %393 = vector.broadcast %cst_160 : f32 to vector<8x32xf32>
    %394 = arith.select %358, %392, %393 : vector<8x32xi1>, vector<8x32xf32>
    %395 = arith.addf %376, %394 : vector<8x32xf32>
    %cst_161 = arith.constant dense<0.000000e+00> : vector<8x16xf32>
    %396 = tpu.matmul %395, %8, %cst_161 {dimension_numbers = #tpu.dot_dimension_numbers<[1], [0], [0], [1], [0, 0, 1, 1], [], []>} : vector<8x32xf32>, vector<32x16xf32>, vector<8x16xf32> -> vector<8x16xf32>
    %c18 = arith.constant 18 : index
    %c0_162 = arith.constant 0 : index
    %c0_163 = arith.constant 0 : index
    %397 = vector.load %arg2[%c18, %c0_162, %c0_163] : memref<41x32x32xf32, #tpu.memory_space<vmem>>, vector<1x32x32xf32>
    %398 = vector.shape_cast %397 : vector<1x32x32xf32> to vector<32x32xf32>
    %cst_164 = arith.constant dense<0.000000e+00> : vector<16x32xf32>
    %399 = tpu.matmul %119, %398, %cst_164 {dimension_numbers = #tpu.dot_dimension_numbers<[1], [0], [0], [1], [0, 0, 1, 1], [], []>} : vector<16x32xf32>, vector<32x32xf32>, vector<16x32xf32> -> vector<16x32xf32>
    %c34 = arith.constant 34 : index
    %c0_165 = arith.constant 0 : index
    %400 = vector.load %arg3[%c34, %c0_165] : memref<44x32xf32, #tpu.memory_space<vmem>>, vector<1x32xf32>
    %401 = vector.broadcast %400 : vector<1x32xf32> to vector<16x32xf32>
    %402 = arith.addf %399, %401 : vector<16x32xf32>
    %cst_166 = arith.constant 0.000000e+00 : f32
    %403 = vector.broadcast %cst_166 : f32 to vector<16x32xf32>
    %404 = arith.maximumf %402, %403 : vector<16x32xf32>
    %c19 = arith.constant 19 : index
    %c0_167 = arith.constant 0 : index
    %c0_168 = arith.constant 0 : index
    %405 = vector.load %arg2[%c19, %c0_167, %c0_168] : memref<41x32x32xf32, #tpu.memory_space<vmem>>, vector<1x32x32xf32>
    %406 = vector.shape_cast %405 : vector<1x32x32xf32> to vector<32x32xf32>
    %cst_169 = arith.constant dense<0.000000e+00> : vector<16x32xf32>
    %407 = tpu.matmul %404, %406, %cst_169 {dimension_numbers = #tpu.dot_dimension_numbers<[1], [0], [0], [1], [0, 0, 1, 1], [], []>} : vector<16x32xf32>, vector<32x32xf32>, vector<16x32xf32> -> vector<16x32xf32>
    %c35 = arith.constant 35 : index
    %c0_170 = arith.constant 0 : index
    %408 = vector.load %arg3[%c35, %c0_170] : memref<44x32xf32, #tpu.memory_space<vmem>>, vector<1x32xf32>
    %409 = vector.broadcast %408 : vector<1x32xf32> to vector<16x32xf32>
    %410 = arith.addf %407, %409 : vector<16x32xf32>
    %411 = tpu.iota {dimensions = array<i32: 1>} : vector<16x32xi32>
    %c17_i32_171 = arith.constant 17 : i32
    %412 = vector.broadcast %c17_i32_171 : i32 to vector<16x32xi32>
    %413 = arith.cmpi sge, %411, %412 : vector<16x32xi32>
    %c23_i32_172 = arith.constant 23 : i32
    %414 = vector.broadcast %c23_i32_172 : i32 to vector<16x32xi32>
    %415 = arith.cmpi slt, %411, %414 : vector<16x32xi32>
    %416 = arith.andi %413, %415 : vector<16x32xi1>
    %c23_i32_173 = arith.constant 23 : i32
    %417 = vector.broadcast %c23_i32_173 : i32 to vector<16x32xi32>
    %418 = arith.cmpi sge, %411, %417 : vector<16x32xi32>
    %cst_174 = arith.constant -1.000000e+30 : f32
    %419 = vector.broadcast %cst_174 : f32 to vector<16x32xf32>
    %420 = arith.select %416, %410, %419 : vector<16x32xi1>, vector<16x32xf32>
    %cst_175 = arith.constant dense<0xFF800000> : vector<16xf32>
    %421 = vector.multi_reduction <maximumf>, %420, %cst_175 [1] : vector<16x32xf32> to vector<16xf32>
    %422 = vector.shape_cast %421 : vector<16xf32> to vector<16x1xf32>
    %423 = vector.broadcast %422 : vector<16x1xf32> to vector<16x32xf32>
    %424 = arith.subf %410, %423 : vector<16x32xf32>
    %425 = math.exp %424 : vector<16x32xf32>
    %cst_176 = arith.constant 0.000000e+00 : f32
    %426 = vector.broadcast %cst_176 : f32 to vector<16x32xf32>
    %427 = arith.select %416, %425, %426 : vector<16x32xi1>, vector<16x32xf32>
    %cst_177 = arith.constant dense<0.000000e+00> : vector<16xf32>
    %428 = vector.multi_reduction <add>, %427, %cst_177 [1] : vector<16x32xf32> to vector<16xf32>
    %429 = vector.shape_cast %428 : vector<16xf32> to vector<16x1xf32>
    %430 = tpu.reciprocal %429 {approx = true} : vector<16x1xf32> -> vector<16x1xf32>
    %431 = vector.broadcast %430 : vector<16x1xf32> to vector<16x32xf32>
    %432 = arith.mulf %427, %431 : vector<16x32xf32>
    %cst_178 = arith.constant -1.000000e+30 : f32
    %433 = vector.broadcast %cst_178 : f32 to vector<16x32xf32>
    %434 = arith.select %418, %410, %433 : vector<16x32xi1>, vector<16x32xf32>
    %cst_179 = arith.constant dense<0xFF800000> : vector<16xf32>
    %435 = vector.multi_reduction <maximumf>, %434, %cst_179 [1] : vector<16x32xf32> to vector<16xf32>
    %436 = vector.shape_cast %435 : vector<16xf32> to vector<16x1xf32>
    %437 = vector.broadcast %436 : vector<16x1xf32> to vector<16x32xf32>
    %438 = arith.subf %410, %437 : vector<16x32xf32>
    %439 = math.exp %438 : vector<16x32xf32>
    %cst_180 = arith.constant 0.000000e+00 : f32
    %440 = vector.broadcast %cst_180 : f32 to vector<16x32xf32>
    %441 = arith.select %418, %439, %440 : vector<16x32xi1>, vector<16x32xf32>
    %cst_181 = arith.constant dense<0.000000e+00> : vector<16xf32>
    %442 = vector.multi_reduction <add>, %441, %cst_181 [1] : vector<16x32xf32> to vector<16xf32>
    %443 = vector.shape_cast %442 : vector<16xf32> to vector<16x1xf32>
    %444 = tpu.reciprocal %443 {approx = true} : vector<16x1xf32> -> vector<16x1xf32>
    %445 = vector.broadcast %444 : vector<16x1xf32> to vector<16x32xf32>
    %446 = arith.mulf %441, %445 : vector<16x32xf32>
    %447 = arith.addf %432, %446 : vector<16x32xf32>
    %448 = tpu.iota {dimensions = array<i32: 1>} : vector<16x32xi32>
    %c17_i32_182 = arith.constant 17 : i32
    %449 = vector.broadcast %c17_i32_182 : i32 to vector<16x32xi32>
    %450 = arith.cmpi slt, %448, %449 : vector<16x32xi32>
    %451 = arith.select %450, %410, %447 : vector<16x32xi1>, vector<16x32xf32>
    %452 = arith.addf %258, %3 : vector<8x32xf32>
    %453 = arith.addf %451, %2 : vector<16x32xf32>
    %c20 = arith.constant 20 : index
    %c0_183 = arith.constant 0 : index
    %c0_184 = arith.constant 0 : index
    %454 = vector.load %arg2[%c20, %c0_183, %c0_184] : memref<41x32x32xf32, #tpu.memory_space<vmem>>, vector<1x32x32xf32>
    %455 = vector.shape_cast %454 : vector<1x32x32xf32> to vector<32x32xf32>
    %cst_185 = arith.constant dense<0.000000e+00> : vector<8x32xf32>
    %456 = tpu.matmul %452, %455, %cst_185 {dimension_numbers = #tpu.dot_dimension_numbers<[1], [0], [0], [1], [0, 0, 1, 1], [], []>} : vector<8x32xf32>, vector<32x32xf32>, vector<8x32xf32> -> vector<8x32xf32>
    %c21 = arith.constant 21 : index
    %c0_186 = arith.constant 0 : index
    %c0_187 = arith.constant 0 : index
    %457 = vector.load %arg2[%c21, %c0_186, %c0_187] : memref<41x32x32xf32, #tpu.memory_space<vmem>>, vector<1x32x32xf32>
    %458 = vector.shape_cast %457 : vector<1x32x32xf32> to vector<32x32xf32>
    %cst_188 = arith.constant dense<0.000000e+00> : vector<16x32xf32>
    %459 = tpu.matmul %453, %458, %cst_188 {dimension_numbers = #tpu.dot_dimension_numbers<[1], [0], [0], [1], [0, 0, 1, 1], [], []>} : vector<16x32xf32>, vector<32x32xf32>, vector<16x32xf32> -> vector<16x32xf32>
    %c22 = arith.constant 22 : index
    %c0_189 = arith.constant 0 : index
    %c0_190 = arith.constant 0 : index
    %460 = vector.load %arg2[%c22, %c0_189, %c0_190] : memref<41x32x32xf32, #tpu.memory_space<vmem>>, vector<1x32x32xf32>
    %461 = vector.shape_cast %460 : vector<1x32x32xf32> to vector<32x32xf32>
    %cst_191 = arith.constant dense<0.000000e+00> : vector<16x32xf32>
    %462 = tpu.matmul %451, %461, %cst_191 {dimension_numbers = #tpu.dot_dimension_numbers<[1], [0], [0], [1], [0, 0, 1, 1], [], []>} : vector<16x32xf32>, vector<32x32xf32>, vector<16x32xf32> -> vector<16x32xf32>
    %463 = tpu.transpose %459, [1, 0] : vector<16x32xf32> -> vector<32x16xf32>
    %cst_192 = arith.constant dense<0.000000e+00> : vector<8x16xf32>
    %464 = tpu.matmul %456, %463, %cst_192 {dimension_numbers = #tpu.dot_dimension_numbers<[1], [0], [0], [1], [0, 0, 1, 1], [], []>} : vector<8x32xf32>, vector<32x16xf32>, vector<8x16xf32> -> vector<8x16xf32>
    %cst_193 = arith.constant dense<0xFF800000> : vector<8xf32>
    %465 = vector.multi_reduction <maximumf>, %464, %cst_193 [1] : vector<8x16xf32> to vector<8xf32>
    %466 = vector.shape_cast %465 : vector<8xf32> to vector<8x1xf32>
    %467 = vector.broadcast %466 : vector<8x1xf32> to vector<8x16xf32>
    %468 = arith.subf %464, %467 : vector<8x16xf32>
    %469 = math.exp %468 : vector<8x16xf32>
    %cst_194 = arith.constant dense<0.000000e+00> : vector<8xf32>
    %470 = vector.multi_reduction <add>, %469, %cst_194 [1] : vector<8x16xf32> to vector<8xf32>
    %471 = vector.shape_cast %470 : vector<8xf32> to vector<8x1xf32>
    %472 = tpu.reciprocal %471 {approx = true} : vector<8x1xf32> -> vector<8x1xf32>
    %473 = vector.broadcast %472 : vector<8x1xf32> to vector<8x16xf32>
    %474 = arith.mulf %469, %473 : vector<8x16xf32>
    %cst_195 = arith.constant dense<0.000000e+00> : vector<8x32xf32>
    %475 = tpu.matmul %474, %462, %cst_195 {dimension_numbers = #tpu.dot_dimension_numbers<[1], [0], [0], [1], [0, 0, 1, 1], [], []>} : vector<8x16xf32>, vector<16x32xf32>, vector<8x32xf32> -> vector<8x32xf32>
    %c23 = arith.constant 23 : index
    %c0_196 = arith.constant 0 : index
    %c0_197 = arith.constant 0 : index
    %476 = vector.load %arg2[%c23, %c0_196, %c0_197] : memref<41x32x32xf32, #tpu.memory_space<vmem>>, vector<1x32x32xf32>
    %477 = vector.shape_cast %476 : vector<1x32x32xf32> to vector<32x32xf32>
    %cst_198 = arith.constant dense<0.000000e+00> : vector<8x32xf32>
    %478 = tpu.matmul %475, %477, %cst_198 {dimension_numbers = #tpu.dot_dimension_numbers<[1], [0], [0], [1], [0, 0, 1, 1], [], []>} : vector<8x32xf32>, vector<32x32xf32>, vector<8x32xf32> -> vector<8x32xf32>
    %479 = arith.addf %258, %478 : vector<8x32xf32>
    %c24_199 = arith.constant 24 : index
    %c0_200 = arith.constant 0 : index
    %c0_201 = arith.constant 0 : index
    %480 = vector.load %arg2[%c24_199, %c0_200, %c0_201] : memref<41x32x32xf32, #tpu.memory_space<vmem>>, vector<1x32x32xf32>
    %481 = vector.shape_cast %480 : vector<1x32x32xf32> to vector<32x32xf32>
    %cst_202 = arith.constant dense<0.000000e+00> : vector<8x32xf32>
    %482 = tpu.matmul %479, %481, %cst_202 {dimension_numbers = #tpu.dot_dimension_numbers<[1], [0], [0], [1], [0, 0, 1, 1], [], []>} : vector<8x32xf32>, vector<32x32xf32>, vector<8x32xf32> -> vector<8x32xf32>
    %c36 = arith.constant 36 : index
    %c0_203 = arith.constant 0 : index
    %483 = vector.load %arg3[%c36, %c0_203] : memref<44x32xf32, #tpu.memory_space<vmem>>, vector<1x32xf32>
    %484 = vector.broadcast %483 : vector<1x32xf32> to vector<8x32xf32>
    %485 = arith.addf %482, %484 : vector<8x32xf32>
    %cst_204 = arith.constant 0.000000e+00 : f32
    %486 = vector.broadcast %cst_204 : f32 to vector<8x32xf32>
    %487 = arith.maximumf %485, %486 : vector<8x32xf32>
    %c25_205 = arith.constant 25 : index
    %c0_206 = arith.constant 0 : index
    %c0_207 = arith.constant 0 : index
    %488 = vector.load %arg2[%c25_205, %c0_206, %c0_207] : memref<41x32x32xf32, #tpu.memory_space<vmem>>, vector<1x32x32xf32>
    %489 = vector.shape_cast %488 : vector<1x32x32xf32> to vector<32x32xf32>
    %cst_208 = arith.constant dense<0.000000e+00> : vector<8x32xf32>
    %490 = tpu.matmul %487, %489, %cst_208 {dimension_numbers = #tpu.dot_dimension_numbers<[1], [0], [0], [1], [0, 0, 1, 1], [], []>} : vector<8x32xf32>, vector<32x32xf32>, vector<8x32xf32> -> vector<8x32xf32>
    %c37 = arith.constant 37 : index
    %c0_209 = arith.constant 0 : index
    %491 = vector.load %arg3[%c37, %c0_209] : memref<44x32xf32, #tpu.memory_space<vmem>>, vector<1x32xf32>
    %492 = vector.broadcast %491 : vector<1x32xf32> to vector<8x32xf32>
    %493 = arith.addf %490, %492 : vector<8x32xf32>
    %494 = arith.addf %479, %493 : vector<8x32xf32>
    %495 = tpu.iota {dimensions = array<i32: 1>} : vector<8x32xi32>
    %c15_i32_210 = arith.constant 15 : i32
    %496 = vector.broadcast %c15_i32_210 : i32 to vector<8x32xi32>
    %497 = arith.cmpi sge, %495, %496 : vector<8x32xi32>
    %c22_i32_211 = arith.constant 22 : i32
    %498 = vector.broadcast %c22_i32_211 : i32 to vector<8x32xi32>
    %499 = arith.cmpi slt, %495, %498 : vector<8x32xi32>
    %500 = arith.andi %497, %499 : vector<8x32xi1>
    %c22_i32_212 = arith.constant 22 : i32
    %501 = vector.broadcast %c22_i32_212 : i32 to vector<8x32xi32>
    %502 = arith.cmpi sge, %495, %501 : vector<8x32xi32>
    %cst_213 = arith.constant -1.000000e+30 : f32
    %503 = vector.broadcast %cst_213 : f32 to vector<8x32xf32>
    %504 = arith.select %500, %494, %503 : vector<8x32xi1>, vector<8x32xf32>
    %cst_214 = arith.constant dense<0xFF800000> : vector<8xf32>
    %505 = vector.multi_reduction <maximumf>, %504, %cst_214 [1] : vector<8x32xf32> to vector<8xf32>
    %506 = vector.shape_cast %505 : vector<8xf32> to vector<8x1xf32>
    %507 = vector.broadcast %506 : vector<8x1xf32> to vector<8x32xf32>
    %508 = arith.subf %494, %507 : vector<8x32xf32>
    %509 = math.exp %508 : vector<8x32xf32>
    %cst_215 = arith.constant 0.000000e+00 : f32
    %510 = vector.broadcast %cst_215 : f32 to vector<8x32xf32>
    %511 = arith.select %500, %509, %510 : vector<8x32xi1>, vector<8x32xf32>
    %cst_216 = arith.constant dense<0.000000e+00> : vector<8xf32>
    %512 = vector.multi_reduction <add>, %511, %cst_216 [1] : vector<8x32xf32> to vector<8xf32>
    %513 = vector.shape_cast %512 : vector<8xf32> to vector<8x1xf32>
    %514 = tpu.reciprocal %513 {approx = true} : vector<8x1xf32> -> vector<8x1xf32>
    %515 = vector.broadcast %514 : vector<8x1xf32> to vector<8x32xf32>
    %516 = arith.mulf %511, %515 : vector<8x32xf32>
    %cst_217 = arith.constant -1.000000e+30 : f32
    %517 = vector.broadcast %cst_217 : f32 to vector<8x32xf32>
    %518 = arith.select %502, %494, %517 : vector<8x32xi1>, vector<8x32xf32>
    %cst_218 = arith.constant dense<0xFF800000> : vector<8xf32>
    %519 = vector.multi_reduction <maximumf>, %518, %cst_218 [1] : vector<8x32xf32> to vector<8xf32>
    %520 = vector.shape_cast %519 : vector<8xf32> to vector<8x1xf32>
    %521 = vector.broadcast %520 : vector<8x1xf32> to vector<8x32xf32>
    %522 = arith.subf %494, %521 : vector<8x32xf32>
    %523 = math.exp %522 : vector<8x32xf32>
    %cst_219 = arith.constant 0.000000e+00 : f32
    %524 = vector.broadcast %cst_219 : f32 to vector<8x32xf32>
    %525 = arith.select %502, %523, %524 : vector<8x32xi1>, vector<8x32xf32>
    %cst_220 = arith.constant dense<0.000000e+00> : vector<8xf32>
    %526 = vector.multi_reduction <add>, %525, %cst_220 [1] : vector<8x32xf32> to vector<8xf32>
    %527 = vector.shape_cast %526 : vector<8xf32> to vector<8x1xf32>
    %528 = tpu.reciprocal %527 {approx = true} : vector<8x1xf32> -> vector<8x1xf32>
    %529 = vector.broadcast %528 : vector<8x1xf32> to vector<8x32xf32>
    %530 = arith.mulf %525, %529 : vector<8x32xf32>
    %531 = arith.addf %516, %530 : vector<8x32xf32>
    %532 = tpu.iota {dimensions = array<i32: 1>} : vector<8x32xi32>
    %c15_i32_221 = arith.constant 15 : i32
    %533 = vector.broadcast %c15_i32_221 : i32 to vector<8x32xi32>
    %534 = arith.cmpi slt, %532, %533 : vector<8x32xi32>
    %535 = arith.select %534, %494, %531 : vector<8x32xi1>, vector<8x32xf32>
    %536 = arith.addf %451, %2 : vector<16x32xf32>
    %537 = arith.addf %535, %3 : vector<8x32xf32>
    %c26_222 = arith.constant 26 : index
    %c0_223 = arith.constant 0 : index
    %c0_224 = arith.constant 0 : index
    %538 = vector.load %arg2[%c26_222, %c0_223, %c0_224] : memref<41x32x32xf32, #tpu.memory_space<vmem>>, vector<1x32x32xf32>
    %539 = vector.shape_cast %538 : vector<1x32x32xf32> to vector<32x32xf32>
    %cst_225 = arith.constant dense<0.000000e+00> : vector<16x32xf32>
    %540 = tpu.matmul %536, %539, %cst_225 {dimension_numbers = #tpu.dot_dimension_numbers<[1], [0], [0], [1], [0, 0, 1, 1], [], []>} : vector<16x32xf32>, vector<32x32xf32>, vector<16x32xf32> -> vector<16x32xf32>
    %c27_226 = arith.constant 27 : index
    %c0_227 = arith.constant 0 : index
    %c0_228 = arith.constant 0 : index
    %541 = vector.load %arg2[%c27_226, %c0_227, %c0_228] : memref<41x32x32xf32, #tpu.memory_space<vmem>>, vector<1x32x32xf32>
    %542 = vector.shape_cast %541 : vector<1x32x32xf32> to vector<32x32xf32>
    %cst_229 = arith.constant dense<0.000000e+00> : vector<8x32xf32>
    %543 = tpu.matmul %537, %542, %cst_229 {dimension_numbers = #tpu.dot_dimension_numbers<[1], [0], [0], [1], [0, 0, 1, 1], [], []>} : vector<8x32xf32>, vector<32x32xf32>, vector<8x32xf32> -> vector<8x32xf32>
    %c28_230 = arith.constant 28 : index
    %c0_231 = arith.constant 0 : index
    %c0_232 = arith.constant 0 : index
    %544 = vector.load %arg2[%c28_230, %c0_231, %c0_232] : memref<41x32x32xf32, #tpu.memory_space<vmem>>, vector<1x32x32xf32>
    %545 = vector.shape_cast %544 : vector<1x32x32xf32> to vector<32x32xf32>
    %cst_233 = arith.constant dense<0.000000e+00> : vector<8x32xf32>
    %546 = tpu.matmul %535, %545, %cst_233 {dimension_numbers = #tpu.dot_dimension_numbers<[1], [0], [0], [1], [0, 0, 1, 1], [], []>} : vector<8x32xf32>, vector<32x32xf32>, vector<8x32xf32> -> vector<8x32xf32>
    %547 = tpu.transpose %543, [1, 0] : vector<8x32xf32> -> vector<32x8xf32>
    %cst_234 = arith.constant dense<0.000000e+00> : vector<16x8xf32>
    %548 = tpu.matmul %540, %547, %cst_234 {dimension_numbers = #tpu.dot_dimension_numbers<[1], [0], [0], [1], [0, 0, 1, 1], [], []>} : vector<16x32xf32>, vector<32x8xf32>, vector<16x8xf32> -> vector<16x8xf32>
    %cst_235 = arith.constant dense<0xFF800000> : vector<16xf32>
    %549 = vector.multi_reduction <maximumf>, %548, %cst_235 [1] : vector<16x8xf32> to vector<16xf32>
    %550 = vector.shape_cast %549 : vector<16xf32> to vector<16x1xf32>
    %551 = vector.broadcast %550 : vector<16x1xf32> to vector<16x8xf32>
    %552 = arith.subf %548, %551 : vector<16x8xf32>
    %553 = math.exp %552 : vector<16x8xf32>
    %cst_236 = arith.constant dense<0.000000e+00> : vector<16xf32>
    %554 = vector.multi_reduction <add>, %553, %cst_236 [1] : vector<16x8xf32> to vector<16xf32>
    %555 = vector.shape_cast %554 : vector<16xf32> to vector<16x1xf32>
    %556 = tpu.reciprocal %555 {approx = true} : vector<16x1xf32> -> vector<16x1xf32>
    %557 = vector.broadcast %556 : vector<16x1xf32> to vector<16x8xf32>
    %558 = arith.mulf %553, %557 : vector<16x8xf32>
    %cst_237 = arith.constant dense<0.000000e+00> : vector<16x32xf32>
    %559 = tpu.matmul %558, %546, %cst_237 {dimension_numbers = #tpu.dot_dimension_numbers<[1], [0], [0], [1], [0, 0, 1, 1], [], []>} : vector<16x8xf32>, vector<8x32xf32>, vector<16x32xf32> -> vector<16x32xf32>
    %c29_238 = arith.constant 29 : index
    %c0_239 = arith.constant 0 : index
    %c0_240 = arith.constant 0 : index
    %560 = vector.load %arg2[%c29_238, %c0_239, %c0_240] : memref<41x32x32xf32, #tpu.memory_space<vmem>>, vector<1x32x32xf32>
    %561 = vector.shape_cast %560 : vector<1x32x32xf32> to vector<32x32xf32>
    %cst_241 = arith.constant dense<0.000000e+00> : vector<16x32xf32>
    %562 = tpu.matmul %559, %561, %cst_241 {dimension_numbers = #tpu.dot_dimension_numbers<[1], [0], [0], [1], [0, 0, 1, 1], [], []>} : vector<16x32xf32>, vector<32x32xf32>, vector<16x32xf32> -> vector<16x32xf32>
    %563 = arith.addf %451, %562 : vector<16x32xf32>
    %c30_242 = arith.constant 30 : index
    %c0_243 = arith.constant 0 : index
    %c0_244 = arith.constant 0 : index
    %564 = vector.load %arg2[%c30_242, %c0_243, %c0_244] : memref<41x32x32xf32, #tpu.memory_space<vmem>>, vector<1x32x32xf32>
    %565 = vector.shape_cast %564 : vector<1x32x32xf32> to vector<32x32xf32>
    %cst_245 = arith.constant dense<0.000000e+00> : vector<16x32xf32>
    %566 = tpu.matmul %563, %565, %cst_245 {dimension_numbers = #tpu.dot_dimension_numbers<[1], [0], [0], [1], [0, 0, 1, 1], [], []>} : vector<16x32xf32>, vector<32x32xf32>, vector<16x32xf32> -> vector<16x32xf32>
    %c31_246 = arith.constant 31 : index
    %c0_247 = arith.constant 0 : index
    %c0_248 = arith.constant 0 : index
    %567 = vector.load %arg2[%c31_246, %c0_247, %c0_248] : memref<41x32x32xf32, #tpu.memory_space<vmem>>, vector<1x32x32xf32>
    %568 = vector.shape_cast %567 : vector<1x32x32xf32> to vector<32x32xf32>
    %cst_249 = arith.constant dense<0.000000e+00> : vector<16x32xf32>
    %569 = tpu.matmul %119, %568, %cst_249 {dimension_numbers = #tpu.dot_dimension_numbers<[1], [0], [0], [1], [0, 0, 1, 1], [], []>} : vector<16x32xf32>, vector<32x32xf32>, vector<16x32xf32> -> vector<16x32xf32>
    %570 = arith.addf %566, %569 : vector<16x32xf32>
    %c38 = arith.constant 38 : index
    %c0_250 = arith.constant 0 : index
    %571 = vector.load %arg3[%c38, %c0_250] : memref<44x32xf32, #tpu.memory_space<vmem>>, vector<1x32xf32>
    %572 = vector.broadcast %571 : vector<1x32xf32> to vector<16x32xf32>
    %573 = arith.addf %570, %572 : vector<16x32xf32>
    %cst_251 = arith.constant 0.000000e+00 : f32
    %574 = vector.broadcast %cst_251 : f32 to vector<16x32xf32>
    %575 = arith.maximumf %573, %574 : vector<16x32xf32>
    %cst_252 = arith.constant 0.000000e+00 : f32
    %576 = vector.broadcast %cst_252 : f32 to vector<1x32xf32>
    %577 = vector.extract_strided_slice %575 {offsets = [0, 0], sizes = [15, 32], strides = [1, 1]} : vector<16x32xf32> to vector<15x32xf32>
    %578 = tpu.concatenate %576, %577 in 0 : vector<1x32xf32>, vector<15x32xf32> -> vector<16x32xf32>
    %579 = vector.extract_strided_slice %575 {offsets = [1, 0], sizes = [15, 32], strides = [1, 1]} : vector<16x32xf32> to vector<15x32xf32>
    %580 = tpu.concatenate %579, %576 in 0 : vector<15x32xf32>, vector<1x32xf32> -> vector<16x32xf32>
    %c32_253 = arith.constant 32 : index
    %c0_254 = arith.constant 0 : index
    %c0_255 = arith.constant 0 : index
    %581 = vector.load %arg2[%c32_253, %c0_254, %c0_255] : memref<41x32x32xf32, #tpu.memory_space<vmem>>, vector<1x32x32xf32>
    %582 = vector.shape_cast %581 : vector<1x32x32xf32> to vector<32x32xf32>
    %cst_256 = arith.constant dense<0.000000e+00> : vector<16x32xf32>
    %583 = tpu.matmul %578, %582, %cst_256 {dimension_numbers = #tpu.dot_dimension_numbers<[1], [0], [0], [1], [0, 0, 1, 1], [], []>} : vector<16x32xf32>, vector<32x32xf32>, vector<16x32xf32> -> vector<16x32xf32>
    %c33_257 = arith.constant 33 : index
    %c0_258 = arith.constant 0 : index
    %c0_259 = arith.constant 0 : index
    %584 = vector.load %arg2[%c33_257, %c0_258, %c0_259] : memref<41x32x32xf32, #tpu.memory_space<vmem>>, vector<1x32x32xf32>
    %585 = vector.shape_cast %584 : vector<1x32x32xf32> to vector<32x32xf32>
    %cst_260 = arith.constant dense<0.000000e+00> : vector<16x32xf32>
    %586 = tpu.matmul %575, %585, %cst_260 {dimension_numbers = #tpu.dot_dimension_numbers<[1], [0], [0], [1], [0, 0, 1, 1], [], []>} : vector<16x32xf32>, vector<32x32xf32>, vector<16x32xf32> -> vector<16x32xf32>
    %587 = arith.addf %583, %586 : vector<16x32xf32>
    %c34_261 = arith.constant 34 : index
    %c0_262 = arith.constant 0 : index
    %c0_263 = arith.constant 0 : index
    %588 = vector.load %arg2[%c34_261, %c0_262, %c0_263] : memref<41x32x32xf32, #tpu.memory_space<vmem>>, vector<1x32x32xf32>
    %589 = vector.shape_cast %588 : vector<1x32x32xf32> to vector<32x32xf32>
    %cst_264 = arith.constant dense<0.000000e+00> : vector<16x32xf32>
    %590 = tpu.matmul %580, %589, %cst_264 {dimension_numbers = #tpu.dot_dimension_numbers<[1], [0], [0], [1], [0, 0, 1, 1], [], []>} : vector<16x32xf32>, vector<32x32xf32>, vector<16x32xf32> -> vector<16x32xf32>
    %591 = arith.addf %587, %590 : vector<16x32xf32>
    %c39 = arith.constant 39 : index
    %c0_265 = arith.constant 0 : index
    %592 = vector.load %arg3[%c39, %c0_265] : memref<44x32xf32, #tpu.memory_space<vmem>>, vector<1x32xf32>
    %593 = vector.broadcast %592 : vector<1x32xf32> to vector<16x32xf32>
    %594 = arith.addf %591, %593 : vector<16x32xf32>
    %cst_266 = arith.constant 0.000000e+00 : f32
    %595 = vector.broadcast %cst_266 : f32 to vector<16x32xf32>
    %596 = arith.maximumf %594, %595 : vector<16x32xf32>
    %c35_267 = arith.constant 35 : index
    %c0_268 = arith.constant 0 : index
    %c0_269 = arith.constant 0 : index
    %597 = vector.load %arg2[%c35_267, %c0_268, %c0_269] : memref<41x32x32xf32, #tpu.memory_space<vmem>>, vector<1x32x32xf32>
    %598 = vector.shape_cast %597 : vector<1x32x32xf32> to vector<32x32xf32>
    %cst_270 = arith.constant dense<0.000000e+00> : vector<16x32xf32>
    %599 = tpu.matmul %596, %598, %cst_270 {dimension_numbers = #tpu.dot_dimension_numbers<[1], [0], [0], [1], [0, 0, 1, 1], [], []>} : vector<16x32xf32>, vector<32x32xf32>, vector<16x32xf32> -> vector<16x32xf32>
    %c40 = arith.constant 40 : index
    %c0_271 = arith.constant 0 : index
    %600 = vector.load %arg3[%c40, %c0_271] : memref<44x32xf32, #tpu.memory_space<vmem>>, vector<1x32xf32>
    %601 = vector.broadcast %600 : vector<1x32xf32> to vector<16x32xf32>
    %602 = arith.addf %599, %601 : vector<16x32xf32>
    %603 = arith.addf %575, %602 : vector<16x32xf32>
    %cst_272 = arith.constant 0.000000e+00 : f32
    %604 = vector.broadcast %cst_272 : f32 to vector<2x32xf32>
    %605 = vector.extract_strided_slice %603 {offsets = [0, 0], sizes = [14, 32], strides = [1, 1]} : vector<16x32xf32> to vector<14x32xf32>
    %606 = tpu.concatenate %604, %605 in 0 : vector<2x32xf32>, vector<14x32xf32> -> vector<16x32xf32>
    %607 = vector.extract_strided_slice %603 {offsets = [2, 0], sizes = [14, 32], strides = [1, 1]} : vector<16x32xf32> to vector<14x32xf32>
    %608 = tpu.concatenate %607, %604 in 0 : vector<14x32xf32>, vector<2x32xf32> -> vector<16x32xf32>
    %c36_273 = arith.constant 36 : index
    %c0_274 = arith.constant 0 : index
    %c0_275 = arith.constant 0 : index
    %609 = vector.load %arg2[%c36_273, %c0_274, %c0_275] : memref<41x32x32xf32, #tpu.memory_space<vmem>>, vector<1x32x32xf32>
    %610 = vector.shape_cast %609 : vector<1x32x32xf32> to vector<32x32xf32>
    %cst_276 = arith.constant dense<0.000000e+00> : vector<16x32xf32>
    %611 = tpu.matmul %606, %610, %cst_276 {dimension_numbers = #tpu.dot_dimension_numbers<[1], [0], [0], [1], [0, 0, 1, 1], [], []>} : vector<16x32xf32>, vector<32x32xf32>, vector<16x32xf32> -> vector<16x32xf32>
    %c37_277 = arith.constant 37 : index
    %c0_278 = arith.constant 0 : index
    %c0_279 = arith.constant 0 : index
    %612 = vector.load %arg2[%c37_277, %c0_278, %c0_279] : memref<41x32x32xf32, #tpu.memory_space<vmem>>, vector<1x32x32xf32>
    %613 = vector.shape_cast %612 : vector<1x32x32xf32> to vector<32x32xf32>
    %cst_280 = arith.constant dense<0.000000e+00> : vector<16x32xf32>
    %614 = tpu.matmul %603, %613, %cst_280 {dimension_numbers = #tpu.dot_dimension_numbers<[1], [0], [0], [1], [0, 0, 1, 1], [], []>} : vector<16x32xf32>, vector<32x32xf32>, vector<16x32xf32> -> vector<16x32xf32>
    %615 = arith.addf %611, %614 : vector<16x32xf32>
    %c38_281 = arith.constant 38 : index
    %c0_282 = arith.constant 0 : index
    %c0_283 = arith.constant 0 : index
    %616 = vector.load %arg2[%c38_281, %c0_282, %c0_283] : memref<41x32x32xf32, #tpu.memory_space<vmem>>, vector<1x32x32xf32>
    %617 = vector.shape_cast %616 : vector<1x32x32xf32> to vector<32x32xf32>
    %cst_284 = arith.constant dense<0.000000e+00> : vector<16x32xf32>
    %618 = tpu.matmul %608, %617, %cst_284 {dimension_numbers = #tpu.dot_dimension_numbers<[1], [0], [0], [1], [0, 0, 1, 1], [], []>} : vector<16x32xf32>, vector<32x32xf32>, vector<16x32xf32> -> vector<16x32xf32>
    %619 = arith.addf %615, %618 : vector<16x32xf32>
    %c41 = arith.constant 41 : index
    %c0_285 = arith.constant 0 : index
    %620 = vector.load %arg3[%c41, %c0_285] : memref<44x32xf32, #tpu.memory_space<vmem>>, vector<1x32xf32>
    %621 = vector.broadcast %620 : vector<1x32xf32> to vector<16x32xf32>
    %622 = arith.addf %619, %621 : vector<16x32xf32>
    %cst_286 = arith.constant 0.000000e+00 : f32
    %623 = vector.broadcast %cst_286 : f32 to vector<16x32xf32>
    %624 = arith.maximumf %622, %623 : vector<16x32xf32>
    %c39_287 = arith.constant 39 : index
    %c0_288 = arith.constant 0 : index
    %c0_289 = arith.constant 0 : index
    %625 = vector.load %arg2[%c39_287, %c0_288, %c0_289] : memref<41x32x32xf32, #tpu.memory_space<vmem>>, vector<1x32x32xf32>
    %626 = vector.shape_cast %625 : vector<1x32x32xf32> to vector<32x32xf32>
    %cst_290 = arith.constant dense<0.000000e+00> : vector<16x32xf32>
    %627 = tpu.matmul %624, %626, %cst_290 {dimension_numbers = #tpu.dot_dimension_numbers<[1], [0], [0], [1], [0, 0, 1, 1], [], []>} : vector<16x32xf32>, vector<32x32xf32>, vector<16x32xf32> -> vector<16x32xf32>
    %c42 = arith.constant 42 : index
    %c0_291 = arith.constant 0 : index
    %628 = vector.load %arg3[%c42, %c0_291] : memref<44x32xf32, #tpu.memory_space<vmem>>, vector<1x32xf32>
    %629 = vector.broadcast %628 : vector<1x32xf32> to vector<16x32xf32>
    %630 = arith.addf %627, %629 : vector<16x32xf32>
    %631 = arith.addf %603, %630 : vector<16x32xf32>
    %c40_292 = arith.constant 40 : index
    %c0_293 = arith.constant 0 : index
    %c0_294 = arith.constant 0 : index
    %632 = vector.load %arg2[%c40_292, %c0_293, %c0_294] : memref<41x32x32xf32, #tpu.memory_space<vmem>>, vector<1x32x32xf32>
    %633 = vector.shape_cast %632 : vector<1x32x32xf32> to vector<32x32xf32>
    %cst_295 = arith.constant dense<0.000000e+00> : vector<16x32xf32>
    %634 = tpu.matmul %631, %633, %cst_295 {dimension_numbers = #tpu.dot_dimension_numbers<[1], [0], [0], [1], [0, 0, 1, 1], [], []>} : vector<16x32xf32>, vector<32x32xf32>, vector<16x32xf32> -> vector<16x32xf32>
    %c43 = arith.constant 43 : index
    %c0_296 = arith.constant 0 : index
    %635 = vector.load %arg3[%c43, %c0_296] : memref<44x32xf32, #tpu.memory_space<vmem>>, vector<1x32xf32>
    %636 = vector.broadcast %635 : vector<1x32xf32> to vector<16x32xf32>
    %637 = arith.addf %634, %636 : vector<16x32xf32>
    %638 = tpu.iota {dimensions = array<i32: 1>} : vector<16x32xi32>
    %c17_i32_297 = arith.constant 17 : i32
    %639 = vector.broadcast %c17_i32_297 : i32 to vector<16x32xi32>
    %640 = arith.cmpi sge, %638, %639 : vector<16x32xi32>
    %c23_i32_298 = arith.constant 23 : i32
    %641 = vector.broadcast %c23_i32_298 : i32 to vector<16x32xi32>
    %642 = arith.cmpi slt, %638, %641 : vector<16x32xi32>
    %643 = arith.andi %640, %642 : vector<16x32xi1>
    %c23_i32_299 = arith.constant 23 : i32
    %644 = vector.broadcast %c23_i32_299 : i32 to vector<16x32xi32>
    %645 = arith.cmpi sge, %638, %644 : vector<16x32xi32>
    %cst_300 = arith.constant -1.000000e+30 : f32
    %646 = vector.broadcast %cst_300 : f32 to vector<16x32xf32>
    %647 = arith.select %643, %637, %646 : vector<16x32xi1>, vector<16x32xf32>
    %cst_301 = arith.constant dense<0xFF800000> : vector<16xf32>
    %648 = vector.multi_reduction <maximumf>, %647, %cst_301 [1] : vector<16x32xf32> to vector<16xf32>
    %649 = vector.shape_cast %648 : vector<16xf32> to vector<16x1xf32>
    %650 = vector.broadcast %649 : vector<16x1xf32> to vector<16x32xf32>
    %651 = arith.subf %637, %650 : vector<16x32xf32>
    %652 = math.exp %651 : vector<16x32xf32>
    %cst_302 = arith.constant 0.000000e+00 : f32
    %653 = vector.broadcast %cst_302 : f32 to vector<16x32xf32>
    %654 = arith.select %643, %652, %653 : vector<16x32xi1>, vector<16x32xf32>
    %cst_303 = arith.constant dense<0.000000e+00> : vector<16xf32>
    %655 = vector.multi_reduction <add>, %654, %cst_303 [1] : vector<16x32xf32> to vector<16xf32>
    %656 = vector.shape_cast %655 : vector<16xf32> to vector<16x1xf32>
    %657 = tpu.reciprocal %656 {approx = true} : vector<16x1xf32> -> vector<16x1xf32>
    %658 = vector.broadcast %657 : vector<16x1xf32> to vector<16x32xf32>
    %659 = arith.mulf %654, %658 : vector<16x32xf32>
    %cst_304 = arith.constant -1.000000e+30 : f32
    %660 = vector.broadcast %cst_304 : f32 to vector<16x32xf32>
    %661 = arith.select %645, %637, %660 : vector<16x32xi1>, vector<16x32xf32>
    %cst_305 = arith.constant dense<0xFF800000> : vector<16xf32>
    %662 = vector.multi_reduction <maximumf>, %661, %cst_305 [1] : vector<16x32xf32> to vector<16xf32>
    %663 = vector.shape_cast %662 : vector<16xf32> to vector<16x1xf32>
    %664 = vector.broadcast %663 : vector<16x1xf32> to vector<16x32xf32>
    %665 = arith.subf %637, %664 : vector<16x32xf32>
    %666 = math.exp %665 : vector<16x32xf32>
    %cst_306 = arith.constant 0.000000e+00 : f32
    %667 = vector.broadcast %cst_306 : f32 to vector<16x32xf32>
    %668 = arith.select %645, %666, %667 : vector<16x32xi1>, vector<16x32xf32>
    %cst_307 = arith.constant dense<0.000000e+00> : vector<16xf32>
    %669 = vector.multi_reduction <add>, %668, %cst_307 [1] : vector<16x32xf32> to vector<16xf32>
    %670 = vector.shape_cast %669 : vector<16xf32> to vector<16x1xf32>
    %671 = tpu.reciprocal %670 {approx = true} : vector<16x1xf32> -> vector<16x1xf32>
    %672 = vector.broadcast %671 : vector<16x1xf32> to vector<16x32xf32>
    %673 = arith.mulf %668, %672 : vector<16x32xf32>
    %674 = arith.addf %659, %673 : vector<16x32xf32>
    %675 = tpu.iota {dimensions = array<i32: 1>} : vector<16x32xi32>
    %c17_i32_308 = arith.constant 17 : i32
    %676 = vector.broadcast %c17_i32_308 : i32 to vector<16x32xi32>
    %677 = arith.cmpi slt, %675, %676 : vector<16x32xi32>
    %678 = arith.select %677, %637, %674 : vector<16x32xi1>, vector<16x32xf32>
    %679 = tpu.iota {dimensions = array<i32: 1>} : vector<16x32xi32>
    %c17_i32_309 = arith.constant 17 : i32
    %680 = vector.broadcast %c17_i32_309 : i32 to vector<16x32xi32>
    %681 = arith.cmpi sge, %679, %680 : vector<16x32xi32>
    %c23_i32_310 = arith.constant 23 : i32
    %682 = vector.broadcast %c23_i32_310 : i32 to vector<16x32xi32>
    %683 = arith.cmpi slt, %679, %682 : vector<16x32xi32>
    %684 = arith.andi %681, %683 : vector<16x32xi1>
    %c23_i32_311 = arith.constant 23 : i32
    %685 = vector.broadcast %c23_i32_311 : i32 to vector<16x32xi32>
    %686 = arith.cmpi sge, %679, %685 : vector<16x32xi32>
    %cst_312 = arith.constant -1.000000e+30 : f32
    %687 = vector.broadcast %cst_312 : f32 to vector<16x32xf32>
    %688 = arith.select %684, %637, %687 : vector<16x32xi1>, vector<16x32xf32>
    %cst_313 = arith.constant dense<0xFF800000> : vector<16xf32>
    %689 = vector.multi_reduction <maximumf>, %688, %cst_313 [1] : vector<16x32xf32> to vector<16xf32>
    %690 = vector.shape_cast %689 : vector<16xf32> to vector<16x1xf32>
    %691 = vector.broadcast %690 : vector<16x1xf32> to vector<16x32xf32>
    %692 = arith.subf %637, %691 : vector<16x32xf32>
    %693 = math.exp %692 : vector<16x32xf32>
    %cst_314 = arith.constant 0.000000e+00 : f32
    %694 = vector.broadcast %cst_314 : f32 to vector<16x32xf32>
    %695 = arith.select %684, %693, %694 : vector<16x32xi1>, vector<16x32xf32>
    %cst_315 = arith.constant dense<0.000000e+00> : vector<16xf32>
    %696 = vector.multi_reduction <add>, %695, %cst_315 [1] : vector<16x32xf32> to vector<16xf32>
    %697 = vector.shape_cast %696 : vector<16xf32> to vector<16x1xf32>
    %698 = vector.broadcast %690 : vector<16x1xf32> to vector<16x32xf32>
    %699 = arith.subf %637, %698 : vector<16x32xf32>
    %700 = math.log %697 : vector<16x1xf32>
    %701 = vector.broadcast %700 : vector<16x1xf32> to vector<16x32xf32>
    %702 = arith.subf %699, %701 : vector<16x32xf32>
    %cst_316 = arith.constant 0.000000e+00 : f32
    %703 = vector.broadcast %cst_316 : f32 to vector<16x32xf32>
    %704 = arith.select %684, %702, %703 : vector<16x32xi1>, vector<16x32xf32>
    %cst_317 = arith.constant -1.000000e+30 : f32
    %705 = vector.broadcast %cst_317 : f32 to vector<16x32xf32>
    %706 = arith.select %686, %637, %705 : vector<16x32xi1>, vector<16x32xf32>
    %cst_318 = arith.constant dense<0xFF800000> : vector<16xf32>
    %707 = vector.multi_reduction <maximumf>, %706, %cst_318 [1] : vector<16x32xf32> to vector<16xf32>
    %708 = vector.shape_cast %707 : vector<16xf32> to vector<16x1xf32>
    %709 = vector.broadcast %708 : vector<16x1xf32> to vector<16x32xf32>
    %710 = arith.subf %637, %709 : vector<16x32xf32>
    %711 = math.exp %710 : vector<16x32xf32>
    %cst_319 = arith.constant 0.000000e+00 : f32
    %712 = vector.broadcast %cst_319 : f32 to vector<16x32xf32>
    %713 = arith.select %686, %711, %712 : vector<16x32xi1>, vector<16x32xf32>
    %cst_320 = arith.constant dense<0.000000e+00> : vector<16xf32>
    %714 = vector.multi_reduction <add>, %713, %cst_320 [1] : vector<16x32xf32> to vector<16xf32>
    %715 = vector.shape_cast %714 : vector<16xf32> to vector<16x1xf32>
    %716 = vector.broadcast %708 : vector<16x1xf32> to vector<16x32xf32>
    %717 = arith.subf %637, %716 : vector<16x32xf32>
    %718 = math.log %715 : vector<16x1xf32>
    %719 = vector.broadcast %718 : vector<16x1xf32> to vector<16x32xf32>
    %720 = arith.subf %717, %719 : vector<16x32xf32>
    %cst_321 = arith.constant 0.000000e+00 : f32
    %721 = vector.broadcast %cst_321 : f32 to vector<16x32xf32>
    %722 = arith.select %686, %720, %721 : vector<16x32xi1>, vector<16x32xf32>
    %723 = arith.addf %704, %722 : vector<16x32xf32>
    %cst_322 = arith.constant dense<0.000000e+00> : vector<16x16xf32>
    %724 = tpu.matmul %723, %6, %cst_322 {dimension_numbers = #tpu.dot_dimension_numbers<[1], [0], [0], [1], [0, 0, 1, 1], [], []>} : vector<16x32xf32>, vector<32x16xf32>, vector<16x16xf32> -> vector<16x16xf32>
    %725 = tpu.iota {dimensions = array<i32: 1>} : vector<16x32xi32>
    %c17_i32_323 = arith.constant 17 : i32
    %726 = vector.broadcast %c17_i32_323 : i32 to vector<16x32xi32>
    %727 = arith.cmpi sge, %725, %726 : vector<16x32xi32>
    %c23_i32_324 = arith.constant 23 : i32
    %728 = vector.broadcast %c23_i32_324 : i32 to vector<16x32xi32>
    %729 = arith.cmpi slt, %725, %728 : vector<16x32xi32>
    %730 = arith.andi %727, %729 : vector<16x32xi1>
    %c23_i32_325 = arith.constant 23 : i32
    %731 = vector.broadcast %c23_i32_325 : i32 to vector<16x32xi32>
    %732 = arith.cmpi sge, %725, %731 : vector<16x32xi32>
    %cst_326 = arith.constant -1.000000e+30 : f32
    %733 = vector.broadcast %cst_326 : f32 to vector<16x32xf32>
    %734 = arith.select %730, %410, %733 : vector<16x32xi1>, vector<16x32xf32>
    %cst_327 = arith.constant dense<0xFF800000> : vector<16xf32>
    %735 = vector.multi_reduction <maximumf>, %734, %cst_327 [1] : vector<16x32xf32> to vector<16xf32>
    %736 = vector.shape_cast %735 : vector<16xf32> to vector<16x1xf32>
    %737 = vector.broadcast %736 : vector<16x1xf32> to vector<16x32xf32>
    %738 = arith.subf %410, %737 : vector<16x32xf32>
    %739 = math.exp %738 : vector<16x32xf32>
    %cst_328 = arith.constant 0.000000e+00 : f32
    %740 = vector.broadcast %cst_328 : f32 to vector<16x32xf32>
    %741 = arith.select %730, %739, %740 : vector<16x32xi1>, vector<16x32xf32>
    %cst_329 = arith.constant dense<0.000000e+00> : vector<16xf32>
    %742 = vector.multi_reduction <add>, %741, %cst_329 [1] : vector<16x32xf32> to vector<16xf32>
    %743 = vector.shape_cast %742 : vector<16xf32> to vector<16x1xf32>
    %744 = vector.broadcast %736 : vector<16x1xf32> to vector<16x32xf32>
    %745 = arith.subf %410, %744 : vector<16x32xf32>
    %746 = math.log %743 : vector<16x1xf32>
    %747 = vector.broadcast %746 : vector<16x1xf32> to vector<16x32xf32>
    %748 = arith.subf %745, %747 : vector<16x32xf32>
    %cst_330 = arith.constant 0.000000e+00 : f32
    %749 = vector.broadcast %cst_330 : f32 to vector<16x32xf32>
    %750 = arith.select %730, %748, %749 : vector<16x32xi1>, vector<16x32xf32>
    %cst_331 = arith.constant -1.000000e+30 : f32
    %751 = vector.broadcast %cst_331 : f32 to vector<16x32xf32>
    %752 = arith.select %732, %410, %751 : vector<16x32xi1>, vector<16x32xf32>
    %cst_332 = arith.constant dense<0xFF800000> : vector<16xf32>
    %753 = vector.multi_reduction <maximumf>, %752, %cst_332 [1] : vector<16x32xf32> to vector<16xf32>
    %754 = vector.shape_cast %753 : vector<16xf32> to vector<16x1xf32>
    %755 = vector.broadcast %754 : vector<16x1xf32> to vector<16x32xf32>
    %756 = arith.subf %410, %755 : vector<16x32xf32>
    %757 = math.exp %756 : vector<16x32xf32>
    %cst_333 = arith.constant 0.000000e+00 : f32
    %758 = vector.broadcast %cst_333 : f32 to vector<16x32xf32>
    %759 = arith.select %732, %757, %758 : vector<16x32xi1>, vector<16x32xf32>
    %cst_334 = arith.constant dense<0.000000e+00> : vector<16xf32>
    %760 = vector.multi_reduction <add>, %759, %cst_334 [1] : vector<16x32xf32> to vector<16xf32>
    %761 = vector.shape_cast %760 : vector<16xf32> to vector<16x1xf32>
    %762 = vector.broadcast %754 : vector<16x1xf32> to vector<16x32xf32>
    %763 = arith.subf %410, %762 : vector<16x32xf32>
    %764 = math.log %761 : vector<16x1xf32>
    %765 = vector.broadcast %764 : vector<16x1xf32> to vector<16x32xf32>
    %766 = arith.subf %763, %765 : vector<16x32xf32>
    %cst_335 = arith.constant 0.000000e+00 : f32
    %767 = vector.broadcast %cst_335 : f32 to vector<16x32xf32>
    %768 = arith.select %732, %766, %767 : vector<16x32xi1>, vector<16x32xf32>
    %769 = arith.addf %750, %768 : vector<16x32xf32>
    %cst_336 = arith.constant dense<0.000000e+00> : vector<16x16xf32>
    %770 = tpu.matmul %769, %6, %cst_336 {dimension_numbers = #tpu.dot_dimension_numbers<[1], [0], [0], [1], [0, 0, 1, 1], [], []>} : vector<16x32xf32>, vector<32x16xf32>, vector<16x16xf32> -> vector<16x16xf32>
    %771 = tpu.iota {dimensions = array<i32: 1>} : vector<8x32xi32>
    %c15_i32_337 = arith.constant 15 : i32
    %772 = vector.broadcast %c15_i32_337 : i32 to vector<8x32xi32>
    %773 = arith.cmpi sge, %771, %772 : vector<8x32xi32>
    %c22_i32_338 = arith.constant 22 : i32
    %774 = vector.broadcast %c22_i32_338 : i32 to vector<8x32xi32>
    %775 = arith.cmpi slt, %771, %774 : vector<8x32xi32>
    %776 = arith.andi %773, %775 : vector<8x32xi1>
    %c22_i32_339 = arith.constant 22 : i32
    %777 = vector.broadcast %c22_i32_339 : i32 to vector<8x32xi32>
    %778 = arith.cmpi sge, %771, %777 : vector<8x32xi32>
    %cst_340 = arith.constant -1.000000e+30 : f32
    %779 = vector.broadcast %cst_340 : f32 to vector<8x32xf32>
    %780 = arith.select %776, %494, %779 : vector<8x32xi1>, vector<8x32xf32>
    %cst_341 = arith.constant dense<0xFF800000> : vector<8xf32>
    %781 = vector.multi_reduction <maximumf>, %780, %cst_341 [1] : vector<8x32xf32> to vector<8xf32>
    %782 = vector.shape_cast %781 : vector<8xf32> to vector<8x1xf32>
    %783 = vector.broadcast %782 : vector<8x1xf32> to vector<8x32xf32>
    %784 = arith.subf %494, %783 : vector<8x32xf32>
    %785 = math.exp %784 : vector<8x32xf32>
    %cst_342 = arith.constant 0.000000e+00 : f32
    %786 = vector.broadcast %cst_342 : f32 to vector<8x32xf32>
    %787 = arith.select %776, %785, %786 : vector<8x32xi1>, vector<8x32xf32>
    %cst_343 = arith.constant dense<0.000000e+00> : vector<8xf32>
    %788 = vector.multi_reduction <add>, %787, %cst_343 [1] : vector<8x32xf32> to vector<8xf32>
    %789 = vector.shape_cast %788 : vector<8xf32> to vector<8x1xf32>
    %790 = vector.broadcast %782 : vector<8x1xf32> to vector<8x32xf32>
    %791 = arith.subf %494, %790 : vector<8x32xf32>
    %792 = math.log %789 : vector<8x1xf32>
    %793 = vector.broadcast %792 : vector<8x1xf32> to vector<8x32xf32>
    %794 = arith.subf %791, %793 : vector<8x32xf32>
    %cst_344 = arith.constant 0.000000e+00 : f32
    %795 = vector.broadcast %cst_344 : f32 to vector<8x32xf32>
    %796 = arith.select %776, %794, %795 : vector<8x32xi1>, vector<8x32xf32>
    %cst_345 = arith.constant -1.000000e+30 : f32
    %797 = vector.broadcast %cst_345 : f32 to vector<8x32xf32>
    %798 = arith.select %778, %494, %797 : vector<8x32xi1>, vector<8x32xf32>
    %cst_346 = arith.constant dense<0xFF800000> : vector<8xf32>
    %799 = vector.multi_reduction <maximumf>, %798, %cst_346 [1] : vector<8x32xf32> to vector<8xf32>
    %800 = vector.shape_cast %799 : vector<8xf32> to vector<8x1xf32>
    %801 = vector.broadcast %800 : vector<8x1xf32> to vector<8x32xf32>
    %802 = arith.subf %494, %801 : vector<8x32xf32>
    %803 = math.exp %802 : vector<8x32xf32>
    %cst_347 = arith.constant 0.000000e+00 : f32
    %804 = vector.broadcast %cst_347 : f32 to vector<8x32xf32>
    %805 = arith.select %778, %803, %804 : vector<8x32xi1>, vector<8x32xf32>
    %cst_348 = arith.constant dense<0.000000e+00> : vector<8xf32>
    %806 = vector.multi_reduction <add>, %805, %cst_348 [1] : vector<8x32xf32> to vector<8xf32>
    %807 = vector.shape_cast %806 : vector<8xf32> to vector<8x1xf32>
    %808 = vector.broadcast %800 : vector<8x1xf32> to vector<8x32xf32>
    %809 = arith.subf %494, %808 : vector<8x32xf32>
    %810 = math.log %807 : vector<8x1xf32>
    %811 = vector.broadcast %810 : vector<8x1xf32> to vector<8x32xf32>
    %812 = arith.subf %809, %811 : vector<8x32xf32>
    %cst_349 = arith.constant 0.000000e+00 : f32
    %813 = vector.broadcast %cst_349 : f32 to vector<8x32xf32>
    %814 = arith.select %778, %812, %813 : vector<8x32xi1>, vector<8x32xf32>
    %815 = arith.addf %796, %814 : vector<8x32xf32>
    %cst_350 = arith.constant dense<0.000000e+00> : vector<8x16xf32>
    %816 = tpu.matmul %815, %8, %cst_350 {dimension_numbers = #tpu.dot_dimension_numbers<[1], [0], [0], [1], [0, 0, 1, 1], [], []>} : vector<8x32xf32>, vector<32x16xf32>, vector<8x16xf32> -> vector<8x16xf32>
    %817 = tpu.iota {dimensions = array<i32: 1>} : vector<16x16xi32>
    %c9_i32 = arith.constant 9 : i32
    %818 = vector.broadcast %c9_i32 : i32 to vector<16x16xi32>
    %819 = arith.cmpi slt, %817, %818 : vector<16x16xi32>
    %cst_351 = arith.constant -1.000000e+30 : f32
    %820 = vector.broadcast %cst_351 : f32 to vector<16x16xf32>
    %821 = arith.select %819, %724, %820 : vector<16x16xi1>, vector<16x16xf32>
    %cst_352 = arith.constant dense<0xFF800000> : vector<16xf32>
    %822 = vector.multi_reduction <maximumf>, %821, %cst_352 [1] : vector<16x16xf32> to vector<16xf32>
    %823 = vector.shape_cast %822 : vector<16xf32> to vector<16x1xf32>
    %824 = vector.broadcast %823 : vector<16x1xf32> to vector<16x16xf32>
    %825 = arith.cmpf oeq, %821, %824 : vector<16x16xf32>
    %826 = arith.sitofp %817 : vector<16x16xi32> to vector<16x16xf32>
    %cst_353 = arith.constant 9.000000e+00 : f32
    %827 = vector.broadcast %cst_353 : f32 to vector<16x16xf32>
    %828 = arith.select %825, %826, %827 : vector<16x16xi1>, vector<16x16xf32>
    %cst_354 = arith.constant dense<0x7F800000> : vector<16xf32>
    %829 = vector.multi_reduction <minimumf>, %828, %cst_354 [1] : vector<16x16xf32> to vector<16xf32>
    %830 = vector.shape_cast %829 : vector<16xf32> to vector<16x1xf32>
    %cst_355 = arith.constant 0.000000e+00 : f32
    %831 = vector.broadcast %cst_355 : f32 to vector<16x23xf32>
    %832 = tpu.concatenate %678, %304, %350, %724, %770, %558, %830, %831 in 1 : vector<16x32xf32>, vector<16x16xf32>, vector<16x16xf32>, vector<16x16xf32>, vector<16x16xf32>, vector<16x8xf32>, vector<16x1xf32>, vector<16x23xf32> -> vector<16x128xf32>
    %cst_356 = arith.constant 0.000000e+00 : f32
    %833 = vector.broadcast %cst_356 : f32 to vector<8x48xf32>
    %834 = tpu.concatenate %535, %396, %816, %474, %833 in 1 : vector<8x32xf32>, vector<8x16xf32>, vector<8x16xf32>, vector<8x16xf32>, vector<8x48xf32> -> vector<8x128xf32>
    %835 = tpu.concatenate %832, %834 in 0 : vector<16x128xf32>, vector<8x128xf32> -> vector<24x128xf32>
    %c0_357 = arith.constant 0 : index
    %c0_358 = arith.constant 0 : index
    %c0_359 = arith.constant 0 : index
    %836 = vector.load %arg5[%c0_357, %c0_358, %c0_359] : memref<1x24x128xf32, #tpu.memory_space<vmem>>, vector<1x24x128xf32>
    %837 = vector.shape_cast %836 : vector<1x24x128xf32> to vector<24x128xf32>
    %838 = vector.shape_cast %835 : vector<24x128xf32> to vector<1x24x128xf32>
    tpu.vector_store %arg5[%c0_357, %c0_358, %c0_359], %838 {strides = array<i32>} : memref<1x24x128xf32, #tpu.memory_space<vmem>>, vector<1x24x128xf32>,
    return
  }
  func.func @transform_0(%arg0: i32) -> (i32, i32, i32) {
    %c0_i32 = arith.constant 0 : i32
    %c0_i32_0 = arith.constant 0 : i32
    %c0_i32_1 = arith.constant 0 : i32
    return %arg0, %c0_i32, %c0_i32_0 : i32, i32, i32
  }
  func.func @transform_1(%arg0: i32) -> (i32, i32, i32) {
    %c0_i32 = arith.constant 0 : i32
    %c0_i32_0 = arith.constant 0 : i32
    %c0_i32_1 = arith.constant 0 : i32
    %c0_i32_2 = arith.constant 0 : i32
    return %c0_i32, %c0_i32_0, %c0_i32_1 : i32, i32, i32
  }
  func.func @transform_2(%arg0: i32) -> (i32, i32) {
    %c0_i32 = arith.constant 0 : i32
    %c0_i32_0 = arith.constant 0 : i32
    %c0_i32_1 = arith.constant 0 : i32
    return %c0_i32, %c0_i32_0 : i32, i32
  }
  func.func @transform_3(%arg0: i32) -> (i32, i32, i32) {
    %c0_i32 = arith.constant 0 : i32
    %c0_i32_0 = arith.constant 0 : i32
    %c0_i32_1 = arith.constant 0 : i32
    %c0_i32_2 = arith.constant 0 : i32
    return %c0_i32, %c0_i32_0, %c0_i32_1 : i32, i32, i32
  }
  func.func @transform_4(%arg0: i32) -> (i32, i32, i32) {
    %c0_i32 = arith.constant 0 : i32
    %c0_i32_0 = arith.constant 0 : i32
    %c0_i32_1 = arith.constant 0 : i32
    return %arg0, %c0_i32, %c0_i32_0 : i32, i32, i32
  }
}

</mosaic_0001>

<bundles_post_ra>
// kernel: fact_forward.1
= control target key start
LH: loop header
LB: loop body
LE: loop exit
PB: predicated region body
PF: predicated region fallthrough
CT: control target
= control target key end

     0   :  { %s7062_s15 = smov 0   ;;  %s8433_s0 = inlined_call_operand.vmem [shape: f32[2,16,32], index: 0, kind: input, shape index: {}]   ;;  %s8434_s1 = inlined_call_operand.vmem [shape: f32[41,32,32], index: 1, kind: input, shape index: {}]   ;;  %s8435_s2 = inlined_call_operand.vmem [shape: f32[44,32], index: 2, kind: input, shape index: {}]   ;;  %s8436_s3 = inlined_call_operand.vmem [shape: f32[2,32,16], index: 3, kind: input, shape index: {}]   ;;  %s8437_s4 = inlined_call_operand.vmem [shape: f32[2,24,128], index: 4, kind: output, shape index: {}]  }
   0x1 LB: > { %s5350_s16 = sadd.s32 4294967295, %s7027_s15   ;;  %p5354_p0 = scmp.ge.s32.totalorder %s7027_s15, 1  ;;  %s7027_s15 = sphi %s7062_s15, %s14_s15  }
   0x2   : > { %p162_p1 = scmp.lt.s32.totalorder %s7027_s15, 3 }
   0x4   : > { %p163_p2 = pnand %p5354_p0, %p162_p1 }
   0x5   : > { %v212_v0 = vld [vmem:[%s8434_s1] sm:$0xff] (!%p163_p2)  ;;  %v213_v1 = vld [vmem:[%s8434_s1 + $0x8] sm:$0xff] (!%p163_p2)  ;;  %v214_v2 = vld [vmem:[%s8434_s1 + $0x10] sm:$0xff] (!%p163_p2)  ;;  %p188_p3 = scmp.lt.s32.totalorder (!%p163_p2), %s5350_s16, 1  ;;  %vm221_vm0 = vcmask (!%p163_p2), 261120   ;;  %vm307_vm1 = vcmask (!%p163_p2), 1040384  }
   0x6   : > { %166 = sbr.rel (%p163_p2) target bundleno = 10228 (0x27f4), region = 36  ;;  %v6483_v3 = vpack.c.bf16 (!%p163_p2), %v213_v1, %v212_v0  ;;  %v215_v4 = vld [vmem:[%s8434_s1 + $0x18] sm:$0xff] (!%p163_p2)  ;;  %v5369_v5 = vld [vmem:[%s8434_s1 + $0x40] sm:$0xff] (!%p163_p2)  ;;  %v5370_v6 = vld [vmem:[%s8434_s1 + $0x48] sm:$0xff] (!%p163_p2)  ;;  %vm313_vm2 = vcmask (!%p163_p2), 1046528   ;;  %vm679_vm3 = vcmask (!%p163_p2), 1041408  }
   0x7   : > { %v6487_v7 = vpack.c.bf16 (!%p163_p2), %v215_v4, %v214_v2  ;;  %v6491_v8 = vpack.c.bf16 (!%p163_p2), %v5370_v6, %v5369_v5  ;;  %v5371_v11 = vld [vmem:[%s8434_s1 + $0x50] sm:$0xff] (!%p163_p2)  ;;  %v5372_v12 = vld [vmem:[%s8434_s1 + $0x58] sm:$0xff] (!%p163_p2)  ;;  %v5365_v14 = vld [vmem:[%s8434_s1 + $0x20] sm:$0xff] (!%p163_p2)  ;;  %vm685_vm4 = vcmask (!%p163_p2), 1045504   ;;  %vm7030_vm10 = vmmov (!%p163_p2), 0   ;;  %s7033_s30 = smov (!%p163_p2), 48  }
   0x8   : > { %6484 = vmatprep.subr.bf16.mxu0 (!%p163_p2), %v6483_v3  ;;  %v6495_v13 = vpack.c.bf16 (!%p163_p2), %v5372_v12, %v5371_v11  ;;  %v5366_v15 = vld [vmem:[%s8434_s1 + $0x28] sm:$0xff] (!%p163_p2)  ;;  %v5384_v17 = vld [vmem:[%s8434_s1 + $0x80] sm:$0xff] (!%p163_p2)  ;;  %v5362_v20 = vld [vmem:[%s8435_s2 + $0x18] ss:$0 sm:$0xff] (!%p163_p2)  ;;  %vm1775_vm12 = vcmask (!%p163_p2), 130048   ;;  %s7034_s5 = smov (!%p163_p2), 64  }
   0x9   : > { %6486 = vmatpush3.bf16.msra.mxu0 (!%p163_p2), %v6483_v3  ;;  %6492 = vmatprep.subr.bf16.mxu1 (!%p163_p2), %v6491_v8  ;;  %v6499_v16 = vpack.c.bf16 (!%p163_p2), %v5366_v15, %v5365_v14  ;;  %v5385_v18 = vld [vmem:[%s8434_s1 + $0x88] sm:$0xff] (!%p163_p2)  ;;  %v5367_v25 = vld [vmem:[%s8434_s1 + $0x30] sm:$0xff] (!%p163_p2)  ;;  %v5368_v26 = vld [vmem:[%s8434_s1 + $0x38] sm:$0xff] (!%p163_p2)  ;;  %s7036_s7 = smov (!%p163_p2), 96  }
   0xa   : > { %6488 = vmatprep.subr.bf16.mxu0 (!%p163_p2), %v6487_v7  ;;  %6494 = vmatpush3.bf16.msra.mxu1 (!%p163_p2), %v6491_v8  ;;  %v6515_v19 = vpack.c.bf16 (!%p163_p2), %v5385_v18, %v5384_v17  ;;  %v6503_v29 = vpack.c.bf16 (!%p163_p2), %v5368_v26, %v5367_v25  ;;  %v5377_v31 = vld [vmem:[%s8434_s1 + $0x60] sm:$0xff] (!%p163_p2)  ;;  %v5378_v32 = vld [vmem:[%s8434_s1 + $0x68] sm:$0xff] (!%p163_p2)  ;;  %v5379_v36 = vld [vmem:[%s8434_s1 + $0x70] sm:$0xff] (!%p163_p2) }
   0xb   : > { %6496 = vmatprep.subr.bf16.mxu1 (!%p163_p2), %v6495_v13  ;;  %v6507_v34 = vpack.c.bf16 (!%p163_p2), %v5378_v32, %v5377_v31  ;;  %v5380_v37 = vld [vmem:[%s8434_s1 + $0x78] sm:$0xff] (!%p163_p2)  ;;  %v5386_v44 = vld [vmem:[%s8434_s1 + $0x90] sm:$0xff] (!%p163_p2)  ;;  %v5395_v47 = vld [vmem:[%s8434_s1 + $0xc0] sm:$0xff] (!%p163_p2) }
   0xc   : > { %v6511_v40 = vpack.c.bf16 (!%p163_p2), %v5380_v37, %v5379_v36  ;;  %v5387_v45 = vld [vmem:[%s8434_s1 + $0x98] sm:$0xff] (!%p163_p2)  ;;  %v5396_v48 = vld [vmem:[%s8434_s1 + $0xc8] sm:$0xff] (!%p163_p2)  ;;  %v5397_v57 = vld [vmem:[%s8434_s1 + $0xd0] sm:$0xff] (!%p163_p2) }
   0xd   : > { %s8445_s16 = smov (!%p188_p3, %s5350_s16), 1  ;;  %6490 = vmatpush3.bf16.msra.mxu0 %v6487_v7  ;;  %v6519_v46 = vpack.c.bf16 %v5387_v45, %v5386_v44  ;;  %v6523_v49 = vpack.c.bf16 %v5396_v48, %v5395_v47  ;;  %v5383_v50 = vld [vmem:[%s8435_s2 + $0x19] ss:$0 sm:$0xff]  ;;  %v5391_v60 = vld [vmem:[%s8434_s1 + $0xa0] sm:$0xff]  ;;  %v5392_v61 = vld [vmem:[%s8434_s1 + $0xa8] sm:$0xff] }
   0xe   : > { %s5639_s29 = sshll.u32 %s8445_s16, 4  ;;  %6498 = vmatpush3.bf16.msra.mxu1 %v6495_v13  ;;  %6516 = vmatprep.subr.bf16.mxu0 %v6515_v19  ;;  %v5398_v58 = vld [vmem:[%s8434_s1 + $0xd8] sm:$0xff]  ;;  %v6531_v62 = vpack.c.bf16 %v5392_v61, %v5391_v60  ;;  %v5410_v63 = vld [vmem:[%s8434_s1 + $0x100] sm:$0xff]  ;;  %v5411_v0 = vld [vmem:[%s8434_s1 + $0x108] sm:$0xff]  ;;  %s6867_s8 = smul.u32 24, %s8445_s16 }
   0xf   : > { %s192_s6 = scalar_lea.vmem %s8433_s0, %s5639_s29  ;;  %6500 = vmatprep.subr.bf16.mxu1 %v6499_v16  ;;  %v6527_v59 = vpack.c.bf16 %v5398_v58, %v5397_v57  ;;  %v6547_v1 = vpack.c.bf16 %v5411_v0, %v5410_v63  ;;  %v5388_v2 = vld [vmem:[%s8435_s2 + $0x1a] ss:$0 sm:$0xff]  ;;  %v5393_v7 = vld [vmem:[%s8434_s1 + $0xb0] sm:$0xff]  ;;  %v5403_v13 = vld [vmem:[%s8434_s1 + $0xe0] sm:$0xff]  ;;  %s7032_s29 = smov 32  }
  0x10   : > { %v198_v9 = vld [vmem:[%s192_s6] sm:$0xff]  ;;  %v199_v10 = vld [vmem:[%s192_s6 + $0x8] sm:$0xff]  ;;  %v5394_v8 = vld [vmem:[%s8434_s1 + $0xb8] sm:$0xff]  ;;  %s7035_s6 = smov 80   ;;  %s197_s11 = scalar_lea.vmem %s8437_s4, %s6867_s8 }
  0x11   : > { %5936 = vmatprep.mubr.msk.f32.mxu0 %vm221_vm0, %v198_v9  ;;  %v6535_v11 = vpack.c.bf16 %v5394_v8, %v5393_v7  ;;  %v5404_v14 = vld [vmem:[%s8434_s1 + $0xe8] sm:$0xff]  ;;  %v5405_v18 = vld [vmem:[%s8434_s1 + $0xf0] sm:$0xff]  ;;  %v5409_v32 = vld [vmem:[%s8435_s2 + $0x1b] ss:$0 sm:$0xff] }
  0x12   : > { %5937 = vmatmul.mubr.msk.f32.vlgmr.msra.gmra.mrb[0].mxu0 %vm221_vm0, %v199_v10  ;;  %v5412_v26 = vld [vmem:[%s8434_s1 + $0x110] sm:$0xff]  ;;  %vm7527_vm11 = vmpackc.low %vm221_vm0, %vm221_vm0 }
  0x13   : > { %6518 = vmatpush3.bf16.msra.mxu0 %v6515_v19  ;;  %v5406_v19 = vld [vmem:[%s8434_s1 + $0xf8] sm:$0xff] }
  0x14   : > { %6520 = vmatprep.subr.bf16.mxu0 %v6519_v46 }
  0x17   : > { %6522 = vmatpush3.bf16.msra.mxu0 %v6519_v46 }
  0x18   : > { %6524 = vmatprep.subr.bf16.mxu0 %v6523_v49 }
  0xe5   : > { %v5938_v21 = vpop.f32.mrb[0].mxu0 }
  0xe6   : > { %v300_v22 = vadd.f32 %v5938_v21, %v5362_v20  ;;  %v294_v23 = vpop.f32.mrb[1].mxu0 }
  0xe7   : > { %v295_v24 = vadd.f32 %v5362_v20, %v294_v23 }
  0xe8   : > { %v7125_v28 = vmax.f32 %v300_v22, 0.0  ;;  %v6543_v22 = vpack.c.bf16 %v5406_v19, %v5405_v18 }
  0xe9   : > { %v7123_v27 = vmax.f32 %v295_v24, 0.0 }
  0xea   : > { %v309_v35 = vrot.slane %v7125_v28, 7  ;;  %v315_v39 = vrot.slane %v7125_v28, 1 }
  0xeb   : > { %5947 = vmatprep.mubr.msk.f32.mxu1 %vm221_vm0, %v7123_v27  ;;  %v308_v30 = vrot.slane %v7123_v27, 7  ;;  %v314_v38 = vrot.slane %v7123_v27, 1 }
  0xec   : > { %5948 = vmatmul.mubr.msk.f32.vlgmr.msra.gmra.mrb[0].mxu1 %vm221_vm0, %v7125_v28  ;;  %v318_v43 = vsel %vm313_vm2, %v315_v39, 0.0 }
  0xed   : > { %6502 = vmatpush3.bf16.msra.mxu1 %v6499_v16  ;;  %v312_v33 = vsel %vm307_vm1, 0.0, %v308_v30  ;;  %v310_v41 = vsel %vm307_vm1, %v308_v30, %v309_v35  ;;  %v316_v42 = vsel %vm313_vm2, %v314_v38, %v315_v39  ;;  %v6539_v16 = vpack.c.bf16 %v5404_v14, %v5403_v13  ;;  %v5418_v30 = vld [vmem:[%s8434_s1 + $0x128] sm:$0xff]  ;;  %v5419_v39 = vld [vmem:[%s8434_s1 + $0x130] sm:$0xff] }
  0xee   : > { %5958 = vmatprep.mubr.msk.f32.mxu1 %vm221_vm0, %v312_v33  ;;  %6504 = vmatprep.subr.bf16.mxu1 %v6503_v29 }
  0xf1   : > { %6506 = vmatpush3.bf16.msra.mxu1 %v6503_v29  ;;  %v5417_v29 = vld [vmem:[%s8434_s1 + $0x120] sm:$0xff] }
  0xf2   : > { %6508 = vmatprep.subr.bf16.mxu1 %v6507_v34  ;;  %v6555_v31 = vpack.c.bf16 %v5418_v30, %v5417_v29  ;;  %v5427_v29 = vld [vmem:[%s8434_s1 + $0x158] sm:$0xff] }
  0xf4   : > { %5959 = vmatmul.mubr.msk.f32.vlgmr.msra.gmra.mrb[0].mxu1 %vm221_vm0, %v310_v41 }
  0xf5   : > { %6510 = vmatpush3.bf16.msra.mxu1 %v6507_v34  ;;  %5969 = vmatprep.mubr.msk.f32.mxu1 %vm221_vm0, %v316_v42  ;;  %v5414_v42 = vld [vmem:[%s8435_s2 + $0x1c] ss:$0 sm:$0xff] }
  0xf6   : > { %6512 = vmatprep.subr.bf16.mxu1 %v6511_v40 }
  0xf9   : > { %6514 = vmatpush3.bf16.msra.mxu1 %v6511_v40  ;;  %v5420_v40 = vld [vmem:[%s8434_s1 + $0x138] sm:$0xff] }
  0xfa   : > { %6548 = vmatprep.subr.bf16.mxu1 %v6547_v1  ;;  %v6559_v41 = vpack.c.bf16 %v5420_v40, %v5419_v39 }
  0xfc   : > { %5970 = vmatmul.mubr.msk.f32.vlgmr.msra.gmra.mrb[0].mxu1 %vm221_vm0, %v318_v43 }
  0xfd   : > { %6550 = vmatpush3.bf16.msra.mxu1 %v6547_v1 }
 0x1cf   : > { %v5971_v51 = vpop.f32.mrb[0].mxu1 }
 0x1d0   : > { %v581_v52 = vadd.f32 %v5971_v51, %v5383_v50  ;;  %v564_v53 = vpop.f32.mrb[1].mxu1  ;;  %v5421_v51 = vld [vmem:[%s8435_s2 + $0x1d] ss:$0 sm:$0xff] }
 0x1d1   : > { %v580_v54 = vadd.f32 %v5383_v50, %v564_v53 }
 0x1d2   : > { %v583_v56 = vmax.f32 %v581_v52, 0.0 }
 0x1d3   : > { %v582_v55 = vmax.f32 %v580_v54, 0.0 }
 0x1d5   : > { %5980 = vmatprep.mubr.msk.f32.mxu0 %vm221_vm0, %v582_v55 }
 0x1d6   : > { %5981 = vmatmul.mubr.msk.f32.vlgmr.msra.gmra.mrb[2].mxu0 %vm221_vm0, %v583_v56 }
 0x1d7   : > { %6526 = vmatpush3.bf16.msra.mxu0 %v6523_v49  ;;  %v1140_v49 = vlaneseq }
 0x1d8   : > { %6528 = vmatprep.subr.bf16.mxu0 %v6527_v59 }
 0x1d9   : > { %v7251_v50 = vand.u32 127, %v1140_v49 }
 0x1db   : > { %6530 = vmatpush3.bf16.msra.mxu0 %v6527_v59  ;;  %vm1142_vm5 = vcmp.ge.s32.totalorder %v7251_v50, 17  ;;  %vm1143_vm6 = vcmp.lt.s32.totalorder %v7251_v50, 23  ;;  %vm1145_vm8 = vcmp.ge.s32.totalorder %v7251_v50, 23  ;;  %vm1200_vm9 = vcmp.lt.s32.totalorder %v7251_v50, 17 }
 0x1dc   : > { %6532 = vmatprep.subr.bf16.mxu0 %v6531_v62  ;;  %vm7258_vm7 = vmand %vm1142_vm5, %vm1143_vm6  ;;  %vm2106_vm13 = vcmp.ge.s32.totalorder %v7251_v50, 15  ;;  %vm2107_vm14 = vcmp.lt.s32.totalorder %v7251_v50, 22  ;;  %vm2109_vm15 = vcmp.ge.s32.totalorder %v7251_v50, 22  ;;  %vm2137_vm6 = vcmp.lt.s32.totalorder %v7251_v50, 15 }
 0x1dd   : > { %vm7672_vm5 = vmand %vm2106_vm13, %vm2107_vm14  ;;  %vm5274_vm13 = vcmask 859136  }
 0x2a9   : > { %v5982_v3 = vpop.f32.mrb[2].mxu0 }
 0x2aa   : > { %v672_v4 = vadd.f32 %v5982_v3, %v5388_v2  ;;  %v666_v5 = vpop.f32.mrb[3].mxu0 }
 0x2ab   : > { %v667_v6 = vadd.f32 %v5388_v2, %v666_v5 }
 0x2ac   : > { %v676_v10 = vadd.f32 %v672_v4, %v7125_v28 }
 0x2ad   : > { %v675_v9 = vadd.f32 %v667_v6, %v7123_v27  ;;  %v5413_v27 = vld [vmem:[%s8434_s1 + $0x118] sm:$0xff] }
 0x2ae   : > { %v681_v17 = vrot.slane %v676_v10, 6  ;;  %v687_v21 = vrot.slane %v676_v10, 2  ;;  %v6551_v28 = vpack.c.bf16 %v5413_v27, %v5412_v26  ;;  %v5425_v26 = vld [vmem:[%s8434_s1 + $0x148] sm:$0xff] }
 0x2af   : > { %5991 = vmatprep.mubr.msk.f32.mxu0 %vm221_vm0, %v675_v9  ;;  %v680_v12 = vrot.slane %v675_v9, 6  ;;  %v686_v20 = vrot.slane %v675_v9, 2 }
 0x2b0   : > { %5992 = vmatmul.mubr.msk.f32.vlgmr.msra.gmra.mrb[4].mxu0 %vm221_vm0, %v676_v10  ;;  %v690_v25 = vsel %vm685_vm4, %v687_v21, 0.0  ;;  %6552 = vmatprep.subr.bf16.mxu1 %v6551_v28 }
 0x2b1   : > { %6534 = vmatpush3.bf16.msra.mxu0 %v6531_v62  ;;  %v684_v15 = vsel %vm679_vm3, 0.0, %v680_v12  ;;  %v682_v23 = vsel %vm679_vm3, %v680_v12, %v681_v17  ;;  %v688_v24 = vsel %vm685_vm4, %v686_v20, %v687_v21  ;;  %6554 = vmatpush3.bf16.msra.mxu1 %v6551_v28  ;;  %v5426_v28 = vld [vmem:[%s8434_s1 + $0x150] sm:$0xff] }
 0x2b2   : > { %6002 = vmatprep.mubr.msk.f32.mxu0 %vm221_vm0, %v684_v15  ;;  %6536 = vmatprep.subr.bf16.mxu0 %v6535_v11  ;;  %v6567_v30 = vpack.c.bf16 %v5427_v29, %v5426_v28 }
 0x2b3   : > { %6556 = vmatprep.subr.bf16.mxu1 %v6555_v31 }
 0x2b5   : > { %6538 = vmatpush3.bf16.msra.mxu0 %v6535_v11 }
 0x2b6   : > { %6540 = vmatprep.subr.bf16.mxu0 %v6539_v16 }
 0x2b8   : > { %6003 = vmatmul.mubr.msk.f32.vlgmr.msra.gmra.mrb[4].mxu0 %vm221_vm0, %v682_v23 }
 0x2b9   : > { %6542 = vmatpush3.bf16.msra.mxu0 %v6539_v16  ;;  %6013 = vmatprep.mubr.msk.f32.mxu0 %vm221_vm0, %v688_v24 }
 0x2ba   : > { %6544 = vmatprep.subr.bf16.mxu0 %v6543_v22 }
 0x2bd   : > { %6546 = vmatpush3.bf16.msra.mxu0 %v6543_v22 }
 0x2c0   : > { %6014 = vmatmul.mubr.msk.f32.vlgmr.msra.gmra.mrb[4].mxu0 %vm221_vm0, %v690_v25  ;;  %v5424_v25 = vld [vmem:[%s8434_s1 + $0x140] sm:$0xff] }
 0x2c1   : > { %v6563_v27 = vpack.c.bf16 %v5425_v26, %v5424_v25 }
 0x2c3   : > { %6564 = vmatprep.subr.bf16.mxu0 %v6563_v27 }
 0x2c4   : > { %6566 = vmatpush3.bf16.msra.mxu0 %v6563_v27 }
 0x2c5   : > { %6568 = vmatprep.subr.bf16.mxu0 %v6567_v30 }
 0x2c8   : > { %6570 = vmatpush3.bf16.msra.mxu0 %v6567_v30 }
 0x393   : > { %v6015_v33 = vpop.f32.mrb[4].mxu0 }
 0x394   : > { %v953_v34 = vadd.f32 %v6015_v33, %v5409_v32  ;;  %v936_v35 = vpop.f32.mrb[5].mxu0 }
 0x395   : > { %v952_v36 = vadd.f32 %v5409_v32, %v936_v35  ;;  %v5432_v32 = vld [vmem:[%s8434_s1 + $0x168] sm:$0xff] }
 0x396   : > { %v955_v38 = vmax.f32 %v953_v34, 0.0 }
 0x397   : > { %v954_v37 = vmax.f32 %v952_v36, 0.0 }
 0x399   : > { %6024 = vmatprep.mubr.msk.f32.mxu1 %vm221_vm0, %v954_v37 }
 0x39a   : > { %6025 = vmatmul.mubr.msk.f32.vlgmr.msra.gmra.mrb[2].mxu1 %vm221_vm0, %v955_v38 }
 0x39b   : > { %6558 = vmatpush3.bf16.msra.mxu1 %v6555_v31  ;;  %v5431_v31 = vld [vmem:[%s8434_s1 + $0x160] sm:$0xff] }
 0x39c   : > { %6560 = vmatprep.subr.bf16.mxu1 %v6559_v41  ;;  %v6571_v33 = vpack.c.bf16 %v5432_v32, %v5431_v31 }
 0x39f   : > { %6562 = vmatpush3.bf16.msra.mxu1 %v6559_v41 }
 0x3a0   : > { %6572 = vmatprep.subr.bf16.mxu1 %v6571_v33 }
 0x46d   : > { %v6026_v43 = vpop.f32.mrb[2].mxu1 }
 0x46e   : > { %v1044_v44 = vadd.f32 %v6026_v43, %v5414_v42  ;;  %v1038_v45 = vpop.f32.mrb[3].mxu1 }
 0x46f   : > { %v1039_v46 = vadd.f32 %v5414_v42, %v1038_v45 }
 0x470   : > { %v1048_v48 = vadd.f32 %v1044_v44, %v676_v10 }
 0x471   : > { %v1047_v47 = vadd.f32 %v1039_v46, %v675_v9 }
 0x473   : > { %6035 = vmatprep.mubr.msk.f32.mxu1 %vm221_vm0, %v1047_v47 }
 0x474   : > { %6036 = vmatmul.mubr.msk.f32.vlgmr.msra.gmra.mrb[4].mxu1 %vm221_vm0, %v1048_v48 }
 0x475   : > { %6574 = vmatpush3.bf16.msra.mxu1 %v6571_v33 }
 0x547   : > { %v6037_v52 = vpop.f32.mrb[4].mxu1 }
 0x548   : > { %v7262_v54 = vadd.f32 %v6037_v52, %v5421_v51  ;;  %v1131_v55 = vpop.f32.mrb[5].mxu1 }
 0x549   : > { %v7264_v56 = vadd.f32 %v5421_v51, %v1131_v55 }
 0x54a   : > { %v1147_v57 = vsel %vm7258_vm7, %v7262_v54, -1e+30  ;;  %v1173_v61 = vsel %vm1145_vm8, %v7262_v54, -1e+30 }
 0x54b   : > { %v1151_v58 = vsel %vm221_vm0, %v1147_v57, -inf  ;;  %v1146_v59 = vsel %vm7258_vm7, %v7264_v56, -1e+30  ;;  %v1172_v62 = vsel %vm1145_vm8, %v7264_v56, -1e+30  ;;  %v1177_v63 = vsel %vm221_vm0, %v1173_v61, -inf }
 0x54c   : > { %1152 = vmax.xlane.f32.xlu1 %v1151_v58  ;;  %v1148_v60 = vsel %vm221_vm0, %v1146_v59, -inf  ;;  %v1174_v0 = vsel %vm221_vm0, %v1172_v62, -inf }
 0x54d   : > { %1149 = vmax.xlane.f32.xlu0 %v1148_v60 }
 0x550   : > { %1178 = vmax.xlane.f32.xlu1 %v1177_v63  ;;  %v5434_v63 = vld [vmem:[%s8434_s1 + $0x178] sm:$0xff] }
 0x551   : > { %1175 = vmax.xlane.f32.xlu0 %v1174_v0 }
 0x5d9   : > { %v1153_v1 = vpop.xlane.xlu1 %1152 }
 0x5da   : > { %v7284_v2 = vsub.f32 %v7262_v54, %v1153_v1  ;;  %v1150_v3 = vpop.xlane.xlu0 %1149  ;;  %v5428_v1 = vld [vmem:[%s8435_s2 + $0x1e] ss:$0 sm:$0xff] }
 0x5db   : > { %v7287_v4 = vsub.f32 %v7264_v56, %v1150_v3 }
 0x5dc   : > { %v1158_v5 = vmul.f32 1.442695, %v7284_v2 }
 0x5dd   : > { %v1156_v6 = vmul.f32 1.442695, %v7287_v4  ;;  %v1179_v7 = vpop.xlane.xlu1 %1178 }
 0x5de   : > { %6884 = vpow2.f32 %v1158_v5  ;;  %v7292_v8 = vsub.f32 %v7262_v54, %v1179_v7  ;;  %v1176_v9 = vpop.xlane.xlu0 %1175 }
 0x5df   : > { %6886 = vpow2.f32 %v1156_v6  ;;  %v7295_v10 = vsub.f32 %v7264_v56, %v1176_v9  ;;  %v5435_v9 = vld [vmem:[%s8435_s2 + $0x1f] ss:$0 sm:$0xff] }
 0x5e0   : > { %v1184_v11 = vmul.f32 1.442695, %v7292_v8 }
 0x5e1   : > { %v1182_v12 = vmul.f32 1.442695, %v7295_v10 }
 0x5e2   : > { %6888 = vpow2.f32 %v1184_v11 }
 0x5e3   : > { %6890 = vpow2.f32 %v1182_v12 }
 0x5e8   : > { %v6885_v13 = vpop.eup %6884 }
 0x5e9   : > { %v6887_v14 = vpop.eup %6886  ;;  %v1161_v18 = vsel %vm7258_vm7, %v6885_v13, 0.0 }
 0x5ea   : > { %v1160_v15 = vsel %vm7258_vm7, %v6887_v14, 0.0  ;;  %v1165_v21 = vsel %vm221_vm0, %v1161_v18, 0.0 }
 0x5eb   : > { %v1162_v16 = vsel %vm221_vm0, %v1160_v15, 0.0 }
 0x5ec   : > { %v6889_v17 = vpop.eup %6888  ;;  %1163 = vadd.xlane.f32.xlu0 %v1162_v16 }
 0x5ed   : > { %v6891_v19 = vpop.eup %6890  ;;  %v1187_v23 = vsel %vm1145_vm8, %v6889_v17, 0.0 }
 0x5ee   : > { %v1186_v20 = vsel %vm1145_vm8, %v6891_v19, 0.0  ;;  %v1191_v24 = vsel %vm221_vm0, %v1187_v23, 0.0 }
 0x5ef   : > { %v1188_v22 = vsel %vm221_vm0, %v1186_v20, 0.0 }
 0x5f0   : > { %1166 = vadd.xlane.f32.xlu0 %v1165_v21  ;;  %1189 = vadd.xlane.f32.xlu1 %v1188_v22 }
 0x5f4   : > { %1192 = vadd.xlane.f32.xlu1 %v1191_v24 }
 0x679   : > { %v1164_v34 = vpop.xlane.xlu0 %1163 }
 0x67a   : > { %6892 = vlog2.f32 %v1164_v34 }
 0x67b   : > { %6894 = vrcp.f32 %v1164_v34 }
 0x67d   : > { %v1190_v35 = vpop.xlane.xlu1 %1189  ;;  %v7329_v36 = vpop.xlane.xlu0 %1166 }
 0x67e   : > { %6896 = vrcp.f32 %v1190_v35 }
 0x67f   : > { %6898 = vlog2.f32 %v1190_v35 }
 0x680   : > { %6900 = vrcp.f32 %v7329_v36 }
 0x681   : > { %v7332_v37 = vpop.xlane.xlu1 %1192 }
 0x682   : > { %6902 = vrcp.f32 %v7332_v37 }
 0x684   : > { %v6893_v38 = vpop.eup %6892 }
 0x685   : > { %v6895_v39 = vpop.eup %6894  ;;  %v2140_v40 = vmul.f32 0.6931472, %v6893_v38 }
 0x686   : > { %v1170_v43 = vmul.f32 %v6895_v39, %v1160_v15 }
 0x687   : > { %v2143_v46 = vsub.f32 %v7287_v4, %v2140_v40 }
 0x688   : > { %v6897_v41 = vpop.eup %6896 }
 0x689   : > { %v6899_v42 = vpop.eup %6898  ;;  %v1196_v44 = vmul.f32 %v6897_v41, %v1186_v20  ;;  %v2145_v58 = vsel %vm7258_vm7, %v2143_v46, 0.0 }
 0x68a   : > { %v6901_v45 = vpop.eup %6900  ;;  %v2148_v47 = vmul.f32 0.6931472, %v6899_v42 }
 0x68b   : > { %v1198_v48 = vadd.f32 %v1196_v44, %v1170_v43  ;;  %v1171_v55 = vmul.f32 %v6901_v45, %v1161_v18 }
 0x68c   : > { %v6903_v49 = vpop.eup %6902  ;;  %v2151_v51 = vsub.f32 %v7295_v10, %v2148_v47 }
 0x68d   : > { %v7341_v52 = vsel %vm1200_vm9, %v7264_v56, %v1198_v48  ;;  %v1197_v57 = vmul.f32 %v6903_v49, %v1187_v23  ;;  %v5433_v56 = vld [vmem:[%s8434_s1 + $0x170] sm:$0xff]  ;;  %v5438_v48 = vld [vmem:[%s8434_s1 + $0x180] sm:$0xff]  ;;  %v5439_v49 = vld [vmem:[%s8434_s1 + $0x188] sm:$0xff] }
 0x68e   : > { %6046 = vmatprep.mubr.msk.f32.mxu0 %vm221_vm0, %v7341_v52  ;;  %v2153_v59 = vsel %vm1145_vm8, %v2151_v51, 0.0  ;;  %v6575_v0 = vpack.c.bf16 %v5434_v63, %v5433_v56  ;;  %v6580_v51 = vpack.c.bf16 %v5439_v49, %v5438_v48  ;;  %v5450_v56 = vld [vmem:[%s8434_s1 + $0x1c8] sm:$0xff] }
 0x68f   : > { %v1199_v60 = vadd.f32 %v1197_v57, %v1171_v55  ;;  %v7349_v61 = vadd.f32 %v2153_v59, %v2145_v58  ;;  %v7029_v55 = vmov 0.0|0.0   ;;  %v5440_v57 = vld [vmem:[%s8434_s1 + $0x190] sm:$0xff]  ;;  %v5441_v58 = vld [vmem:[%s8434_s1 + $0x198] sm:$0xff] }
 0x690   : > { %6576 = vmatprep.subr.bf16.mxu1 %v6575_v0  ;;  %6579 = vmatprep.subr.bf16.mxu0 %v7029_v55  ;;  %v6583_v59 = vpack.c.bf16 %v5441_v58, %v5440_v57 }
 0x691   : > { %v7354_v62 = vsel %vm1200_vm9, %v7262_v54, %v1199_v60  ;;  %6578 = vmatpush3.bf16.msra.mxu1 %v6575_v0  ;;  %v5449_v60 = vld [vmem:[%s8434_s1 + $0x1c0] sm:$0xff] }
 0x692   : > { %6047 = vmatmul.mubr.msk.f32.vlgmr.msra.gmra.mrb[6].mxu0 %vm221_vm0, %v7354_v62  ;;  %v6593_v63 = vpack.c.bf16 %v5450_v56, %v5449_v60  ;;  %v5443_v0 = vld [vmem:[%s8434_s1 + $0x1a0] sm:$0xff] }
 0x693   : > { %6581 = vmatpush3.bf16.msra.mxu0 %v6580_v51 }
 0x694   : > { %6582 = vmatprep.subr.bf16.mxu0 %v7029_v55 }
 0x697   : > { %6584 = vmatpush3.bf16.msra.mxu0 %v6583_v59 }
 0x698   : > { %6594 = vmatprep.subr.bf16.mxu0 %v6593_v63 }
 0x765   : > { %v6048_v54 = vpop.f32.mrb[6].mxu0 }
 0x766   : > { %v1291_v3 = vadd.f32 %v6048_v54, %v5428_v1  ;;  %v1285_v4 = vpop.f32.mrb[7].mxu0  ;;  %v7031_v54 = vmov 0.0  }
 0x767   : > { %v1286_v5 = vadd.f32 %v5428_v1, %v1285_v4  ;;  %v5444_v1 = vld [vmem:[%s8434_s1 + $0x1a8] sm:$0xff]  ;;  %6068 = vmatprep.mubr.msk.f32.mxu0 %vm7030_vm10, %v7031_v54 }
 0x768   : > { %v1295_v7 = vmax.f32 %v1291_v3, 0.0  ;;  %v7463_v3 = vld [vmem:[%s8435_s2 + $0x10] sm:$0xff]  ;;  %v6585_v4 = vpack.c.bf16 %v5444_v1, %v5443_v0 }
 0x769   : > { %v1294_v6 = vmax.f32 %v1286_v5, 0.0  ;;  %6069 = vmatmul.mubr.msk.f32.vlgmr.msra.gmra.mrb[8].mxu0 %vm221_vm0, %v7463_v3  ;;  %v5451_v5 = vld [vmem:[%s8434_s1 + $0x1d0] sm:$0xff] }
 0x76a   : > { %6596 = vmatpush3.bf16.msra.mxu0 %v6593_v63  ;;  %6586 = vmatprep.subr.bf16.mxu1 %v6585_v4 }
 0x76b   : > { %6057 = vmatprep.mubr.msk.f32.mxu1 %vm221_vm0, %v1294_v6  ;;  %v5452_v6 = vld [vmem:[%s8434_s1 + $0x1d8] sm:$0xff] }
 0x76c   : > { %6058 = vmatmul.mubr.msk.f32.vlgmr.msra.gmra.mrb[6].mxu1 %vm221_vm0, %v1295_v7  ;;  %v6597_v7 = vpack.c.bf16 %v5452_v6, %v5451_v5 }
 0x76d   : > { %6588 = vmatpush3.bf16.msra.mxu1 %v6585_v4 }
 0x76e   : > { %6598 = vmatprep.subr.bf16.mxu0 %v6597_v7 }
 0x76f   : > { %6600 = vmatpush3.bf16.msra.mxu0 %v6597_v7 }
 0x770   : > { %6614 = vmatprep.subr.bf16.mxu0 %v7029_v55 }
 0x83f   : > { %v6059_v10 = vpop.f32.mrb[6].mxu1 }
 0x840   : > { %v1378_v11 = vpop.f32.mrb[7].mxu1  ;;  %v7372_v12 = vadd.f32 %v6059_v10, %v5435_v9  ;;  %v5446_v10 = vld [vmem:[%s8434_s1 + $0x1b8] sm:$0xff] }
 0x841   : > { %v7374_v13 = vadd.f32 %v5435_v9, %v1378_v11  ;;  %v5445_v9 = vld [vmem:[%s8434_s1 + $0x1b0] sm:$0xff] }
 0x842   : > { %v1414_v18 = vsel %vm1145_vm8, %v7372_v12, -1e+30  ;;  %v1388_v19 = vsel %vm7258_vm7, %v7372_v12, -1e+30  ;;  %v6589_v11 = vpack.c.bf16 %v5446_v10, %v5445_v9  ;;  %v5459_v9 = vld [vmem:[%s8434_s1 + $0x1e0] sm:$0xff]  ;;  %v5460_v10 = vld [vmem:[%s8434_s1 + $0x1e8] sm:$0xff] }
 0x843   : > { %v1413_v14 = vsel %vm1145_vm8, %v7374_v13, -1e+30  ;;  %v1387_v15 = vsel %vm7258_vm7, %v7374_v13, -1e+30  ;;  %v1418_v20 = vsel %vm221_vm0, %v1414_v18, -inf  ;;  %v1392_v21 = vsel %vm221_vm0, %v1388_v19, -inf }
 0x844   : > { %v1415_v16 = vsel %vm221_vm0, %v1413_v14, -inf  ;;  %v1389_v17 = vsel %vm221_vm0, %v1387_v15, -inf  ;;  %6590 = vmatprep.subr.bf16.mxu1 %v6589_v11 }
 0x845   : > { %1416 = vmax.xlane.f32.xlu1 %v1415_v16  ;;  %1390 = vmax.xlane.f32.xlu0 %v1389_v17 }
 0x846   : > { %6592 = vmatpush3.bf16.msra.mxu1 %v6589_v11 }
 0x847   : > { %6601 = vmatprep.subr.bf16.mxu1 %v7029_v55 }
 0x849   : > { %1419 = vmax.xlane.f32.xlu1 %v1418_v20  ;;  %1393 = vmax.xlane.f32.xlu0 %v1392_v21 }
 0x8d2   : > { %v1417_v22 = vpop.xlane.xlu1 %1416  ;;  %v1391_v23 = vpop.xlane.xlu0 %1390 }
 0x8d3   : > { %v7393_v24 = vsub.f32 %v7374_v13, %v1417_v22  ;;  %v7396_v25 = vsub.f32 %v7374_v13, %v1391_v23 }
 0x8d5   : > { %v1423_v26 = vmul.f32 1.442695, %v7393_v24  ;;  %v1397_v27 = vmul.f32 1.442695, %v7396_v25 }
 0x8d6   : > { %v1420_v28 = vpop.xlane.xlu1 %1419  ;;  %v1394_v29 = vpop.xlane.xlu0 %1393 }
 0x8d7   : > { %6904 = vpow2.f32 %v1423_v26  ;;  %v7401_v30 = vsub.f32 %v7372_v12, %v1420_v28  ;;  %v7404_v31 = vsub.f32 %v7372_v12, %v1394_v29 }
 0x8d8   : > { %6906 = vpow2.f32 %v1397_v27 }
 0x8d9   : > { %v1425_v32 = vmul.f32 1.442695, %v7401_v30  ;;  %v1399_v33 = vmul.f32 1.442695, %v7404_v31 }
 0x8db   : > { %6908 = vpow2.f32 %v1425_v32  ;;  %v7493_v32 = vld [vmem:[%s8435_s2] sm:$0xff] }
 0x8dc   : > { %6910 = vpow2.f32 %v1399_v33 }
 0x8e1   : > { %v6905_v34 = vpop.eup %6904 }
 0x8e2   : > { %v6907_v35 = vpop.eup %6906  ;;  %v7410_v38 = vsel %vm1145_vm8, %v6905_v34, 0.0 }
 0x8e3   : > { %v1429_v39 = vsel %vm221_vm0, %v7410_v38, 0.0  ;;  %v7416_v40 = vsel %vm7258_vm7, %v6907_v35, 0.0 }
 0x8e4   : > { %1430 = vadd.xlane.f32.xlu1 %v1429_v39  ;;  %v1403_v41 = vsel %vm221_vm0, %v7416_v40, 0.0 }
 0x8e5   : > { %v6909_v42 = vpop.eup %6908  ;;  %1404 = vadd.xlane.f32.xlu0 %v1403_v41 }
 0x8e6   : > { %v6911_v43 = vpop.eup %6910  ;;  %v7422_v44 = vsel %vm1145_vm8, %v6909_v42, 0.0 }
 0x8e7   : > { %v1432_v45 = vsel %vm221_vm0, %v7422_v44, 0.0  ;;  %v7428_v46 = vsel %vm7258_vm7, %v6911_v43, 0.0 }
 0x8e8   : > { %1433 = vadd.xlane.f32.xlu1 %v1432_v45  ;;  %v1406_v47 = vsel %vm221_vm0, %v7428_v46, 0.0 }
 0x8e9   : > { %1407 = vadd.xlane.f32.xlu0 %v1406_v47 }
 0x971   : > { %v1431_v14 = vpop.xlane.xlu1 %1430 }
 0x972   : > { %6912 = vrcp.f32 %v1431_v14  ;;  %v1405_v15 = vpop.xlane.xlu0 %1404 }
 0x973   : > { %6914 = vlog2.f32 %v1431_v14  ;;  %v6609_v14 = vpack.c.bf16 %v5460_v10, %v5459_v9 }
 0x974   : > { %6916 = vrcp.f32 %v1405_v15 }
 0x975   : > { %6918 = vlog2.f32 %v1405_v15  ;;  %v7481_v16 = vpop.xlane.xlu1 %1433 }
 0x976   : > { %6920 = vrcp.f32 %v7481_v16  ;;  %v7484_v17 = vpop.xlane.xlu0 %1407 }
 0x977   : > { %6922 = vrcp.f32 %v7484_v17 }
 0x97c   : > { %v6913_v18 = vpop.eup %6912 }
 0x97d   : > { %v6915_v19 = vpop.eup %6914  ;;  %v1437_v20 = vmul.f32 %v6913_v18, %v7410_v38  ;;  %v5461_v18 = vld [vmem:[%s8434_s1 + $0x1f0] sm:$0xff] }
 0x97e   : > { %v6917_v21 = vpop.eup %6916  ;;  %v2247_v22 = vmul.f32 0.6931472, %v6915_v19  ;;  %v5462_v19 = vld [vmem:[%s8434_s1 + $0x1f8] sm:$0xff] }
 0x97f   : > { %v6919_v23 = vpop.eup %6918  ;;  %v1411_v26 = vmul.f32 %v6917_v21, %v7416_v40  ;;  %v5464_v21 = vld [vmem:[%s8434_s1 + $0x200] sm:$0xff] }
 0x980   : > { %v6921_v27 = vpop.eup %6920  ;;  %v2250_v28 = vsub.f32 %v7393_v24, %v2247_v22  ;;  %v2239_v29 = vmul.f32 0.6931472, %v6919_v23  ;;  %v5465_v22 = vld [vmem:[%s8434_s1 + $0x208] sm:$0xff]  ;;  %v5466_v23 = vld [vmem:[%s8434_s1 + $0x210] sm:$0xff] }
 0x981   : > { %v1439_v33 = vadd.f32 %v1437_v20, %v1411_v26  ;;  %v1438_v34 = vmul.f32 %v6921_v27, %v7422_v44  ;;  %v6923_v35 = vpop.eup %6922  ;;  %v6612_v20 = vpack.c.bf16 %v5462_v19, %v5461_v18  ;;  %v6615_v26 = vpack.c.bf16 %v5465_v22, %v5464_v21  ;;  %v5467_v27 = vld [vmem:[%s8434_s1 + $0x218] sm:$0xff] }
 0x982   : > { %v2242_v38 = vsub.f32 %v7396_v25, %v2239_v29  ;;  %v2252_v39 = vsel %vm1145_vm8, %v2250_v28, 0.0  ;;  %v1412_v24 = vmul.f32 %v6923_v35, %v7428_v46  ;;  %v7510_v25 = vld [vmem:[%s8435_s2 + $0x8] sm:$0xff]  ;;  %v1520_v46 = vpop.f32.mrb[8].mxu0  ;;  %v6618_v28 = vpack.c.bf16 %v5467_v27, %v5466_v23 }
 0x983   : > { %v1441_v40 = vsel %vm1200_vm9, %v7374_v13, %v1439_v33  ;;  %v6070_v47 = vpop.f32.mrb[9].mxu0  ;;  %v204_v35 = vld [vmem:[%s8436_s3 + $0x8] sm:$0xff] }
 0x984   : > { %v1444_v41 = vadd.f32 %v1441_v40, %v7493_v32  ;;  %6090 = vmatprep.mubr.msk.f32.mxu0 %vm221_vm0, %v1441_v40  ;;  %v2244_v42 = vsel %vm7258_vm7, %v2242_v38, 0.0  ;;  %v1440_v43 = vadd.f32 %v1438_v34, %v1412_v24  ;;  %v203_v34 = vld [vmem:[%s8436_s3] sm:$0xff]  ;;  %v5471_v40 = vld [vmem:[%s8434_s1 + $0x228] sm:$0xff] }
 0x985   : > { %v7512_v44 = vadd.f32 %v2252_v39, %v2244_v42  ;;  %v7579_v38 = vpack.c.bf16 %v204_v35, %v203_v34  ;;  %v5470_v39 = vld [vmem:[%s8434_s1 + $0x220] sm:$0xff] }
 0x986   : > { %6079 = vmatprep.mubr.msk.f32.mxu1 %vm221_vm0, %v1444_v41  ;;  %v1442_v13 = vsel %vm1200_vm9, %v7372_v12, %v1440_v43  ;;  %v6621_v24 = vpack.c.bf16 %v5471_v40, %v5470_v39 }
 0x987   : > { %v1445_v45 = vadd.f32 %v1442_v13, %v7510_v25  ;;  %6091 = vmatmul.mubr.msk.f32.vlgmr.msra.gmra.mrb[10].mxu0 %vm221_vm0, %v1442_v13  ;;  %v205_v13 = vld [vmem:[%s8436_s3 + $0x10] sm:$0xff] }
 0x988   : > { %6126 = vmatprep.mubr.msk.f32.mxu0 %vm7030_vm10, %v7031_v54  ;;  %6616 = vmatpush3.bf16.msra.mxu0 %v6615_v26 }
 0x989   : > { %6080 = vmatmul.mubr.msk.f32.vlgmr.msra.gmra.mrb[8].mxu1 %vm221_vm0, %v1445_v45  ;;  %6617 = vmatprep.subr.bf16.mxu0 %v7029_v55  ;;  %v206_v45 = vld [vmem:[%s8436_s3 + $0x18] sm:$0xff] }
 0x98a   : > { %6097 = vmatprep.mubr.msk.f32.mxu1 %vm7030_vm10, %v7031_v54  ;;  %v7597_v47 = vpack.c.bf16 %v206_v45, %v205_v13 }
 0x98c   : > { %6619 = vmatpush3.bf16.msra.mxu0 %v6618_v28 }
 0x98d   : > { %6627 = vmatprep.subr.bf16.mxu0 %v7579_v38 }
 0xa5a   : > { %v6092_v48 = vpop.f32.mrb[10].mxu0 }
 0xa5b   : > { %v1687_v49 = vpop.f32.mrb[11].mxu0 }
 0xa5c   : > { %v6606_v51 = vpack.c.bf16 %v6092_v48, %v1687_v49  ;;  %v6081_v57 = vpop.f32.mrb[8].mxu1 }
 0xa5d   : > { %v1601_v58 = vpop.f32.mrb[9].mxu1 }
 0xa5e   : > { %v6602_v59 = vpack.c.bf16 %v6081_v57, %v1601_v58 }
 0xa60   : > { %6604 = vmatpush3.bf16.xpose.msk.msra.mxu1 %vm7527_vm11, %v6602_v59 }
 0xa61   : > { %6605 = vmatprep.subr.bf16.mxu1 %v7029_v55 }
 0xa67   : > { %6098 = vmatmul.mubr.msk.f32.vlgmr.msra.gmra.mrb[10].mxu1 %vm221_vm0, %v1520_v46 }
 0xa68   : > { %6607 = vmatpush3.bf16.msra.mxu1 %v6606_v51  ;;  %6104 = vmatprep.mubr.msk.f32.mxu1 %vm7030_vm10, %v7031_v54 }
 0xa69   : > { %6608 = vmatprep.subr.bf16.mxu1 %v7029_v55 }
 0xb3a   : > { %v1771_v60 = vpop.f32.mrb[10].mxu1 }
 0xb3b   : > { %v6099_v56 = vpop.f32.mrb[11].mxu1  ;;  %v1776_v63 = vsel %vm1775_vm12, %v1771_v60, -inf }
 0xb3c   : > { %1777 = vmax.xlane.f32.xlu0 %v1776_v63  ;;  %v5468_v56 = vld [vmem:[%s8435_s2 + $0x20] ss:$0 sm:$0xff] }
 0xbc9   : > { %v1778_v0 = vpop.xlane.xlu0 %1777 }
 0xbca   : > { %v1779_v1 = vsub.f32 %v1771_v60, %v1778_v0 }
 0xbcc   : > { %v1780_v4 = vmul.f32 1.442695, %v1779_v1 }
 0xbce   : > { %6924 = vpow2.f32 %v1780_v4 }
 0xbd8   : > { %v6925_v5 = vpop.eup %6924 }
 0xbd9   : > { %v1782_v6 = vsel %vm1775_vm12, %v6925_v5, 0.0 }
 0xbda   : > { %1783 = vadd.xlane.f32.xlu1 %v1782_v6 }
 0xc67   : > { %v1784_v7 = vpop.xlane.xlu1 %1783 }
 0xc68   : > { %6926 = vrcp.f32 %v1784_v7 }
 0xc69   : > { %6928 = vlog2.f32 %v7332_v37 }
 0xc6a   : > { %6930 = vlog2.f32 %v7329_v36 }
 0xc6b   : > { %6932 = vlog2.f32 %v7481_v16  ;;  %v5481_v16 = vld [vmem:[%s8434_s1 + $0x240] sm:$0xff] }
 0xc6c   : > { %6934 = vlog2.f32 %v7484_v17  ;;  %v5482_v17 = vld [vmem:[%s8434_s1 + $0x248] sm:$0xff] }
 0xc72   : > { %v6927_v11 = vpop.eup %6926 }
 0xc73   : > { %v1786_v15 = vmul.f32 %v6927_v11, %v6925_v5  ;;  %v6929_v41 = vpop.eup %6928 }
 0xc74   : > { %v6931_v42 = vpop.eup %6930  ;;  %v2150_v43 = vmul.f32 0.6931472, %v6929_v41 }
 0xc75   : > { %6105 = vmatmul.mubr.msk.f32.vlgmr.msra.gmra.mrb[12].mxu1 %vm1775_vm12, %v1786_v15  ;;  %v2142_v46 = vmul.f32 0.6931472, %v6931_v42  ;;  %v6933_v59 = vpop.eup %6932  ;;  %v5484_v15 = vld [vmem:[%s8434_s1 + $0x258] sm:$0xff] }
 0xc76   : > { %6610 = vmatpush3.bf16.msra.mxu1 %v6609_v14  ;;  %6115 = vmatprep.mubr.msk.f32.mxu1 %vm7030_vm10, %v7031_v54  ;;  %v2152_v48 = vsub.f32 %v7292_v8, %v2150_v43  ;;  %v6935_v60 = vpop.eup %6934  ;;  %v2249_v63 = vmul.f32 0.6931472, %v6933_v59  ;;  %v5483_v14 = vld [vmem:[%s8434_s1 + $0x250] sm:$0xff]  ;;  %v5496_v59 = vld [vmem:[%s8434_s1 + $0x288] sm:$0xff] }
 0xc77   : > { %6611 = vmatprep.subr.bf16.mxu1 %v7029_v55  ;;  %v2144_v36 = vsub.f32 %v7284_v2, %v2142_v46  ;;  %v5472_v2 = vld [vmem:[%s8434_s1 + $0x230] sm:$0xff]  ;;  %v2241_v0 = vmul.f32 0.6931472, %v6935_v60  ;;  %v6652_v19 = vpack.c.bf16 %v5484_v15, %v5483_v14 }
 0xc78   : > { %v2154_v51 = vsel %vm1145_vm8, %v2152_v48, 0.0  ;;  %v2251_v7 = vsub.f32 %v7401_v30, %v2249_v63  ;;  %v6648_v30 = vpack.c.bf16 %v5482_v17, %v5481_v16  ;;  %v5361_v63 = vld [vmem:[%s8436_s3 + $0x38] sm:$0xff] }
 0xc79   : > { %v2146_v8 = vsel %vm7258_vm7, %v2144_v36, 0.0  ;;  %v2243_v9 = vsub.f32 %v7404_v31, %v2241_v0 }
 0xc7a   : > { %6613 = vmatpush3.bf16.msra.mxu1 %v6612_v20  ;;  %v2156_v57 = vadd.f32 %v2154_v51, %v2146_v8  ;;  %v2253_v31 = vsel %vm1145_vm8, %v2251_v7, 0.0  ;;  %v5474_v20 = vld [vmem:[%s8435_s2 + $0x21] ss:$0 sm:$0xff]  ;;  %v5489_v7 = vld [vmem:[%s8434_s1 + $0x268] sm:$0xff] }
 0xc7b   : > { %6620 = vmatprep.subr.bf16.mxu1 %v7029_v55  ;;  %v2245_v10 = vsel %vm7258_vm7, %v2243_v9, 0.0 }
 0xc7c   : > { %v2255_v18 = vadd.f32 %v2253_v31, %v2245_v10 }
 0xd48   : > { %v1856_v29 = vpop.f32.mrb[12].mxu1 }
 0xd49   : > { %v6106_v33 = vpop.f32.mrb[13].mxu1  ;;  %6116 = vmatmul.mubr.msk.f32.vlgmr.msra.gmra.mrb[14].mxu1 %vm221_vm0, %v1856_v29 }
 0xd4a   : > { %6137 = vmatprep.mubr.msk.f32.mxu1 %vm7030_vm10, %v7031_v54  ;;  %6622 = vmatpush3.bf16.msra.mxu1 %v6621_v24 }
 0xd4b   : > { %6623 = vmatprep.subr.bf16.mxu1 %v7029_v55 }
 0xe1c   : > { %v7600_v49 = vpop.f32.mrb[14].mxu1 }
 0xe1d   : > { %v6117_v37 = vpop.f32.mrb[15].mxu1  ;;  %6127 = vmatmul.mubr.msk.f32.vlgmr.msra.gmra.mrb[12].mxu0 %vm221_vm0, %v7600_v49 }
 0xe1e   : > { %6629 = vmatpush3.bf16.msra.mxu0 %v7579_v38  ;;  %6148 = vmatprep.mubr.msk.f32.mxu0 %vm221_vm0, %v7349_v61  ;;  %v5473_v61 = vld [vmem:[%s8434_s1 + $0x238] sm:$0xff] }
 0xe1f   : > { %6631 = vmatprep.subr.bf16.mxu0 %v7597_v47  ;;  %v6624_v58 = vpack.c.bf16 %v5473_v61, %v5472_v2  ;;  %v5359_v2 = vld [vmem:[%s8436_s3 + $0x28] sm:$0xff] }
 0xe21   : > { %6625 = vmatpush3.bf16.msra.mxu1 %v6624_v58  ;;  %v5495_v58 = vld [vmem:[%s8434_s1 + $0x280] sm:$0xff] }
 0xe22   : > { %6633 = vmatpush3.bf16.msra.mxu0 %v7597_v47  ;;  %6635 = vmatprep.subr.bf16.mxu1 %v7579_v38  ;;  %v6665_v60 = vpack.c.bf16 %v5496_v59, %v5495_v58 }
 0xe23   : > { %6642 = vmatprep.subr.bf16.mxu0 %v7029_v55 }
 0xe25   : > { %6149 = vmatmul.mubr.msk.f32.vlgmr.msra.gmra.mrb[14].mxu0 %vm221_vm0, %v2156_v57  ;;  %v5358_v57 = vld [vmem:[%s8436_s3 + $0x20] sm:$0xff] }
 0xe26   : > { %6170 = vmatprep.mubr.msk.f32.mxu0 %vm7030_vm10, %v7031_v54  ;;  %v7707_v61 = vpack.c.bf16 %v5359_v2, %v5358_v57 }
 0xe28   : > { %6644 = vmatpush3.bf16.msra.mxu0 %v7707_v61 }
 0xe29   : > { %6645 = vmatprep.subr.bf16.mxu0 %v7029_v55 }
 0xef0   : > { %v2017_v1 = vpop.f32.mrb[12].mxu0 }
 0xef1   : > { %v2018_v4 = vadd.f32 %v5468_v56, %v2017_v1  ;;  %v6128_v5 = vpop.f32.mrb[13].mxu0  ;;  %v5360_v56 = vld [vmem:[%s8436_s3 + $0x30] sm:$0xff] }
 0xef2   : > { %v7723_v0 = vpack.c.bf16 %v5361_v63, %v5360_v56  ;;  %v5497_v1 = vld [vmem:[%s8434_s1 + $0x290] sm:$0xff] }
 0xef3   : > { %v2021_v6 = vmax.f32 %v2018_v4, 0.0  ;;  %v5498_v4 = vld [vmem:[%s8434_s1 + $0x298] sm:$0xff] }
 0xef4   : > { %v6668_v5 = vpack.c.bf16 %v5498_v4, %v5497_v1  ;;  %6647 = vmatpush3.bf16.msra.mxu0 %v7723_v0 }
 0xef5   : > { %6138 = vmatmul.mubr.msk.f32.vlgmr.msra.gmra.mrb[16].mxu1 %vm221_vm0, %v2021_v6  ;;  %v5488_v6 = vld [vmem:[%s8434_s1 + $0x260] sm:$0xff] }
 0xef6   : > { %6637 = vmatpush3.bf16.msra.mxu1 %v7579_v38  ;;  %6159 = vmatprep.mubr.msk.f32.mxu1 %vm221_vm0, %v7512_v44  ;;  %v6656_v9 = vpack.c.bf16 %v5489_v7, %v5488_v6 }
 0xef7   : > { %6639 = vmatprep.subr.bf16.mxu1 %v7597_v47 }
 0xef8   : > { %v7647_v11 = vpop.f32.mrb[14].mxu0  ;;  %6657 = vmatprep.subr.bf16.mxu0 %v6656_v9 }
 0xef9   : > { %v7655_v44 = vpop.f32.mrb[15].mxu0 }
 0xefa   : > { %6641 = vmatpush3.bf16.msra.mxu1 %v7597_v47 }
 0xefb   : > { %6649 = vmatprep.subr.bf16.mxu1 %v6648_v30 }
 0xefd   : > { %6160 = vmatmul.mubr.msk.f32.vlgmr.msra.gmra.mrb[18].mxu1 %vm221_vm0, %v2255_v18 }
 0xefe   : > { %6651 = vmatpush3.bf16.msra.mxu1 %v6648_v30  ;;  %6181 = vmatprep.mubr.msk.f32.mxu1 %vm221_vm0, %v7341_v52 }
 0xeff   : > { %6653 = vmatprep.subr.bf16.mxu1 %v6652_v19 }
 0xf02   : > { %6655 = vmatpush3.bf16.msra.mxu1 %v6652_v19  ;;  %v5485_v19 = vld [vmem:[%s8435_s2 + $0x22] ss:$0 sm:$0xff] }
 0xf03   : > { %6664 = vmatprep.subr.bf16.mxu1 %v7029_v55 }
 0xf05   : > { %6182 = vmatmul.mubr.msk.f32.vlgmr.msra.gmra.mrb[20].mxu1 %vm221_vm0, %v7354_v62 }
 0xf06   : > { %6203 = vmatprep.mubr.msk.f32.mxu1 %vm7030_vm10, %v7031_v54  ;;  %6666 = vmatpush3.bf16.msra.mxu1 %v6665_v60 }
 0xf07   : > { %6667 = vmatprep.subr.bf16.mxu1 %v7029_v55 }
 0xf0a   : > { %6669 = vmatpush3.bf16.msra.mxu1 %v6668_v5 }
 0xfc8   : > { %v2101_v21 = vpop.f32.mrb[16].mxu1 }
 0xfc9   : > { %v2102_v22 = vadd.f32 %v5474_v20, %v2101_v21  ;;  %v6139_v23 = vpop.f32.mrb[17].mxu1 }
 0xfcb   : > { %v7677_v27 = vadd.f32 %v2102_v22, %v7600_v49 }
 0xfcd   : > { %v2123_v28 = vsel %vm2109_vm15, %v7677_v27, -1e+30  ;;  %v2110_v29 = vsel %vm7672_vm5, %v7677_v27, -1e+30 }
 0xfce   : > { %v2124_v33 = vsel %vm221_vm0, %v2123_v28, -inf  ;;  %v2111_v34 = vsel %vm221_vm0, %v2110_v29, -inf }
 0xfcf   : > { %2125 = vmax.xlane.f32.xlu1 %v2124_v33  ;;  %2112 = vmax.xlane.f32.xlu0 %v2111_v34  ;;  %v5490_v34 = vld [vmem:[%s8434_s1 + $0x270] sm:$0xff] }
 0xfd0   : > { %v7687_v35 = vpop.f32.mrb[18].mxu1 }
 0xfd1   : > { %v7689_v39 = vpop.f32.mrb[19].mxu1 }
 0xfd8   : > { %v7691_v40 = vpop.f32.mrb[20].mxu1 }
 0xfd9   : > { %v2495_v24 = vpop.f32.mrb[21].mxu1 }
 0xfda   : > { %v2496_v28 = vadd.f32 %v5485_v19, %v2495_v24 }
0x105c   : > { %v2126_v41 = vpop.xlane.xlu1 %2125  ;;  %v2113_v42 = vpop.xlane.xlu0 %2112 }
0x105d   : > { %v2127_v43 = vsub.f32 %v7677_v27, %v2126_v41  ;;  %v2114_v13 = vsub.f32 %v7677_v27, %v2113_v42  ;;  %v5491_v41 = vld [vmem:[%s8434_s1 + $0x278] sm:$0xff] }
0x105f   : > { %v2128_v45 = vmul.f32 1.442695, %v2127_v43  ;;  %v2115_v46 = vmul.f32 1.442695, %v2114_v13 }
0x1061   : > { %6936 = vpow2.f32 %v2128_v45  ;;  %v6660_v45 = vpack.c.bf16 %v5491_v41, %v5490_v34 }
0x1062   : > { %6938 = vpow2.f32 %v2115_v46  ;;  %v2504_v46 = vmax.f32 %v2496_v28, 0.0 }
0x106b   : > { %v6937_v48 = vpop.eup %6936 }
0x106c   : > { %v6939_v49 = vpop.eup %6938  ;;  %v2130_v37 = vsel %vm2109_vm15, %v6937_v48, 0.0  ;;  %v2501_v48 = vadd.f32 %v7691_v40, %v5485_v19 }
0x106d   : > { %v2131_v36 = vsel %vm221_vm0, %v2130_v37, 0.0  ;;  %v2117_v51 = vsel %vm7672_vm5, %v6939_v49, 0.0 }
0x106e   : > { %2132 = vadd.xlane.f32.xlu1 %v2131_v36  ;;  %v2118_v8 = vsel %vm221_vm0, %v2117_v51, 0.0 }
0x106f   : > { %2119 = vadd.xlane.f32.xlu0 %v2118_v8 }
0x10fb   : > { %v2133_v16 = vpop.xlane.xlu1 %2132 }
0x10fc   : > { %6940 = vrcp.f32 %v2133_v16  ;;  %v2120_v17 = vpop.xlane.xlu0 %2119 }
0x10fd   : > { %6942 = vlog2.f32 %v2133_v16 }
0x10fe   : > { %6944 = vrcp.f32 %v2120_v17 }
0x10ff   : > { %6946 = vlog2.f32 %v2120_v17 }
0x1106   : > { %v6941_v30 = vpop.eup %6940 }
0x1107   : > { %v6943_v31 = vpop.eup %6942  ;;  %v2135_v10 = vmul.f32 %v6941_v30, %v2130_v37 }
0x1108   : > { %v6945_v14 = vpop.eup %6944  ;;  %v2342_v15 = vmul.f32 0.6931472, %v6943_v31 }
0x1109   : > { %v6947_v18 = vpop.eup %6946  ;;  %v2122_v20 = vmul.f32 %v6945_v14, %v2117_v51  ;;  %v5492_v51 = vld [vmem:[%s8435_s2 + $0x23] ss:$0 sm:$0xff] }
0x110a   : > { %v2343_v21 = vsub.f32 %v2127_v43, %v2342_v15  ;;  %v2338_v22 = vmul.f32 0.6931472, %v6947_v18 }
0x110b   : > { %v2136_v23 = vadd.f32 %v2135_v10, %v2122_v20 }
0x110c   : > { %v2344_v29 = vsel %vm2109_vm15, %v2343_v21, 0.0  ;;  %v2339_v33 = vsub.f32 %v2114_v13, %v2338_v22 }
0x110d   : > { %v7754_v42 = vsel %vm2137_vm6, %v7677_v27, %v2136_v23  ;;  %v2505_v27 = vmax.f32 %v2501_v48, 0.0 }
0x110e   : > { %v2340_v24 = vsel %vm7672_vm5, %v2339_v33, 0.0  ;;  %v2653_v43 = vadd.f32 %v7754_v42, %v7463_v3 }
0x110f   : > { %v2345_v13 = vadd.f32 %v2344_v29, %v2340_v24 }
0x1110   : > { %6204 = vmatmul.mubr.msk.f32.vlgmr.msra.gmra.mrb[22].mxu1 %vm221_vm0, %v2653_v43 }
0x1111   : > { %6171 = vmatmul.mubr.msk.f32.vlgmr.msra.gmra.mrb[16].mxu0 %vm221_vm0, %v2345_v13 }
0x1112   : > { %6659 = vmatpush3.bf16.msra.mxu0 %v6656_v9  ;;  %6192 = vmatprep.mubr.msk.f32.mxu0 %vm221_vm0, %v2504_v46  ;;  %v5507_v46 = vld [vmem:[%s8434_s1 + $0x2c8] sm:$0xff] }
0x1113   : > { %6661 = vmatprep.subr.bf16.mxu0 %v6660_v45 }
0x1116   : > { %6663 = vmatpush3.bf16.msra.mxu0 %v6660_v45  ;;  %v5506_v45 = vld [vmem:[%s8434_s1 + $0x2c0] sm:$0xff] }
0x1117   : > { %v6678_v48 = vpack.c.bf16 %v5507_v46, %v5506_v45 }
0x1119   : > { %6193 = vmatmul.mubr.msk.f32.vlgmr.msra.gmra.mrb[18].mxu0 %vm221_vm0, %v2505_v27  ;;  %v5500_v27 = vld [vmem:[%s8434_s1 + $0x2a0] sm:$0xff]  ;;  %6679 = vmatprep.subr.bf16.mxu1 %v6678_v48 }
0x111a   : > { %6681 = vmatpush3.bf16.msra.mxu1 %v6678_v48 }
0x11e3   : > { %v7765_v49 = vpop.f32.mrb[22].mxu1 }
0x11e4   : > { %v7767_v3 = vpop.f32.mrb[16].mxu0  ;;  %v6205_v37 = vpop.f32.mrb[23].mxu1 }
0x11e5   : > { %v6172_v36 = vpop.f32.mrb[17].mxu0  ;;  %v5501_v37 = vld [vmem:[%s8434_s1 + $0x2a8] sm:$0xff] }
0x11e6   : > { %v6670_v36 = vpack.c.bf16 %v5501_v37, %v5500_v27 }
0x11e8   : > { %6671 = vmatprep.subr.bf16.mxu0 %v6670_v36 }
0x11e9   : > { %6673 = vmatpush3.bf16.msra.mxu0 %v6670_v36 }
0x11ec   : > { %v6194_v8 = vpop.f32.mrb[18].mxu0 }
0x11ed   : > { %v2588_v57 = vpop.f32.mrb[19].mxu0  ;;  %v7772_v2 = vadd.f32 %v6194_v8, %v5492_v51  ;;  %v5509_v8 = vld [vmem:[%s8434_s1 + $0x2d8] sm:$0xff] }
0x11ee   : > { %v7774_v40 = vadd.f32 %v5492_v51, %v2588_v57  ;;  %v5508_v51 = vld [vmem:[%s8434_s1 + $0x2d0] sm:$0xff] }
0x11ef   : > { %v2624_v63 = vsel %vm1145_vm8, %v7772_v2, -1e+30  ;;  %v2598_v1 = vsel %vm7258_vm7, %v7772_v2, -1e+30  ;;  %v6682_v57 = vpack.c.bf16 %v5509_v8, %v5508_v51 }
0x11f0   : > { %v2623_v58 = vsel %vm1145_vm8, %v7774_v40, -1e+30  ;;  %v2597_v59 = vsel %vm7258_vm7, %v7774_v40, -1e+30  ;;  %v2628_v4 = vsel %vm221_vm0, %v2624_v63, -inf  ;;  %v2602_v5 = vsel %vm221_vm0, %v2598_v1, -inf }
0x11f1   : > { %v2625_v60 = vsel %vm221_vm0, %v2623_v58, -inf  ;;  %v2599_v56 = vsel %vm221_vm0, %v2597_v59, -inf  ;;  %v5502_v58 = vld [vmem:[%s8434_s1 + $0x2b0] sm:$0xff]  ;;  %v5503_v59 = vld [vmem:[%s8434_s1 + $0x2b8] sm:$0xff]  ;;  %6683 = vmatprep.subr.bf16.mxu1 %v6682_v57 }
0x11f2   : > { %2626 = vmax.xlane.f32.xlu1 %v2625_v60  ;;  %2600 = vmax.xlane.f32.xlu0 %v2599_v56  ;;  %v6674_v60 = vpack.c.bf16 %v5503_v59, %v5502_v58  ;;  %v5517_v58 = vld [vmem:[%s8434_s1 + $0x2e8] sm:$0xff]  ;;  %v5518_v59 = vld [vmem:[%s8434_s1 + $0x2f0] sm:$0xff] }
0x11f3   : > { %6685 = vmatpush3.bf16.msra.mxu1 %v6682_v57 }
0x11f4   : > { %6675 = vmatprep.subr.bf16.mxu0 %v6674_v60  ;;  %6690 = vmatprep.subr.bf16.mxu1 %v7029_v55 }
0x11f5   : > { %6677 = vmatpush3.bf16.msra.mxu0 %v6674_v60 }
0x11f6   : > { %2629 = vmax.xlane.f32.xlu1 %v2628_v4  ;;  %2603 = vmax.xlane.f32.xlu0 %v2602_v5 }
0x11f7   : > { %6686 = vmatprep.subr.bf16.mxu0 %v7029_v55 }
0x127f   : > { %v2627_v6 = vpop.xlane.xlu1 %2626  ;;  %v2601_v7 = vpop.xlane.xlu0 %2600 }
0x1280   : > { %v7793_v9 = vsub.f32 %v7774_v40, %v2627_v6  ;;  %v7796_v16 = vsub.f32 %v7774_v40, %v2601_v7 }
0x1282   : > { %v2633_v17 = vmul.f32 1.442695, %v7793_v9  ;;  %v2607_v30 = vmul.f32 1.442695, %v7796_v16 }
0x1283   : > { %v2630_v31 = vpop.xlane.xlu1 %2629  ;;  %v2604_v10 = vpop.xlane.xlu0 %2603 }
0x1284   : > { %6948 = vpow2.f32 %v2633_v17  ;;  %v7801_v14 = vsub.f32 %v7772_v2, %v2630_v31  ;;  %v7804_v15 = vsub.f32 %v7772_v2, %v2604_v10 }
0x1285   : > { %6950 = vpow2.f32 %v2607_v30 }
0x1286   : > { %v2635_v18 = vmul.f32 1.442695, %v7801_v14  ;;  %v2609_v19 = vmul.f32 1.442695, %v7804_v15 }
0x1288   : > { %6952 = vpow2.f32 %v2635_v18 }
0x1289   : > { %6954 = vpow2.f32 %v2609_v19 }
0x128e   : > { %v6949_v20 = vpop.eup %6948 }
0x128f   : > { %v6951_v21 = vpop.eup %6950  ;;  %v2637_v22 = vsel %vm1145_vm8, %v6949_v20, 0.0 }
0x1290   : > { %v2639_v23 = vsel %vm221_vm0, %v2637_v22, 0.0  ;;  %v2611_v28 = vsel %vm7258_vm7, %v6951_v21, 0.0 }
0x1291   : > { %2640 = vadd.xlane.f32.xlu1 %v2639_v23  ;;  %v2613_v29 = vsel %vm221_vm0, %v2611_v28, 0.0 }
0x1292   : > { %v6953_v33 = vpop.eup %6952  ;;  %2614 = vadd.xlane.f32.xlu0 %v2613_v29 }
0x1293   : > { %v6955_v34 = vpop.eup %6954  ;;  %v2638_v41 = vsel %vm1145_vm8, %v6953_v33, 0.0 }
0x1294   : > { %v2642_v24 = vsel %vm221_vm0, %v2638_v41, 0.0  ;;  %v2612_v43 = vsel %vm7258_vm7, %v6955_v34, 0.0 }
0x1295   : > { %2643 = vadd.xlane.f32.xlu1 %v2642_v24  ;;  %v2616_v13 = vsel %vm221_vm0, %v2612_v43, 0.0 }
0x1296   : > { %2617 = vadd.xlane.f32.xlu0 %v2616_v13 }
0x131e   : > { %v2641_v56 = vpop.xlane.xlu1 %2640 }
0x131f   : > { %6956 = vrcp.f32 %v2641_v56  ;;  %v2615_v63 = vpop.xlane.xlu0 %2614 }
0x1320   : > { %6958 = vlog2.f32 %v2641_v56  ;;  %v5519_v56 = vld [vmem:[%s8434_s1 + $0x2f8] sm:$0xff] }
0x1321   : > { %6960 = vrcp.f32 %v2615_v63 }
0x1322   : > { %6962 = vlog2.f32 %v2615_v63  ;;  %v7846_v1 = vpop.xlane.xlu1 %2643  ;;  %v6697_v63 = vpack.c.bf16 %v5519_v56, %v5518_v59 }
0x1323   : > { %6964 = vrcp.f32 %v7846_v1  ;;  %v7849_v4 = vpop.xlane.xlu0 %2617 }
0x1324   : > { %6966 = vrcp.f32 %v7849_v4 }
0x1329   : > { %v6957_v5 = vpop.eup %6956 }
0x132a   : > { %v6959_v6 = vpop.eup %6958  ;;  %v2647_v7 = vmul.f32 %v6957_v5, %v2637_v22 }
0x132b   : > { %v6961_v17 = vpop.eup %6960  ;;  %v5027_v30 = vmul.f32 0.6931472, %v6959_v6 }
0x132c   : > { %v6963_v31 = vpop.eup %6962  ;;  %v2621_v10 = vmul.f32 %v6961_v17, %v2611_v28  ;;  %v5521_v17 = vld [vmem:[%s8434_s1 + $0x300] sm:$0xff] }
0x132d   : > { %v6965_v18 = vpop.eup %6964  ;;  %v5030_v19 = vsub.f32 %v7793_v9, %v5027_v30  ;;  %v5019_v20 = vmul.f32 0.6931472, %v6963_v31  ;;  %v5522_v30 = vld [vmem:[%s8434_s1 + $0x308] sm:$0xff]  ;;  %v5523_v31 = vld [vmem:[%s8434_s1 + $0x310] sm:$0xff] }
0x132e   : > { %v2649_v21 = vadd.f32 %v2647_v7, %v2621_v10  ;;  %v2648_v23 = vmul.f32 %v6965_v18, %v2638_v41  ;;  %v6967_v29 = vpop.eup %6966  ;;  %v6700_v10 = vpack.c.bf16 %v5522_v30, %v5521_v17  ;;  %v5524_v18 = vld [vmem:[%s8434_s1 + $0x318] sm:$0xff] }
0x132f   : > { %v5022_v33 = vsub.f32 %v7796_v16, %v5019_v20  ;;  %v5032_v34 = vsel %vm1145_vm8, %v5030_v19, 0.0  ;;  %v2622_v24 = vmul.f32 %v6967_v29, %v2612_v43  ;;  %v6703_v19 = vpack.c.bf16 %v5524_v18, %v5523_v31  ;;  %v5534_v29 = vld [vmem:[%s8434_s1 + $0x348] sm:$0xff] }
0x1330   : > { %v7859_v22 = vsel %vm1200_vm9, %v7774_v40, %v2649_v21 }
0x1331   : > { %v7863_v28 = vadd.f32 %v7859_v22, %v7493_v32  ;;  %6225 = vmatprep.mubr.msk.f32.mxu1 %vm221_vm0, %v7859_v22  ;;  %v5024_v9 = vsel %vm7258_vm7, %v5022_v33, 0.0  ;;  %v2650_v16 = vadd.f32 %v2648_v23, %v2622_v24  ;;  %v5533_v23 = vld [vmem:[%s8434_s1 + $0x340] sm:$0xff]  ;;  %v5528_v24 = vld [vmem:[%s8434_s1 + $0x328] sm:$0xff] }
0x1332   : > { %v7869_v41 = vadd.f32 %v5032_v34, %v5024_v9  ;;  %v6711_v33 = vpack.c.bf16 %v5534_v29, %v5533_v23  ;;  %v5527_v34 = vld [vmem:[%s8434_s1 + $0x320] sm:$0xff] }
0x1333   : > { %6214 = vmatprep.mubr.msk.f32.mxu0 %vm221_vm0, %v7863_v28  ;;  %v7876_v40 = vsel %vm1200_vm9, %v7772_v2, %v2650_v16  ;;  %v6706_v9 = vpack.c.bf16 %v5528_v24, %v5527_v34  ;;  %v5535_v16 = vld [vmem:[%s8434_s1 + $0x350] sm:$0xff]  ;;  %v5544_v34 = vld [vmem:[%s8434_s1 + $0x380] sm:$0xff]  ;;  %v5545_v24 = vld [vmem:[%s8434_s1 + $0x388] sm:$0xff] }
0x1334   : > { %v7880_v32 = vadd.f32 %v7876_v40, %v7510_v25  ;;  %6226 = vmatmul.mubr.msk.f32.vlgmr.msra.gmra.mrb[24].mxu1 %vm221_vm0, %v7876_v40 }
0x1335   : > { %6239 = vmatprep.mubr.msk.f32.mxu1 %vm7030_vm10, %v7031_v54 }
0x1336   : > { %6215 = vmatmul.mubr.msk.f32.vlgmr.msra.gmra.mrb[20].mxu0 %vm221_vm0, %v7880_v32 }
0x1337   : > { %6232 = vmatprep.mubr.msk.f32.mxu0 %vm7030_vm10, %v7031_v54 }
0x1407   : > { %v6227_v43 = vpop.f32.mrb[24].mxu1 }
0x1408   : > { %v2897_v13 = vpop.f32.mrb[25].mxu1 }
0x1409   : > { %v6691_v2 = vpack.c.bf16 %v6227_v43, %v2897_v13  ;;  %v6216_v45 = vpop.f32.mrb[20].mxu0  ;;  %v5536_v43 = vld [vmem:[%s8434_s1 + $0x358] sm:$0xff] }
0x140a   : > { %v2811_v46 = vpop.f32.mrb[21].mxu0 }
0x140b   : > { %v6687_v48 = vpack.c.bf16 %v6216_v45, %v2811_v46  ;;  %6692 = vmatpush3.bf16.msra.mxu1 %v6691_v2  ;;  %v6715_v46 = vpack.c.bf16 %v5536_v43, %v5535_v16  ;;  %v5539_v16 = vld [vmem:[%s8434_s1 + $0x360] sm:$0xff]  ;;  %v5540_v43 = vld [vmem:[%s8434_s1 + $0x368] sm:$0xff] }
0x140c   : > { %6699 = vmatprep.subr.bf16.mxu1 %v7029_v55 }
0x140d   : > { %6689 = vmatpush3.bf16.xpose.msk.msra.mxu0 %vm7527_vm11, %v6687_v48  ;;  %v5530_v48 = vld [vmem:[%s8434_s1 + $0x338] sm:$0xff]  ;;  %vm3665_vm11 = vcmask 64512  }
0x140e   : > { %6693 = vmatprep.subr.bf16.mxu0 %v7029_v55 }
0x1414   : > { %6233 = vmatmul.mubr.msk.f32.vlgmr.msra.gmra.mrb[22].mxu0 %vm221_vm0, %v7765_v49  ;;  %v5516_v49 = vld [vmem:[%s8434_s1 + $0x2e0] sm:$0xff] }
0x1415   : > { %6250 = vmatprep.mubr.msk.f32.mxu0 %vm7030_vm10, %v7031_v54  ;;  %v6694_v60 = vpack.c.bf16 %v5517_v58, %v5516_v49 }
0x1417   : > { %6695 = vmatpush3.bf16.msra.mxu0 %v6694_v60 }
0x1418   : > { %6696 = vmatprep.subr.bf16.mxu0 %v7029_v55 }
0x141b   : > { %6698 = vmatpush3.bf16.msra.mxu0 %v6697_v63 }
0x141c   : > { %6705 = vmatprep.subr.bf16.mxu0 %v7029_v55 }
0x14e7   : > { %v2981_v25 = vpop.f32.mrb[22].mxu0 }
0x14e8   : > { %v6234_v27 = vpop.f32.mrb[23].mxu0  ;;  %v2985_v37 = vsel %vm1775_vm12, %v2981_v25, -inf }
0x14e9   : > { %2986 = vmax.xlane.f32.xlu0 %v2985_v37 }
0x1576   : > { %v2987_v36 = vpop.xlane.xlu0 %2986 }
0x1577   : > { %v2988_v51 = vsub.f32 %v2981_v25, %v2987_v36 }
0x1579   : > { %v2989_v8 = vmul.f32 1.442695, %v2988_v51 }
0x157b   : > { %6968 = vpow2.f32 %v2989_v8 }
0x1585   : > { %v6969_v57 = vpop.eup %6968 }
0x1586   : > { %v2991_v12 = vsel %vm1775_vm12, %v6969_v57, 0.0 }
0x1587   : > { %2992 = vadd.xlane.f32.xlu1 %v2991_v12 }
0x1614   : > { %v2993_v5 = vpop.xlane.xlu1 %2992 }
0x1615   : > { %6970 = vrcp.f32 %v2993_v5 }
0x161f   : > { %v6971_v6 = vpop.eup %6970 }
0x1620   : > { %v7914_v7 = vmul.f32 %v6971_v6, %v6969_v57  ;;  %v5531_v57 = vld [vmem:[%s8435_s2 + $0x25] ss:$0 sm:$0xff] }
0x1622   : > { %6240 = vmatmul.mubr.msk.f32.vlgmr.msra.gmra.mrb[26].mxu1 %vm1775_vm12, %v7914_v7 }
0x1623   : > { %6261 = vmatprep.mubr.msk.f32.mxu1 %vm7030_vm10, %v7031_v54  ;;  %6701 = vmatpush3.bf16.msra.mxu1 %v6700_v10 }
0x1624   : > { %6702 = vmatprep.subr.bf16.mxu1 %v7029_v55 }
0x1627   : > { %6704 = vmatpush3.bf16.msra.mxu1 %v6703_v19 }
0x1628   : > { %6712 = vmatprep.subr.bf16.mxu1 %v6711_v33 }
0x16f5   : > { %v3065_v20 = vpop.f32.mrb[26].mxu1 }
0x16f6   : > { %v6241_v21 = vpop.f32.mrb[27].mxu1  ;;  %6251 = vmatmul.mubr.msk.f32.vlgmr.msra.gmra.mrb[24].mxu0 %vm221_vm0, %v3065_v20 }
0x16f7   : > { %6272 = vmatprep.mubr.msk.f32.mxu0 %vm7030_vm10, %v7031_v54  ;;  %6707 = vmatpush3.bf16.msra.mxu0 %v6706_v9  ;;  %v6726_v9 = vpack.c.bf16 %v5545_v24, %v5544_v34 }
0x16f8   : > { %6708 = vmatprep.subr.bf16.mxu0 %v7029_v55 }
0x17c9   : > { %v3143_v13 = vpop.f32.mrb[24].mxu0 }
0x17ca   : > { %v3147_v2 = vadd.f32 %v3143_v13, %v7754_v42  ;;  %v6252_v45 = vpop.f32.mrb[25].mxu0  ;;  %v5529_v42 = vld [vmem:[%s8434_s1 + $0x330] sm:$0xff]  ;;  %v6720_v13 = vpack.c.bf16 %v5540_v43, %v5539_v16  ;;  %v5565_v16 = vld [vmem:[%s8434_s1 + $0x3e8] sm:$0xff] }
0x17cb   : > { %v6709_v25 = vpack.c.bf16 %v5530_v48, %v5529_v42  ;;  %v5547_v45 = vld [vmem:[%s8434_s1 + $0x398] sm:$0xff]  ;;  %v5541_v42 = vld [vmem:[%s8434_s1 + $0x370] sm:$0xff] }
0x17cc   : > { %6262 = vmatmul.mubr.msk.f32.vlgmr.msra.gmra.mrb[28].mxu1 %vm221_vm0, %v3147_v2  ;;  %v5542_v48 = vld [vmem:[%s8434_s1 + $0x378] sm:$0xff] }
0x17cd   : > { %6714 = vmatpush3.bf16.msra.mxu1 %v6711_v33  ;;  %6283 = vmatprep.mubr.msk.f32.mxu1 %vm221_vm0, %v7863_v28  ;;  %v5525_v28 = vld [vmem:[%s8435_s2 + $0x24] ss:$0 sm:$0xff] }
0x17ce   : > { %6716 = vmatprep.subr.bf16.mxu1 %v6715_v46  ;;  %6710 = vmatpush3.bf16.msra.mxu0 %v6709_v25  ;;  %v6723_v25 = vpack.c.bf16 %v5542_v48, %v5541_v42  ;;  %v5557_v42 = vld [vmem:[%s8434_s1 + $0x3b8] sm:$0xff] }
0x17cf   : > { %6719 = vmatprep.subr.bf16.mxu0 %v7029_v55 }
0x17d1   : > { %6718 = vmatpush3.bf16.msra.mxu1 %v6715_v46 }
0x17d2   : > { %6725 = vmatprep.subr.bf16.mxu1 %v7029_v55 }
0x17d4   : > { %6284 = vmatmul.mubr.msk.f32.vlgmr.msra.gmra.mrb[30].mxu1 %vm221_vm0, %v7880_v32 }
0x17d5   : > { %6305 = vmatprep.mubr.msk.f32.mxu1 %vm7030_vm10, %v7031_v54  ;;  %6727 = vmatpush3.bf16.msra.mxu1 %v6726_v9  ;;  %v5564_v9 = vld [vmem:[%s8434_s1 + $0x3e0] sm:$0xff] }
0x17d6   : > { %6728 = vmatprep.subr.bf16.mxu1 %v7029_v55  ;;  %v6739_v43 = vpack.c.bf16 %v5565_v16, %v5564_v9  ;;  %v5592_v9 = vld [vmem:[%s8434_s1 + $0x460] sm:$0xff]  ;;  %v5593_v16 = vld [vmem:[%s8434_s1 + $0x468] sm:$0xff] }
0x189f   : > { %v3227_v32 = vpop.f32.mrb[28].mxu1 }
0x18a0   : > { %v3228_v27 = vadd.f32 %v5525_v28, %v3227_v32  ;;  %v6263_v37 = vpop.f32.mrb[29].mxu1 }
0x18a2   : > { %v3231_v36 = vmax.f32 %v3228_v27, 0.0 }
0x18a4   : > { %6273 = vmatmul.mubr.msk.f32.vlgmr.msra.gmra.mrb[26].mxu0 %vm221_vm0, %v3231_v36 }
0x18a5   : > { %6294 = vmatprep.mubr.msk.f32.mxu0 %vm7030_vm10, %v7031_v54  ;;  %6721 = vmatpush3.bf16.msra.mxu0 %v6720_v13  ;;  %v5554_v13 = vld [vmem:[%s8434_s1 + $0x3a0] sm:$0xff] }
0x18a6   : > { %6722 = vmatprep.subr.bf16.mxu0 %v7029_v55 }
0x18a7   : > { %v7977_v51 = vpop.f32.mrb[30].mxu1 }
0x18a8   : > { %v3416_v8 = vpop.f32.mrb[31].mxu1 }
0x18a9   : > { %6724 = vmatpush3.bf16.msra.mxu0 %v6723_v25 }
0x1977   : > { %v3311_v12 = vpop.f32.mrb[26].mxu0 }
0x1978   : > { %v3312_v49 = vadd.f32 %v5531_v57, %v3311_v12  ;;  %v6274_v58 = vpop.f32.mrb[27].mxu0 }
0x1979   : > { %v7020_v58 = vld [vmem:[%s8435_s2 + $0x10] sm:$0xff] }
0x197a   : > { %v3315_v59 = vadd.f32 %v3312_v49, %v3147_v2  ;;  %v5546_v2 = vld [vmem:[%s8434_s1 + $0x390] sm:$0xff] }
0x197b   : > { %v6729_v46 = vpack.c.bf16 %v5547_v45, %v5546_v2  ;;  %v5555_v2 = vld [vmem:[%s8434_s1 + $0x3a8] sm:$0xff]  ;;  %v5556_v45 = vld [vmem:[%s8434_s1 + $0x3b0] sm:$0xff] }
0x197c   : > { %v3329_v60 = vsel %vm2109_vm15, %v3315_v59, -1e+30  ;;  %v3316_v56 = vsel %vm7672_vm5, %v3315_v59, -1e+30  ;;  %v6735_v48 = vpack.c.bf16 %v5557_v42, %v5556_v45 }
0x197d   : > { %v3330_v63 = vsel %vm221_vm0, %v3329_v60, -inf  ;;  %v3317_v5 = vsel %vm221_vm0, %v3316_v56, -inf  ;;  %6730 = vmatpush3.bf16.msra.mxu1 %v6729_v46  ;;  %v6731_v46 = vpack.c.bf16 %v5555_v2, %v5554_v13  ;;  %v5572_v13 = vld [vmem:[%s8435_s2 + $0x26] ss:$0 sm:$0xff] }
0x197e   : > { %3331 = vmax.xlane.f32.xlu1 %v3330_v63  ;;  %3318 = vmax.xlane.f32.xlu0 %v3317_v5 }
0x1a0b   : > { %v3332_v6 = vpop.xlane.xlu1 %3331  ;;  %v3319_v17 = vpop.xlane.xlu0 %3318 }
0x1a0c   : > { %v7988_v30 = vsub.f32 %v3315_v59, %v3332_v6  ;;  %v7990_v31 = vsub.f32 %v3315_v59, %v3319_v17 }
0x1a0e   : > { %v3334_v10 = vmul.f32 1.442695, %v7988_v30  ;;  %v3321_v18 = vmul.f32 1.442695, %v7990_v31 }
0x1a10   : > { %6972 = vpow2.f32 %v3334_v10 }
0x1a11   : > { %6974 = vpow2.f32 %v3321_v18 }
0x1a1a   : > { %v6973_v19 = vpop.eup %6972 }
0x1a1b   : > { %v6975_v20 = vpop.eup %6974  ;;  %v3336_v21 = vsel %vm2109_vm15, %v6973_v19, 0.0 }
0x1a1c   : > { %v3337_v23 = vsel %vm221_vm0, %v3336_v21, 0.0  ;;  %v3323_v29 = vsel %vm7672_vm5, %v6975_v20, 0.0 }
0x1a1d   : > { %3338 = vadd.xlane.f32.xlu1 %v3337_v23  ;;  %v3324_v33 = vsel %vm221_vm0, %v3323_v29, 0.0 }
0x1a1e   : > { %3325 = vadd.xlane.f32.xlu0 %v3324_v33 }
0x1aaa   : > { %v8026_v28 = vpop.xlane.xlu1 %3338 }
0x1aab   : > { %6976 = vrcp.f32 %v8026_v28  ;;  %v8029_v32 = vpop.xlane.xlu0 %3325 }
0x1aac   : > { %6978 = vrcp.f32 %v8029_v32 }
0x1ab5   : > { %v6977_v27 = vpop.eup %6976 }
0x1ab6   : > { %v3341_v37 = vmul.f32 %v6977_v27, %v3336_v21  ;;  %v6979_v36 = vpop.eup %6978 }
0x1ab7   : > { %v3328_v57 = vmul.f32 %v6979_v36, %v3323_v29  ;;  %v5566_v36 = vld [vmem:[%s8434_s1 + $0x3f0] sm:$0xff] }
0x1ab9   : > { %v3342_v12 = vadd.f32 %v3341_v37, %v3328_v57  ;;  %v5567_v57 = vld [vmem:[%s8434_s1 + $0x3f8] sm:$0xff] }
0x1abb   : > { %v8034_v49 = vsel %vm2137_vm6, %v3315_v59, %v3342_v12 }
0x1abc   : > { %v3344_v60 = vadd.f32 %v7020_v58, %v8034_v49  ;;  %6306 = vmatmul.mubr.msk.f32.vlgmr.msra.gmra.mrb[32].mxu1 %vm221_vm0, %v8034_v49 }
0x1abe   : > { %6295 = vmatmul.mubr.msk.f32.vlgmr.msra.gmra.mrb[28].mxu0 %vm221_vm0, %v3344_v60 }
0x1abf   : > { %6310 = vmatprep.mubr.msk.f32.mxu0 %vm221_vm0, %v3416_v8 }
0x1b8f   : > { %v3577_v56 = vpop.f32.mrb[32].mxu1 }
0x1b90   : > { %v6307_v63 = vpop.f32.mrb[33].mxu1  ;;  %6313 = vmatprep.subr.mxu1 %v3577_v56 }
0x1b91   : > { %v3499_v5 = vpop.f32.mrb[28].mxu0  ;;  %6314 = vmatpush3.msra.mxu1 %v3577_v56  ;;  %v6743_v56 = vpack.c.bf16 %v5567_v57, %v5566_v36  ;;  %v5560_v63 = vld [vmem:[%s8434_s1 + $0x3c0] sm:$0xff] }
0x1b92   : > { %v6296_v59 = vpop.f32.mrb[29].mxu0  ;;  %6308 = vmatprep.subr.msk.mxu0 %vm221_vm0, %v3499_v5  ;;  %6740 = vmatprep.subr.bf16.mxu1 %v6739_v43 }
0x1b93   : > { %6309 = vmatpush3.xpose.msk.msra.mxu0 %vm221_vm0, %v3499_v5  ;;  %v5561_v5 = vld [vmem:[%s8434_s1 + $0x3c8] sm:$0xff] }
0x1b94   : > { %6732 = vmatprep.subr.bf16.mxu0 %v6731_v46  ;;  %v6747_v59 = vpack.c.bf16 %v5561_v5, %v5560_v63 }
0x1b96   : > { %6311 = vmatmul.mubr.msk.f32.vlgmr.msra.gmra.mrb[30].mxu0 %vm221_vm0, %v7977_v51 }
0x1b97   : > { %6734 = vmatpush3.bf16.msra.mxu0 %v6731_v46 }
0x1b98   : > { %6736 = vmatprep.subr.bf16.mxu0 %v6735_v48 }
0x1b9b   : > { %6738 = vmatpush3.bf16.msra.mxu0 %v6735_v48  ;;  %v5575_v48 = vld [vmem:[%s8434_s1 + $0x410] sm:$0xff] }
0x1c69   : > { %v6312_v6 = vpop.f32.mrb[30].mxu0 }
0x1c6a   : > { %v3656_v17 = vpop.f32.mrb[31].mxu0  ;;  %v3669_v10 = vsel %vm3665_vm11, %v6312_v6, -inf }
0x1c6b   : > { %3670 = vmax.xlane.f32.xlu1 %v3669_v10  ;;  %v3666_v8 = vsel %vm3665_vm11, %v3656_v17, -inf }
0x1c6c   : > { %3667 = vmax.xlane.f32.xlu0 %v3666_v8  ;;  %v5577_v8 = vld [vmem:[%s8434_s1 + $0x420] sm:$0xff] }
0x1cf8   : > { %v3671_v18 = vpop.xlane.xlu1 %3670 }
0x1cf9   : > { %v3673_v19 = vsub.f32 %v6312_v6, %v3671_v18  ;;  %v3668_v20 = vpop.xlane.xlu0 %3667  ;;  %v5578_v18 = vld [vmem:[%s8434_s1 + $0x428] sm:$0xff] }
0x1cfa   : > { %v3672_v21 = vsub.f32 %v3656_v17, %v3668_v20 }
0x1cfb   : > { %v3676_v23 = vmul.f32 1.442695, %v3673_v19  ;;  %v6755_v19 = vpack.c.bf16 %v5578_v18, %v5577_v8 }
0x1cfc   : > { %v3674_v29 = vmul.f32 1.442695, %v3672_v21 }
0x1cfd   : > { %6980 = vpow2.f32 %v3676_v23  ;;  %6756 = vmatprep.subr.bf16.mxu0 %v6755_v19 }
0x1cfe   : > { %6982 = vpow2.f32 %v3674_v29 }
0x1d07   : > { %v6981_v33 = vpop.eup %6980 }
0x1d08   : > { %v6983_v34 = vpop.eup %6982  ;;  %v3681_v51 = vsel %vm3665_vm11, %v6981_v33, 0.0 }
0x1d09   : > { %3682 = vadd.xlane.f32.xlu1 %v3681_v51  ;;  %v3678_v24 = vsel %vm3665_vm11, %v6983_v34, 0.0 }
0x1d0a   : > { %3679 = vadd.xlane.f32.xlu0 %v3678_v24 }
0x1d96   : > { %v3683_v25 = vpop.xlane.xlu1 %3682 }
0x1d97   : > { %6984 = vrcp.f32 %v3683_v25  ;;  %v3680_v27 = vpop.xlane.xlu0 %3679  ;;  %v5576_v25 = vld [vmem:[%s8434_s1 + $0x418] sm:$0xff] }
0x1d98   : > { %6986 = vrcp.f32 %v3680_v27  ;;  %v6767_v36 = vpack.c.bf16 %v5576_v25, %v5575_v48  ;;  %v5618_v25 = vld [vmem:[%s8434_s1 + $0x4e0] sm:$0xff] }
0x1d99   : > { %6988 = vlog2.f32 %v7846_v1  ;;  %v5612_v1 = vld [vmem:[%s8434_s1 + $0x4c8] sm:$0xff] }
0x1d9a   : > { %6990 = vlog2.f32 %v7849_v4 }
0x1da1   : > { %v6985_v37 = vpop.eup %6984 }
0x1da2   : > { %v6987_v12 = vpop.eup %6986  ;;  %v8078_v60 = vmul.f32 %v6985_v37, %v6981_v33  ;;  %v5579_v33 = vld [vmem:[%s8434_s1 + $0x430] sm:$0xff] }
0x1da3   : > { %v8076_v58 = vmul.f32 %v6987_v12, %v6983_v34  ;;  %v5580_v34 = vld [vmem:[%s8434_s1 + $0x438] sm:$0xff]  ;;  %v5585_v12 = vld [vmem:[%s8434_s1 + $0x440] sm:$0xff] }
0x1da4   : > { %v6759_v51 = vpack.c.bf16 %v5580_v34, %v5579_v33  ;;  %v5604_v33 = vld [vmem:[%s8434_s1 + $0x4a8] sm:$0xff] }
0x1da5   : > { %6315 = vmatprep.mubr.msk.f32.mxu1 %vm3665_vm11, %v8076_v58 }
0x1da6   : > { %6316 = vmatmul.mubr.msk.f32.vlgmr.msra.gmra.mrb[34].mxu1 %vm3665_vm11, %v8078_v60 }
0x1da7   : > { %6742 = vmatpush3.bf16.msra.mxu1 %v6739_v43  ;;  %6337 = vmatprep.mubr.msk.f32.mxu1 %vm221_vm0, %v7341_v52  ;;  %v5562_v52 = vld [vmem:[%s8434_s1 + $0x3d0] sm:$0xff]  ;;  %v6779_v43 = vpack.c.bf16 %v5593_v16, %v5592_v9 }
0x1da8   : > { %6744 = vmatprep.subr.bf16.mxu1 %v6743_v56 }
0x1dab   : > { %6746 = vmatpush3.bf16.msra.mxu1 %v6743_v56  ;;  %v5586_v56 = vld [vmem:[%s8434_s1 + $0x448] sm:$0xff] }
0x1dac   : > { %6748 = vmatprep.subr.bf16.mxu1 %v6747_v59  ;;  %v6771_v5 = vpack.c.bf16 %v5586_v56, %v5585_v12  ;;  %v5596_v12 = vld [vmem:[%s8435_s2 + $0x28] ss:$0 sm:$0xff] }
0x1dae   : > { %6338 = vmatmul.mubr.msk.f32.vlgmr.msra.gmra.mrb[36].mxu1 %vm221_vm0, %v7354_v62  ;;  %v5563_v62 = vld [vmem:[%s8434_s1 + $0x3d8] sm:$0xff] }
0x1daf   : > { %6750 = vmatpush3.bf16.msra.mxu1 %v6747_v59  ;;  %v6751_v10 = vpack.c.bf16 %v5563_v62, %v5562_v52 }
0x1db1   : > { %6752 = vmatprep.subr.bf16.mxu1 %v6751_v10 }
0x1db3   : > { %6754 = vmatpush3.bf16.msra.mxu1 %v6751_v10 }
0x1db4   : > { %6780 = vmatprep.subr.bf16.mxu1 %v6779_v43 }
0x1e79   : > { %v6317_v6 = vpop.f32.mrb[34].mxu1 }
0x1e7a   : > { %v3760_v17 = vpop.f32.mrb[35].mxu1 }
0x1e7b   : > { %6326 = vmatprep.mubr.msk.f32.mxu0 %vm221_vm0, %v3760_v17  ;;  %v5588_v17 = vld [vmem:[%s8434_s1 + $0x458] sm:$0xff] }
0x1e7c   : > { %6327 = vmatmul.mubr.msk.f32.vlgmr.msra.gmra.mrb[32].mxu0 %vm221_vm0, %v6317_v6  ;;  %v5587_v6 = vld [vmem:[%s8434_s1 + $0x450] sm:$0xff] }
0x1e7d   : > { %6758 = vmatpush3.bf16.msra.mxu0 %v6755_v19  ;;  %v6775_v10 = vpack.c.bf16 %v5588_v17, %v5587_v6  ;;  %v5601_v6 = vld [vmem:[%s8434_s1 + $0x490] sm:$0xff]  ;;  %v5602_v17 = vld [vmem:[%s8434_s1 + $0x498] sm:$0xff] }
0x1e7e   : > { %6760 = vmatprep.subr.bf16.mxu0 %v6759_v51 }
0x1e81   : > { %6762 = vmatpush3.bf16.msra.mxu0 %v6759_v51  ;;  %v5591_v51 = vld [vmem:[%s8435_s2 + $0x27] ss:$0 sm:$0xff] }
0x1f4f   : > { %v6328_v20 = vpop.f32.mrb[32].mxu0 }
0x1f50   : > { %v3846_v21 = vpop.f32.mrb[33].mxu0  ;;  %v3856_v29 = vadd.f32 %v6328_v20, %v7876_v40  ;;  %v5574_v40 = vld [vmem:[%s8434_s1 + $0x408] sm:$0xff]  ;;  %v5594_v20 = vld [vmem:[%s8434_s1 + $0x470] sm:$0xff] }
0x1f51   : > { %v3855_v23 = vadd.f32 %v3846_v21, %v7859_v22  ;;  %v5573_v22 = vld [vmem:[%s8434_s1 + $0x400] sm:$0xff]  ;;  %v5595_v21 = vld [vmem:[%s8434_s1 + $0x478] sm:$0xff] }
0x1f52   : > { %v6763_v24 = vpack.c.bf16 %v5574_v40, %v5573_v22 }
0x1f53   : > { %6348 = vmatprep.mubr.msk.f32.mxu1 %vm221_vm0, %v3855_v23  ;;  %v6783_v23 = vpack.c.bf16 %v5595_v21, %v5594_v20  ;;  %v5614_v20 = vld [vmem:[%s8434_s1 + $0x4d8] sm:$0xff] }
0x1f54   : > { %6349 = vmatmul.mubr.msk.f32.vlgmr.msra.gmra.mrb[36].mxu1 %vm221_vm0, %v3856_v29  ;;  %6764 = vmatprep.subr.bf16.mxu0 %v6763_v24  ;;  %v5603_v29 = vld [vmem:[%s8434_s1 + $0x4a0] sm:$0xff] }
0x1f55   : > { %6782 = vmatpush3.bf16.msra.mxu1 %v6779_v43  ;;  %v6787_v34 = vpack.c.bf16 %v5604_v33, %v5603_v29  ;;  %v6989_v33 = vpop.eup %6988 }
0x1f56   : > { %6784 = vmatprep.subr.bf16.mxu1 %v6783_v23 }
0x1f59   : > { %6786 = vmatpush3.bf16.msra.mxu1 %v6783_v23 }
0x1f5a   : > { %6788 = vmatprep.subr.bf16.mxu1 %v6787_v34 }
0x2027   : > { %v6350_v2 = vpop.f32.mrb[36].mxu1 }
0x2028   : > { %v4029_v45 = vadd.f32 %v6350_v2, %v5572_v13  ;;  %v4014_v46 = vpop.f32.mrb[37].mxu1  ;;  %v5606_v2 = vld [vmem:[%s8434_s1 + $0x4b8] sm:$0xff] }
0x2029   : > { %v4028_v42 = vadd.f32 %v5572_v13, %v4014_v46  ;;  %v5605_v13 = vld [vmem:[%s8434_s1 + $0x4b0] sm:$0xff]  ;;  %v5599_v46 = vld [vmem:[%s8434_s1 + $0x480] sm:$0xff] }
0x202a   : > { %v8141_v37 = vmax.f32 %v4029_v45, 0.0  ;;  %v6791_v45 = vpack.c.bf16 %v5606_v2, %v5605_v13 }
0x202b   : > { %v8139_v27 = vmax.f32 %v4028_v42, 0.0  ;;  %v5600_v42 = vld [vmem:[%s8434_s1 + $0x488] sm:$0xff] }
0x202c   : > { %v4035_v59 = vrot.slane %v8141_v37, 7  ;;  %v4040_v62 = vrot.slane %v8141_v37, 1  ;;  %v6795_v48 = vpack.c.bf16 %v5600_v42, %v5599_v46  ;;  %v5625_v46 = vld [vmem:[%s8434_s1 + $0x500] sm:$0xff]  ;;  %v5626_v42 = vld [vmem:[%s8434_s1 + $0x508] sm:$0xff] }
0x202d   : > { %6359 = vmatprep.mubr.msk.f32.mxu0 %vm221_vm0, %v8139_v27  ;;  %v4034_v57 = vrot.slane %v8139_v27, 7  ;;  %v4039_v52 = vrot.slane %v8139_v27, 1 }
0x202e   : > { %6360 = vmatmul.mubr.msk.f32.vlgmr.msra.gmra.mrb[34].mxu0 %vm221_vm0, %v8141_v37  ;;  %v4043_v19 = vsel %vm313_vm2, %v4040_v62, 0.0 }
0x202f   : > { %6766 = vmatpush3.bf16.msra.mxu0 %v6763_v24  ;;  %v4038_v63 = vsel %vm307_vm1, 0.0, %v4034_v57  ;;  %v4036_v8 = vsel %vm307_vm1, %v4034_v57, %v4035_v59  ;;  %v4041_v18 = vsel %vm313_vm2, %v4039_v52, %v4040_v62  ;;  %vm5259_vm1 = vcmask 392192  }
0x2030   : > { %6370 = vmatprep.mubr.msk.f32.mxu0 %vm221_vm0, %v4038_v63  ;;  %6768 = vmatprep.subr.bf16.mxu0 %v6767_v36  ;;  %vm5199_vm2 = vcmp.lt.s32.totalorder %v7251_v50, 9 }
0x2033   : > { %6770 = vmatpush3.bf16.msra.mxu0 %v6767_v36  ;;  %v5619_v36 = vld [vmem:[%s8434_s1 + $0x4e8] sm:$0xff] }
0x2034   : > { %6772 = vmatprep.subr.bf16.mxu0 %v6771_v5  ;;  %v6811_v57 = vpack.c.bf16 %v5619_v36, %v5618_v25  ;;  %v5617_v25 = vld [vmem:[%s8435_s2 + $0x29] ss:$0 sm:$0xff] }
0x2036   : > { %6371 = vmatmul.mubr.msk.f32.vlgmr.msra.gmra.mrb[34].mxu0 %vm221_vm0, %v4036_v8 }
0x2037   : > { %6774 = vmatpush3.bf16.msra.mxu0 %v6771_v5  ;;  %6381 = vmatprep.mubr.msk.f32.mxu0 %vm221_vm0, %v4041_v18  ;;  %v5611_v18 = vld [vmem:[%s8434_s1 + $0x4c0] sm:$0xff] }
0x2038   : > { %6776 = vmatprep.subr.bf16.mxu0 %v6775_v10 }
0x203b   : > { %6778 = vmatpush3.bf16.msra.mxu0 %v6775_v10  ;;  %v6799_v10 = vpack.c.bf16 %v5602_v17, %v5601_v6  ;;  %v5627_v17 = vld [vmem:[%s8434_s1 + $0x510] sm:$0xff] }
0x203c   : > { %6812 = vmatprep.subr.bf16.mxu0 %v6811_v57 }
0x203e   : > { %6382 = vmatmul.mubr.msk.f32.vlgmr.msra.gmra.mrb[34].mxu0 %vm221_vm0, %v4043_v19  ;;  %v5613_v19 = vld [vmem:[%s8434_s1 + $0x4d0] sm:$0xff] }
0x203f   : > { %6814 = vmatpush3.bf16.msra.mxu0 %v6811_v57  ;;  %v6807_v29 = vpack.c.bf16 %v5614_v20, %v5613_v19 }
0x2111   : > { %v6383_v22 = vpop.f32.mrb[34].mxu0 }
0x2112   : > { %v4306_v40 = vadd.f32 %v6383_v22, %v5591_v51  ;;  %v4289_v24 = vpop.f32.mrb[35].mxu0 }
0x2113   : > { %v4305_v9 = vadd.f32 %v5591_v51, %v4289_v24  ;;  %v6991_v51 = vpop.eup %6990 }
0x2114   : > { %v4308_v43 = vmax.f32 %v4306_v40, 0.0  ;;  %v5029_v40 = vmul.f32 0.6931472, %v6989_v33  ;;  %v5021_v24 = vmul.f32 0.6931472, %v6991_v51 }
0x2115   : > { %v4307_v16 = vmax.f32 %v4305_v9, 0.0 }
0x2116   : > { %v5031_v9 = vsub.f32 %v7801_v14, %v5029_v40 }
0x2117   : > { %6392 = vmatprep.mubr.msk.f32.mxu1 %vm221_vm0, %v4307_v16  ;;  %v5023_v16 = vsub.f32 %v7804_v15, %v5021_v24  ;;  %v5620_v15 = vld [vmem:[%s8434_s1 + $0x4f0] sm:$0xff] }
0x2118   : > { %6393 = vmatmul.mubr.msk.f32.vlgmr.msra.gmra.mrb[38].mxu1 %vm221_vm0, %v4308_v43  ;;  %v5033_v13 = vsel %vm1145_vm8, %v5031_v9, 0.0 }
0x2119   : > { %6790 = vmatpush3.bf16.msra.mxu1 %v6787_v34  ;;  %v5025_v2 = vsel %vm7258_vm7, %v5023_v16, 0.0 }
0x211a   : > { %6792 = vmatprep.subr.bf16.mxu1 %v6791_v45  ;;  %v5035_v14 = vadd.f32 %v5033_v13, %v5025_v2 }
0x211d   : > { %6794 = vmatpush3.bf16.msra.mxu1 %v6791_v45 }
0x211e   : > { %6796 = vmatprep.subr.bf16.mxu1 %v6795_v48 }
0x21eb   : > { %v6394_v56 = vpop.f32.mrb[38].mxu1 }
0x21ec   : > { %v4397_v63 = vadd.f32 %v6394_v56, %v5596_v12  ;;  %v4391_v5 = vpop.f32.mrb[39].mxu1 }
0x21ed   : > { %v4392_v59 = vadd.f32 %v5596_v12, %v4391_v5 }
0x21ee   : > { %v8221_v62 = vadd.f32 %v4397_v63, %v8141_v37 }
0x21ef   : > { %v8217_v52 = vadd.f32 %v4392_v59, %v8139_v27  ;;  %v6803_v27 = vpack.c.bf16 %v5612_v1, %v5611_v18  ;;  %v5622_v18 = vld [vmem:[%s8435_s2 + $0x2a] ss:$0 sm:$0xff] }
0x21f0   : > { %v4405_v37 = vrot.slane %v8221_v62, 6  ;;  %v4410_v23 = vrot.slane %v8221_v62, 2 }
0x21f1   : > { %6403 = vmatprep.mubr.msk.f32.mxu1 %vm221_vm0, %v8217_v52  ;;  %v4404_v8 = vrot.slane %v8217_v52, 6  ;;  %v4409_v21 = vrot.slane %v8217_v52, 2 }
0x21f2   : > { %6404 = vmatmul.mubr.msk.f32.vlgmr.msra.gmra.mrb[40].mxu1 %vm221_vm0, %v8221_v62  ;;  %v4413_v43 = vsel %vm685_vm4, %v4410_v23, 0.0 }
0x21f3   : > { %6798 = vmatpush3.bf16.msra.mxu1 %v6795_v48  ;;  %v4408_v4 = vsel %vm679_vm3, 0.0, %v4404_v8  ;;  %v4406_v34 = vsel %vm679_vm3, %v4404_v8, %v4405_v37  ;;  %v4411_v22 = vsel %vm685_vm4, %v4409_v21, %v4410_v23  ;;  %v6819_v48 = vpack.c.bf16 %v5626_v42, %v5625_v46  ;;  %v5629_v21 = vld [vmem:[%s8435_s2 + $0x2b] ss:$0 sm:$0xff] }
0x21f4   : > { %6414 = vmatprep.mubr.msk.f32.mxu1 %vm221_vm0, %v4408_v4  ;;  %6800 = vmatprep.subr.bf16.mxu1 %v6799_v10  ;;  %vm5262_vm3 = vcmask 523264  }
0x21f7   : > { %6802 = vmatpush3.bf16.msra.mxu1 %v6799_v10  ;;  %v5628_v10 = vld [vmem:[%s8434_s1 + $0x518] sm:$0xff] }
0x21f8   : > { %6804 = vmatprep.subr.bf16.mxu1 %v6803_v27  ;;  %v6823_v8 = vpack.c.bf16 %v5628_v10, %v5627_v17 }
0x21fa   : > { %6415 = vmatmul.mubr.msk.f32.vlgmr.msra.gmra.mrb[40].mxu1 %vm221_vm0, %v4406_v34 }
0x21fb   : > { %6806 = vmatpush3.bf16.msra.mxu1 %v6803_v27  ;;  %6425 = vmatprep.mubr.msk.f32.mxu1 %vm221_vm0, %v4411_v22 }
0x21fc   : > { %6808 = vmatprep.subr.bf16.mxu1 %v6807_v29 }
0x21ff   : > { %6810 = vmatpush3.bf16.msra.mxu1 %v6807_v29 }
0x2200   : > { %6836 = vmatprep.subr.bf16.mxu1 %v7579_v38 }
0x2202   : > { %6426 = vmatmul.mubr.msk.f32.vlgmr.msra.gmra.mrb[40].mxu1 %vm221_vm0, %v4413_v43 }
0x2203   : > { %6838 = vmatpush3.bf16.msra.mxu1 %v7579_v38  ;;  %6469 = vmatprep.mubr.msk.f32.mxu1 %vm221_vm0, %v7869_v41  ;;  %v5621_v41 = vld [vmem:[%s8434_s1 + $0x4f8] sm:$0xff] }
0x2204   : > { %6840 = vmatprep.subr.bf16.mxu1 %v7597_v47  ;;  %v6815_v45 = vpack.c.bf16 %v5621_v41, %v5620_v15 }
0x2206   : > { %6816 = vmatprep.subr.bf16.mxu0 %v6815_v45 }
0x2207   : > { %6842 = vmatpush3.bf16.msra.mxu1 %v7597_v47  ;;  %6818 = vmatpush3.bf16.msra.mxu0 %v6815_v45 }
0x2208   : > { %6820 = vmatprep.subr.bf16.mxu0 %v6819_v48 }
0x220a   : > { %6470 = vmatmul.mubr.msk.f32.vlgmr.msra.gmra.mrb[42].mxu1 %vm221_vm0, %v5035_v14 }
0x22d5   : > { %v6427_v36 = vpop.f32.mrb[40].mxu1 }
0x22d6   : > { %v4676_v57 = vadd.f32 %v6427_v36, %v5617_v25  ;;  %v4659_v12 = vpop.f32.mrb[41].mxu1 }
0x22d7   : > { %v4675_v56 = vadd.f32 %v5617_v25, %v4659_v12 }
0x22d8   : > { %v4678_v5 = vmax.f32 %v4676_v57, 0.0 }
0x22d9   : > { %v4677_v63 = vmax.f32 %v4675_v56, 0.0 }
0x22db   : > { %6436 = vmatprep.mubr.msk.f32.mxu0 %vm221_vm0, %v4677_v63 }
0x22dc   : > { %6437 = vmatmul.mubr.msk.f32.vlgmr.msra.gmra.mrb[36].mxu0 %vm221_vm0, %v4678_v5 }
0x22dd   : > { %v8281_v59 = vpop.f32.mrb[42].mxu1  ;;  %6822 = vmatpush3.bf16.msra.mxu0 %v6819_v48 }
0x22de   : > { %v8283_v6 = vpop.f32.mrb[43].mxu1  ;;  %6824 = vmatprep.subr.bf16.mxu0 %v6823_v8 }
0x22e1   : > { %6826 = vmatpush3.bf16.msra.mxu0 %v6823_v8 }
0x22e2   : > { %6828 = vmatprep.subr.bf16.mxu0 %v7579_v38 }
0x23af   : > { %v6438_v1 = vpop.f32.mrb[36].mxu0 }
0x23b0   : > { %v4767_v4 = vadd.f32 %v6438_v1, %v5622_v18  ;;  %v4761_v27 = vpop.f32.mrb[37].mxu0 }
0x23b1   : > { %v4762_v37 = vadd.f32 %v5622_v18, %v4761_v27 }
0x23b2   : > { %v4771_v20 = vadd.f32 %v4767_v4, %v8221_v62 }
0x23b3   : > { %v4770_v19 = vadd.f32 %v4762_v37, %v8217_v52 }
0x23b5   : > { %6447 = vmatprep.mubr.msk.f32.mxu0 %vm221_vm0, %v4770_v19 }
0x23b6   : > { %6448 = vmatmul.mubr.msk.f32.vlgmr.msra.gmra.mrb[38].mxu0 %vm221_vm0, %v4771_v20 }
0x23b7   : > { %6830 = vmatpush3.bf16.msra.mxu0 %v7579_v38 }
0x23b8   : > { %6832 = vmatprep.subr.bf16.mxu0 %v7597_v47 }
0x23bb   : > { %6834 = vmatpush3.bf16.msra.mxu0 %v7597_v47 }
0x23bc   : > { %6843 = vmatprep.subr.bf16.mxu0 %v7029_v55 }
0x2489   : > { %v6449_v23 = vpop.f32.mrb[38].mxu0 }
0x248a   : > { %v4854_v52 = vpop.f32.mrb[39].mxu0  ;;  %v8306_v29 = vadd.f32 %v6449_v23, %v5629_v21 }
0x248b   : > { %v8308_v62 = vadd.f32 %v5629_v21, %v4854_v52 }
0x248c   : > { %v4890_v51 = vsel %vm1145_vm8, %v8306_v29, -1e+30  ;;  %v4864_v22 = vsel %vm7258_vm7, %v8306_v29, -1e+30 }
0x248d   : > { %v4889_v38 = vsel %vm1145_vm8, %v8308_v62, -1e+30  ;;  %v4863_v47 = vsel %vm7258_vm7, %v8308_v62, -1e+30  ;;  %v4894_v40 = vsel %vm221_vm0, %v4890_v51, -inf  ;;  %v4868_v24 = vsel %vm221_vm0, %v4864_v22, -inf }
0x248e   : > { %v4891_v33 = vsel %vm221_vm0, %v4889_v38, -inf  ;;  %v4865_v34 = vsel %vm221_vm0, %v4863_v47, -inf }
0x248f   : > { %4892 = vmax.xlane.f32.xlu1 %v4891_v33  ;;  %4866 = vmax.xlane.f32.xlu0 %v4865_v34 }
0x2493   : > { %4895 = vmax.xlane.f32.xlu1 %v4894_v40  ;;  %4869 = vmax.xlane.f32.xlu0 %v4868_v24 }
0x251c   : > { %v4893_v9 = vpop.xlane.xlu1 %4892  ;;  %v4867_v16 = vpop.xlane.xlu0 %4866 }
0x251d   : > { %v8327_v43 = vsub.f32 %v8308_v62, %v4893_v9  ;;  %v8330_v13 = vsub.f32 %v8308_v62, %v4867_v16 }
0x251f   : > { %v4899_v2 = vmul.f32 1.442695, %v8327_v43  ;;  %v4873_v14 = vmul.f32 1.442695, %v8330_v13 }
0x2520   : > { %v4896_v15 = vpop.xlane.xlu1 %4895  ;;  %v4870_v41 = vpop.xlane.xlu0 %4869 }
0x2521   : > { %6992 = vpow2.f32 %v4899_v2  ;;  %v8335_v45 = vsub.f32 %v8306_v29, %v4896_v15  ;;  %v8338_v46 = vsub.f32 %v8306_v29, %v4870_v41 }
0x2522   : > { %6994 = vpow2.f32 %v4873_v14 }
0x2523   : > { %v4901_v42 = vmul.f32 1.442695, %v8335_v45  ;;  %v4875_v48 = vmul.f32 1.442695, %v8338_v46 }
0x2525   : > { %6996 = vpow2.f32 %v4901_v42 }
0x2526   : > { %6998 = vpow2.f32 %v4875_v48 }
0x2527   : > { %7000 = vlog2.f32 %v8026_v28 }
0x2528   : > { %7002 = vlog2.f32 %v8029_v32 }
0x252b   : > { %v6993_v25 = vpop.eup %6992 }
0x252c   : > { %v6995_v36 = vpop.eup %6994  ;;  %v4903_v57 = vsel %vm1145_vm8, %v6993_v25, 0.0 }
0x252d   : > { %v4905_v12 = vsel %vm221_vm0, %v4903_v57, 0.0  ;;  %v4877_v56 = vsel %vm7258_vm7, %v6995_v36, 0.0 }
0x252e   : > { %4906 = vadd.xlane.f32.xlu1 %v4905_v12  ;;  %v4879_v63 = vsel %vm221_vm0, %v4877_v56, 0.0 }
0x252f   : > { %v6997_v5 = vpop.eup %6996  ;;  %4880 = vadd.xlane.f32.xlu0 %v4879_v63 }
0x2530   : > { %v6999_v17 = vpop.eup %6998  ;;  %v4904_v10 = vsel %vm1145_vm8, %v6997_v5, 0.0 }
0x2531   : > { %v4908_v8 = vsel %vm221_vm0, %v4904_v10, 0.0  ;;  %v4878_v18 = vsel %vm7258_vm7, %v6999_v17, 0.0 }
0x2532   : > { %4909 = vadd.xlane.f32.xlu1 %v4908_v8  ;;  %v4882_v1 = vsel %vm221_vm0, %v4878_v18, 0.0 }
0x2533   : > { %4883 = vadd.xlane.f32.xlu0 %v4882_v1 }
0x2543   : > { %5223 = vrot.lane.b32.xlu1 %v7647_v11, %s7032_s29 }
0x2547   : > { %5229 = vrot.lane.b32.xlu1 %v7689_v39, %s7033_s30 }
0x2549   : > { %5221 = vrot.lane.b32.xlu0 %v7655_v44, %s7032_s29  ;;  %v7001_v44 = vpop.eup %7000 }
0x254a   : > { %v7003_v39 = vpop.eup %7002 }
0x254b   : > { %5231 = vrot.lane.b32.xlu1 %v7687_v35, %s7033_s30  ;;  %v5118_v63 = vmul.f32 0.6931472, %v7003_v39 }
0x254d   : > { %v5119_v1 = vsub.f32 %v7990_v31, %v5118_v63 }
0x25bb   : > { %v4907_v4 = vpop.xlane.xlu1 %4906 }
0x25bc   : > { %7004 = vrcp.f32 %v4907_v4  ;;  %v4881_v27 = vpop.xlane.xlu0 %4880 }
0x25bd   : > { %7006 = vlog2.f32 %v4907_v4 }
0x25be   : > { %7008 = vrcp.f32 %v4881_v27 }
0x25bf   : > { %7010 = vlog2.f32 %v4881_v27  ;;  %v4910_v11 = vpop.xlane.xlu1 %4909 }
0x25c0   : > { %7012 = vrcp.f32 %v4910_v11  ;;  %v4884_v37 = vpop.xlane.xlu0 %4883 }
0x25c1   : > { %7014 = vlog2.f32 %v4910_v11 }
0x25c2   : > { %7016 = vrcp.f32 %v4884_v37 }
0x25c3   : > { %7018 = vlog2.f32 %v4884_v37  ;;  %v5224_v32 = vpop.permute.xlu1 %5223 }
0x25c4   : > { %v5222_v41 = vpop.permute.xlu0 %5221 }
0x25c6   : > { %v7005_v19 = vpop.eup %7004 }
0x25c7   : > { %v7007_v35 = vpop.eup %7006  ;;  %v4913_v20 = vmul.f32 %v7005_v19, %v4903_v57  ;;  %v5230_v25 = vpop.permute.xlu1 %5229 }
0x25c8   : > { %v7009_v28 = vpop.eup %7008  ;;  %v4928_v21 = vmul.f32 0.6931472, %v7007_v35 }
0x25c9   : > { %v7011_v23 = vpop.eup %7010  ;;  %v4887_v52 = vmul.f32 %v7009_v28, %v4877_v56  ;;  %v5122_v56 = vmul.f32 0.6931472, %v7001_v44 }
0x25ca   : > { %v7013_v38 = vpop.eup %7012  ;;  %v4931_v47 = vsub.f32 %v8327_v43, %v4928_v21  ;;  %v4920_v33 = vmul.f32 0.6931472, %v7011_v23 }
0x25cb   : > { %v7015_v34 = vpop.eup %7014  ;;  %v4914_v51 = vmul.f32 %v7013_v38, %v4904_v10  ;;  %v4915_v22 = vadd.f32 %v4913_v20, %v4887_v52  ;;  %v5232_v27 = vpop.permute.xlu1 %5231 }
0x25cc   : > { %v7017_v40 = vpop.eup %7016  ;;  %v4923_v24 = vsub.f32 %v8330_v13, %v4920_v33  ;;  %v4930_v9 = vmul.f32 0.6931472, %v7015_v34  ;;  %v4933_v16 = vsel %vm1145_vm8, %v4931_v47, 0.0 }
0x25cd   : > { %v7019_v2 = vpop.eup %7018  ;;  %v4888_v14 = vmul.f32 %v7017_v40, %v4878_v18  ;;  %v4917_v15 = vsel %vm1200_vm9, %v8308_v62, %v4915_v22  ;;  %v5123_v18 = vsub.f32 %v7988_v30, %v5122_v56 }
0x25ce   : > { %v4932_v43 = vsub.f32 %v8335_v45, %v4930_v9  ;;  %v4922_v42 = vmul.f32 0.6931472, %v7019_v2  ;;  %v5257_v48 = vsel %vm221_vm0, %v4917_v15, %v5222_v41  ;;  %v4925_v13 = vsel %vm7258_vm7, %v4923_v24, 0.0 }
0x25cf   : > { %v4916_v36 = vadd.f32 %v4914_v51, %v4888_v14  ;;  %v5260_v57 = vsel %vm5259_vm1, %v5257_v48, %v5230_v25  ;;  %v4935_v12 = vadd.f32 %v4933_v16, %v4925_v13  ;;  %v5124_v53 = vsel %vm2109_vm15, %v5123_v18, 0.0 }
0x25d0   : > { %v4934_v5 = vsel %vm1145_vm8, %v4932_v43, 0.0  ;;  %v4924_v62 = vsub.f32 %v8338_v46, %v4922_v42  ;;  %vm5265_vm8 = vcmask 654336  }
0x25d1   : > { %v4918_v45 = vsel %vm1200_vm9, %v8306_v29, %v4916_v36  ;;  %6458 = vmatprep.mubr.msk.f32.mxu0 %vm221_vm0, %v4935_v12  ;;  %v5120_v29 = vsel %vm7672_vm5, %v5119_v1, 0.0  ;;  %vm5268_vm9 = vcmask 785408  }
0x25d2   : > { %v4926_v17 = vsel %vm7258_vm7, %v4924_v62, 0.0  ;;  %v5258_v10 = vsel %vm221_vm0, %v4918_v45, %v5224_v32  ;;  %v5125_v30 = vadd.f32 %v5124_v53, %v5120_v29 }
0x25d3   : > { %v4936_v8 = vadd.f32 %v4934_v5, %v4926_v17  ;;  %v5261_v11 = vsel %vm5259_vm1, %v5258_v10, %v5232_v27 }
0x25d5   : > { %6459 = vmatmul.mubr.msk.f32.vlgmr.msra.gmra.mrb[40].mxu0 %vm221_vm0, %v4936_v8 }
0x25d6   : > { %6845 = vmatpush3.bf16.msra.mxu0 %v7707_v61  ;;  %6480 = vmatprep.mubr.msk.f32.mxu0 %vm7030_vm10, %v7031_v54  ;;  %vm5271_vm10 = vcmask 850944  }
0x25d7   : > { %6846 = vmatprep.subr.bf16.mxu0 %v7029_v55 }
0x25da   : > { %6848 = vmatpush3.bf16.msra.mxu0 %v7723_v0 }
0x25dd   : > { %6481 = vmatmul.mubr.msk.f32.vlgmr.msra.gmra.mrb[42].mxu0 %vm221_vm0, %v5125_v30 }
0x26a8   : > { %v6460_v31 = vpop.f32.mrb[40].mxu0 }
0x26a9   : > { %5239 = vrot.lane.b32.xlu1 %v6460_v31, %s7034_s5  ;;  %v5009_v61 = vpop.f32.mrb[41].mxu0  ;;  %v5201_v4 = vsel %vm5199_vm2, %v6460_v31, -1e+30 }
0x26aa   : > { %5237 = vrot.lane.b32.xlu0 %v5009_v61, %s7034_s5  ;;  %v5200_v46 = vsel %vm5199_vm2, %v5009_v61, -1e+30  ;;  %v5205_v0 = vsel %vm1775_vm12, %v5201_v4, -inf }
0x26ab   : > { %v5202_v26 = vsel %vm1775_vm12, %v5200_v46, -inf }
0x26b0   : > { %v5195_v54 = vpop.f32.mrb[42].mxu0 }
0x26b1   : > { %v6482_v55 = vpop.f32.mrb[43].mxu0 }
0x26c9   : > { %5203 = vmax.xlane.f32.xlu0 %v5202_v26 }
0x26cd   : > { %5206 = vmax.xlane.f32.xlu1 %v5205_v0 }
0x26de   : > { %5247 = vrot.lane.b32.xlu1 %v8281_v59, %s7035_s6 }
0x26df   : > { %5245 = vrot.lane.b32.xlu0 %v8283_v6, %s7035_s6  ;;  %v5210_v6 = vcvt.s32.f32 %v7251_v50 }
0x26e2   : > { %5251 = vrot.lane.b32.xlu1 %v8076_v58, %s7036_s7 }
0x26e3   : > { %5278 = vrot.lane.b32.xlu0 %v7767_v3, %s7032_s29 }
0x26e7   : > { %5253 = vrot.lane.b32.xlu0 %v8078_v60, %s7036_s7 }
0x271b   : > { %v5240_v37 = vpop.permute.xlu1 %5239 }
0x271c   : > { %v5264_v44 = vsel %vm5262_vm3, %v5261_v11, %v5240_v37  ;;  %v5238_v39 = vpop.permute.xlu0 %5237 }
0x271d   : > { %v5263_v59 = vsel %vm5262_vm3, %v5260_v57, %v5238_v39 }
0x2756   : > { %v5204_v19 = vpop.xlane.xlu0 %5203 }
0x2757   : > { %vm5208_vm4 = vcmp.eq.f32.partialorder %v5200_v46, %v5204_v19 }
0x2758   : > { %v5211_v58 = vsel %vm5208_vm4, %v5210_v6, 9.0 }
0x2759   : > { %v5213_v3 = vsel %vm1775_vm12, %v5211_v58, inf }
0x275a   : > { %v5207_v35 = vpop.xlane.xlu1 %5206  ;;  %5214 = vmin.xlane.f32.xlu0 %v5213_v3  ;;  %v5246_v28 = vpop.permute.xlu0 %5245 }
0x275b   : > { %vm5209_vm7 = vcmp.eq.f32.partialorder %v5201_v4, %v5207_v35  ;;  %v5266_v52 = vsel %vm5265_vm8, %v5263_v59, %v5246_v28 }
0x275c   : > { %v5212_v60 = vsel %vm5209_vm7, %v5210_v6, 9.0 }
0x275d   : > { %v5216_v20 = vsel %vm1775_vm12, %v5212_v60, inf }
0x275e   : > { %5217 = vmin.xlane.f32.xlu1 %v5216_v20  ;;  %v5279_v50 = vpop.permute.xlu0 %5278  ;;  %v5248_v21 = vpop.permute.xlu1 %5247 }
0x275f   : > { %v5267_v34 = vsel %vm5265_vm8, %v5264_v44, %v5248_v21  ;;  %v5288_v9 = vsel %vm221_vm0, %v8034_v49, %v5279_v50 }
0x2762   : > { %v5254_v32 = vpop.permute.xlu0 %5253  ;;  %v5252_v23 = vpop.permute.xlu1 %5251 }
0x2763   : > { %v5269_v38 = vsel %vm5268_vm9, %v5266_v52, %v5252_v23  ;;  %v5270_v51 = vsel %vm5268_vm9, %v5267_v34, %v5254_v32 }
0x276f   : > { %5282 = vrot.lane.b32.xlu1 %v5195_v54, %s7033_s30 }
0x2770   : > { %5285 = vrot.lane.b32.xlu0 %v7914_v7, %s7034_s5 }
0x27e7   : > { %v5215_v47 = vpop.xlane.xlu0 %5214 }
0x27e8   : > { %v5272_v33 = vsel %vm5271_vm10, %v5269_v38, %v5215_v47 }
0x27e9   : > { %v5275_v7 = vsel %vm5274_vm13, %v5272_v33, 0.0 }
0x27ea   : > { %5292 = vst [vmem:[%s197_s11] sm:$0xff] %v5275_v7 }
0x27eb   : > { %v5218_v22 = vpop.xlane.xlu1 %5217  ;;  %v5286_v2 = vpop.permute.xlu0 %5285 }
0x27ec   : > { %v5273_v40 = vsel %vm5271_vm10, %v5270_v51, %v5218_v22 }
0x27ed   : > { %v5276_v24 = vsel %vm5274_vm13, %v5273_v40, 0.0 }
0x27ee   : > { %5293 = vst [vmem:[%s197_s11 + $0x8] sm:$0xff] %v5276_v24 }
0x27ef   : > { %v5283_v16 = vpop.permute.xlu1 %5282 }
0x27f0   : > { %v5289_v14 = vsel %vm5259_vm1, %v5288_v9, %v5283_v16 }
0x27f1   : > { %v5290_v15 = vsel %vm5262_vm3, %v5289_v14, %v5286_v2 }
0x27f2   : > { %v5291_v41 = vsel %vm5265_vm8, %v5290_v15, 0.0 }
0x27f3   : > { %5294 = vst [vmem:[%s197_s11 + $0x10] sm:$0xff] %v5291_v41 }
0x27f4 PF: > { %s14_s15 = sadd.s32 1, %s7027_s15  }
0x27f5   : > { %p11_p4 = scmp.ge.s32.totalorder %s14_s15, 4  }
0x27f7   :  { %13 = sbr.rel (!%p11_p4) target bundleno = 1 (0x1), region = 107 }

</bundles_post_ra>
